<compile_context>
chip_gen: v5e
topology: v5e:2x2
jax: 0.10.0
libtpu: 0.0.40
codegen_flags: <defaults>
</compile_context>

<pallas_src>
import functools

import jax
import jax.numpy as jnp
from jax import lax
from jax.experimental import pallas as pl
from jax.experimental.pallas import tpu as pltpu


_CHANNELS = (3, 16, 32, 64, 128)   # stage s: Cin=_CHANNELS[s] -> Cout=_CHANNELS[s+1]
_NUM_STAGES = 4


def _lead_pad(W):
    """Leading zero rows of the padded flat buffer (>= W+1, sublane aligned)."""
    return ((W + 1 + 7) // 8) * 8


def _pad_rows(H, W):
    """Total rows of the padded flat buffer for an (H, W) feature map."""
    return _lead_pad(W) + H * W + W + 1


def _padded_bytes(shape, itemsize=4):
    """Rough (8,128)-tile padded VMEM footprint of a buffer/block."""
    lead = 1
    for d in shape[:-2]:
        lead *= d
    r = -(-shape[-2] // 8) * 8
    c = -(-shape[-1] // 128) * 128
    return lead * r * c * itemsize


def _pick_batch_block(N):
    """Images per grid step; keep >=2 grid steps when N>=2 (feeds both v7x TCs)."""
    for blk in (8, 4, 2):
        if N % blk == 0 and N // blk >= 2:
            return blk
    return 1


def _conv_pool(P_ref, w_ref, b_ref, c_ref, masks, *, H, W, Cout):
    """One stage for one image: 3x3 same-pad conv (stride 1) + 2x2/2 max-pool.

    P_ref : (_pad_rows(H,W), Cin) zero-bordered flat input; pixel (h, w) lives
            at row _lead_pad(W) + h*W + w (row-major, channels last).
    w_ref : (9, Cin, Cout) conv taps, tap = dy*3 + dx;  b_ref: (1, Cout) bias.
    c_ref : (H*W, Cout) conv-output scratch (kept only so the horizontal pool
            can use stride-2 ref reads).
    masks : (not_left, not_right) bool column masks of shape (H*W, 1).
    Returns the pooled output as an (H//2 * W//2, Cout) register value.
    """
    HW = H * W
    Hh, Wh = H // 2, W // 2
    lp = _lead_pad(W)
    not_left, not_right = masks

    # ---- 3x3 conv: 9 whole-image (HW, Cin) @ (Cin, Cout) MXU dots ----------
    # Accumulate in registers; the dx=0 / dx=2 taps wrap into the neighbouring
    # image row in the flat layout, so those slab rows are masked to zero.
    acc = None
    for tap in range(9):
        dy, dx = divmod(tap, 3)
        slab = P_ref[pl.ds(lp - W - 1 + dy * W + dx, HW), :]          # (HW, Cin)
        if dx == 0:
            slab = jnp.where(not_left, slab, 0.0)
        elif dx == 2:
            slab = jnp.where(not_right, slab, 0.0)
        d = jnp.dot(slab, w_ref[tap], preferred_element_type=jnp.float32)
        acc = d if acc is None else acc + d
    c_ref[...] = acc + b_ref[...]                 # bias once, single full store

    # ---- 2x2 max-pool, stride 2 ---------------------------------------------
    # Horizontal: even/odd w are even/odd flat rows (W even) -> 2 strided reads.
    left = c_ref[pl.ds(0, HW // 2, stride=2), :]
    right = c_ref[pl.ds(1, HW // 2, stride=2), :]
    hmax = jnp.maximum(left, right)               # (H*Wh, Cout), idx = h*Wh + wh
    # Vertical: vectorized pairwise max over adjacent h rows.
    r = hmax.reshape(Hh, 2, Wh, Cout)
    pooled = jnp.maximum(r[:, 0], r[:, 1])        # (Hh, Wh, Cout)
    return pooled.reshape(Hh * Wh, Cout)          # flat-spatial, channels last


def _encoder_kernel(x_ref, w1, b1, w2, b2, w3, b3, w4, b4,
                    o1, o2, o3, o4,
                    p1, c1, p2, c2, p3, c3, p4, c4,
                    *, H, W, B_blk):
    pbufs = (p1, p2, p3, p4)
    cbufs = (c1, c2, c3, c4)
    wrefs = (w1, w2, w3, w4)
    brefs = (b1, b2, b3, b4)
    orefs = (o1, o2, o3, o4)

    # Zero ONLY the border rows read by the edge taps; interiors are fully
    # overwritten for every image.  Done every grid step — never gate this on
    # program_id(0)==0 (under core-parallel each TC has its own scratch).
    for s in range(_NUM_STAGES):
        sh, sw = H >> s, W >> s
        cin = _CHANNELS[s]
        lp = _lead_pad(sw)
        zer = jnp.zeros((sw + 1, cin), jnp.float32)
        pbufs[s][pl.ds(lp - sw - 1, sw + 1), :] = zer           # leading border
        pbufs[s][pl.ds(lp + sh * sw, sw + 1), :] = zer          # trailing border

    # Column masks, hoisted out of the per-image loop (no re-broadcast per b).
    masks = []
    for s in range(_NUM_STAGES):
        sh, sw = H >> s, W >> s
        col = lax.broadcasted_iota(jnp.int32, (sh * sw, 1), 0) & (sw - 1)
        masks.append((col != 0, col != (sw - 1)))

    for b in range(B_blk):
        # Stage-1 input interior: pixel (h, w) -> row lead_pad(W) + h*W + w.
        p1[pl.ds(_lead_pad(W), H * W), :] = x_ref[b]
        for s in range(_NUM_STAGES):
            sh, sw = H >> s, W >> s
            pooled = _conv_pool(pbufs[s], wrefs[s], brefs[s], cbufs[s], masks[s],
                                H=sh, W=sw, Cout=_CHANNELS[s + 1])
            orefs[s][b] = pooled                                # one full store
            if s + 1 < _NUM_STAGES:
                lpn = _lead_pad(sw // 2)
                pbufs[s + 1][pl.ds(lpn, (sh // 2) * (sw // 2)), :] = pooled


def _build_encoder_call(N, H, W, B_blk):
    assert H % (2 ** _NUM_STAGES) == 0 and W % (2 ** _NUM_STAGES) == 0
    assert (W & (W - 1)) == 0, "W must be a power of two (mask uses & (W-1))"
    assert N % B_blk == 0

    in_specs = [pl.BlockSpec((B_blk, H * W, _CHANNELS[0]), lambda n: (n, 0, 0))]
    for s in range(_NUM_STAGES):
        cin, cout = _CHANNELS[s], _CHANNELS[s + 1]
        in_specs.append(pl.BlockSpec((9, cin, cout), lambda n: (0, 0, 0)))
        in_specs.append(pl.BlockSpec((1, cout), lambda n: (0, 0)))

    out_specs, out_shapes, scratch = [], [], []
    vmem_bytes = 2 * _padded_bytes((B_blk, H * W, _CHANNELS[0]))     # x (2-buf)
    for s in range(_NUM_STAGES):
        cin, cout = _CHANNELS[s], _CHANNELS[s + 1]
        sh, sw = H >> s, W >> s
        hw_out = (sh // 2) * (sw // 2)
        out_specs.append(pl.BlockSpec((B_blk, hw_out, cout), lambda n: (n, 0, 0)))
        out_shapes.append(jax.ShapeDtypeStruct((N, hw_out, cout), jnp.float32))
        scratch += [
            pltpu.VMEM((_pad_rows(sh, sw), cin), jnp.float32),   # padded input
            pltpu.VMEM((sh * sw, cout), jnp.float32),            # conv output
        ]
        vmem_bytes += 2 * _padded_bytes((9, cin, cout))          # weights (2-buf)
        vmem_bytes += 2 * _padded_bytes((1, cout))               # bias
        vmem_bytes += 2 * _padded_bytes((B_blk, hw_out, cout))   # out block
        vmem_bytes += _padded_bytes((_pad_rows(sh, sw), cin))
        vmem_bytes += _padded_bytes((sh * sw, cout))

    # Whole-image-in-VMEM design: assert a conservative budget that fits every
    # generation (v7x has only 64 MiB physical VMEM per TC).
    assert vmem_bytes <= 24 * 1024 * 1024, (
        "image too large for whole-image-in-VMEM encoder; needs H-strip tiling")

    kernel = functools.partial(_encoder_kernel, H=H, W=W, B_blk=B_blk)
    return pl.pallas_call(
        kernel,
        out_shape=tuple(out_shapes),
        grid_spec=pltpu.PrefetchScalarGridSpec(
            num_scalar_prefetch=0,
            grid=(N // B_blk,),
            in_specs=in_specs,
            out_specs=out_specs,
            scratch_shapes=scratch),
        compiler_params=pltpu.CompilerParams(
            dimension_semantics=("parallel",),
            vmem_limit_bytes=32 * 1024 * 1024),
    )


# ----------------------------------------------------------------------------
# BaseEncoder: params + forward
# ----------------------------------------------------------------------------

def init_params(key):
    """Deterministic PyTorch-like (uniform +/- 1/sqrt(fan_in)) initialization."""
    params = []
    for i in range(_NUM_STAGES):
        cin, cout = _CHANNELS[i], _CHANNELS[i + 1]
        kw, kb = jax.random.split(jax.random.fold_in(key, i))
        bound = 1.0 / (cin * 9) ** 0.5
        w = jax.random.uniform(kw, (cout, cin, 3, 3), jnp.float32, -bound, bound)
        b = jax.random.uniform(kb, (cout,), jnp.float32, -bound, bound)
        params.append((w, b))
    return params


@jax.jit
def base_encoder_forward(x_nchw, params):
    """Matches BaseEncoder.forward: returns (x1, x2, x3, x4) in NCHW."""
    x = jnp.transpose(x_nchw, (0, 2, 3, 1)).astype(jnp.float32)   # NCHW -> NHWC
    N, H, W, Cin = x.shape
    assert Cin == _CHANNELS[0]
    B_blk = _pick_batch_block(N)

    args = [x.reshape(N, H * W, Cin)]
    for (w, b) in params:
        cout, cin = w.shape[0], w.shape[1]
        args.append(jnp.transpose(w, (2, 3, 1, 0))                # (tap, Cin, Cout)
                    .reshape(9, cin, cout).astype(jnp.float32))
        args.append(b.reshape(1, cout).astype(jnp.float32))

    outs = _build_encoder_call(N, H, W, B_blk)(*args)

    feats = []
    for s, o in enumerate(outs):                                  # flat -> NCHW
        sh, sw, cout = H >> (s + 1), W >> (s + 1), _CHANNELS[s + 1]
        feats.append(jnp.transpose(o.reshape(N, sh, sw, cout), (0, 3, 1, 2)))
    return tuple(feats)


def _ref_forward(x_nchw, params):
    """Pure-JAX reference (lax.conv + reduce_window) for correctness checking."""
    x = jnp.transpose(x_nchw, (0, 2, 3, 1)).astype(jnp.float32)
    feats = []
    for (w, b) in params:
        y = jax.lax.conv_general_dilated(
            x, jnp.transpose(w, (2, 3, 1, 0)),
            window_strides=(1, 1), padding=((1, 1), (1, 1)),
            dimension_numbers=("NHWC", "HWIO", "NHWC"))
        y = y + b[None, None, None, :]
        y = jax.lax.reduce_window(y, -jnp.inf, jax.lax.max,
                                  (1, 2, 2, 1), (1, 2, 2, 1), "VALID")
        x = y
        feats.append(jnp.transpose(y, (0, 3, 1, 2)))
    return tuple(feats)


if __name__ == "__main__":
    key = jax.random.PRNGKey(0)
    params = init_params(jax.random.fold_in(key, 123))
    x = jax.random.normal(jax.random.fold_in(key, 7), (2, 3, 16, 16), jnp.float32)

    outs = jax.block_until_ready(base_encoder_forward(x, params))

    expected_shapes = [(2, 16, 8, 8), (2, 32, 4, 4), (2, 64, 2, 2), (2, 128, 1, 1)]
    refs = _ref_forward(x, params)
    for o, r, s in zip(outs, refs, expected_shapes):
        assert o.shape == s, (o.shape, s)
        assert jnp.allclose(o, r, atol=1e-3, rtol=1e-3), \
            float(jnp.max(jnp.abs(o - r)))

    print("KERNEL_OK")
</pallas_src>

<mosaic_0001>
module attributes {stable_mosaic.version = 11 : i64} {
  func.func @_encoder_kernel(%arg0: i32, %arg1: memref<1x256x3xf32, #tpu.memory_space<vmem>>, %arg2: memref<9x3x16xf32, #tpu.memory_space<vmem>>, %arg3: memref<1x16xf32, #tpu.memory_space<vmem>>, %arg4: memref<9x16x32xf32, #tpu.memory_space<vmem>>, %arg5: memref<1x32xf32, #tpu.memory_space<vmem>>, %arg6: memref<9x32x64xf32, #tpu.memory_space<vmem>>, %arg7: memref<1x64xf32, #tpu.memory_space<vmem>>, %arg8: memref<9x64x128xf32, #tpu.memory_space<vmem>>, %arg9: memref<1x128xf32, #tpu.memory_space<vmem>>, %arg10: memref<1x64x16xf32, #tpu.memory_space<vmem>>, %arg11: memref<1x16x32xf32, #tpu.memory_space<vmem>>, %arg12: memref<1x4x64xf32, #tpu.memory_space<vmem>>, %arg13: memref<1x1x128xf32, #tpu.memory_space<vmem>>, %arg14: memref<297x3xf32, #tpu.memory_space<vmem>>, %arg15: memref<256x16xf32, #tpu.memory_space<vmem>>, %arg16: memref<89x16xf32, #tpu.memory_space<vmem>>, %arg17: memref<64x32xf32, #tpu.memory_space<vmem>>, %arg18: memref<29x32xf32, #tpu.memory_space<vmem>>, %arg19: memref<16x64xf32, #tpu.memory_space<vmem>>, %arg20: memref<15x64xf32, #tpu.memory_space<vmem>>, %arg21: memref<4x128xf32, #tpu.memory_space<vmem>>) attributes {dimension_semantics = [#tpu.dimension_semantics<parallel>], iteration_bounds = array<i64: 2>, scalar_prefetch = 0 : i64, scratch_operands = 8 : i64, tpu.core_type = #tpu.core_type<tc>, window_params = [{transform_indices = @transform_0, window_bounds = array<i64: 1, 256, 3>}, {pipeline_mode = #tpu.pipeline_mode<synchronous>, transform_indices = @transform_1, window_bounds = array<i64: 9, 3, 16>}, {pipeline_mode = #tpu.pipeline_mode<synchronous>, transform_indices = @transform_2, window_bounds = array<i64: 1, 16>}, {pipeline_mode = #tpu.pipeline_mode<synchronous>, transform_indices = @transform_3, window_bounds = array<i64: 9, 16, 32>}, {pipeline_mode = #tpu.pipeline_mode<synchronous>, transform_indices = @transform_4, window_bounds = array<i64: 1, 32>}, {pipeline_mode = #tpu.pipeline_mode<synchronous>, transform_indices = @transform_5, window_bounds = array<i64: 9, 32, 64>}, {pipeline_mode = #tpu.pipeline_mode<synchronous>, transform_indices = @transform_6, window_bounds = array<i64: 1, 64>}, {pipeline_mode = #tpu.pipeline_mode<synchronous>, transform_indices = @transform_7, window_bounds = array<i64: 9, 64, 128>}, {pipeline_mode = #tpu.pipeline_mode<synchronous>, transform_indices = @transform_8, window_bounds = array<i64: 1, 128>}, {transform_indices = @transform_9, window_bounds = array<i64: 1, 64, 16>}, {transform_indices = @transform_10, window_bounds = array<i64: 1, 16, 32>}, {transform_indices = @transform_11, window_bounds = array<i64: 1, 4, 64>}, {transform_indices = @transform_12, window_bounds = array<i64: 1, 1, 128>}]} {
    %cst = arith.constant 0.000000e+00 : f32
    %0 = vector.broadcast %cst : f32 to vector<17x3xf32>
    %c7 = arith.constant 7 : index
    %c0 = arith.constant 0 : index
    %1 = vector.load %arg14[%c7, %c0] : memref<297x3xf32, #tpu.memory_space<vmem>>, vector<17x3xf32>
    tpu.vector_store %arg14[%c7, %c0], %0 {strides = array<i32>} : memref<297x3xf32, #tpu.memory_space<vmem>>, vector<17x3xf32>,
    %c280 = arith.constant 280 : index
    %c0_0 = arith.constant 0 : index
    %2 = vector.load %arg14[%c280, %c0_0] : memref<297x3xf32, #tpu.memory_space<vmem>>, vector<17x3xf32>
    tpu.vector_store %arg14[%c280, %c0_0], %0 {strides = array<i32>} : memref<297x3xf32, #tpu.memory_space<vmem>>, vector<17x3xf32>,
    %cst_1 = arith.constant 0.000000e+00 : f32
    %3 = vector.broadcast %cst_1 : f32 to vector<9x16xf32>
    %c7_2 = arith.constant 7 : index
    %c0_3 = arith.constant 0 : index
    %4 = vector.load %arg16[%c7_2, %c0_3] : memref<89x16xf32, #tpu.memory_space<vmem>>, vector<9x16xf32>
    tpu.vector_store %arg16[%c7_2, %c0_3], %3 {strides = array<i32>} : memref<89x16xf32, #tpu.memory_space<vmem>>, vector<9x16xf32>,
    %c80 = arith.constant 80 : index
    %c0_4 = arith.constant 0 : index
    %5 = vector.load %arg16[%c80, %c0_4] : memref<89x16xf32, #tpu.memory_space<vmem>>, vector<9x16xf32>
    tpu.vector_store %arg16[%c80, %c0_4], %3 {strides = array<i32>} : memref<89x16xf32, #tpu.memory_space<vmem>>, vector<9x16xf32>,
    %cst_5 = arith.constant 0.000000e+00 : f32
    %6 = vector.broadcast %cst_5 : f32 to vector<5x32xf32>
    %c3 = arith.constant 3 : index
    %c0_6 = arith.constant 0 : index
    %7 = vector.load %arg18[%c3, %c0_6] : memref<29x32xf32, #tpu.memory_space<vmem>>, vector<5x32xf32>
    tpu.vector_store %arg18[%c3, %c0_6], %6 {strides = array<i32>} : memref<29x32xf32, #tpu.memory_space<vmem>>, vector<5x32xf32>,
    %c24 = arith.constant 24 : index
    %c0_7 = arith.constant 0 : index
    %8 = vector.load %arg18[%c24, %c0_7] : memref<29x32xf32, #tpu.memory_space<vmem>>, vector<5x32xf32>
    tpu.vector_store %arg18[%c24, %c0_7], %6 {strides = array<i32>} : memref<29x32xf32, #tpu.memory_space<vmem>>, vector<5x32xf32>,
    %cst_8 = arith.constant 0.000000e+00 : f32
    %9 = vector.broadcast %cst_8 : f32 to vector<3x64xf32>
    %c5 = arith.constant 5 : index
    %c0_9 = arith.constant 0 : index
    %10 = vector.load %arg20[%c5, %c0_9] : memref<15x64xf32, #tpu.memory_space<vmem>>, vector<3x64xf32>
    tpu.vector_store %arg20[%c5, %c0_9], %9 {strides = array<i32>} : memref<15x64xf32, #tpu.memory_space<vmem>>, vector<3x64xf32>,
    %c12 = arith.constant 12 : index
    %c0_10 = arith.constant 0 : index
    %11 = vector.load %arg20[%c12, %c0_10] : memref<15x64xf32, #tpu.memory_space<vmem>>, vector<3x64xf32>
    tpu.vector_store %arg20[%c12, %c0_10], %9 {strides = array<i32>} : memref<15x64xf32, #tpu.memory_space<vmem>>, vector<3x64xf32>,
    %12 = tpu.iota {dimensions = array<i32: 0>} : vector<256x1xi32>
    %c15_i32 = arith.constant 15 : i32
    %13 = vector.broadcast %c15_i32 : i32 to vector<256x1xi32>
    %14 = arith.andi %12, %13 : vector<256x1xi32>
    %c0_i32 = arith.constant 0 : i32
    %15 = vector.broadcast %c0_i32 : i32 to vector<256x1xi32>
    %16 = arith.cmpi ne, %14, %15 : vector<256x1xi32>
    %c15_i32_11 = arith.constant 15 : i32
    %17 = vector.broadcast %c15_i32_11 : i32 to vector<256x1xi32>
    %18 = arith.cmpi ne, %14, %17 : vector<256x1xi32>
    %19 = tpu.iota {dimensions = array<i32: 0>} : vector<64x1xi32>
    %c7_i32 = arith.constant 7 : i32
    %20 = vector.broadcast %c7_i32 : i32 to vector<64x1xi32>
    %21 = arith.andi %19, %20 : vector<64x1xi32>
    %c0_i32_12 = arith.constant 0 : i32
    %22 = vector.broadcast %c0_i32_12 : i32 to vector<64x1xi32>
    %23 = arith.cmpi ne, %21, %22 : vector<64x1xi32>
    %c7_i32_13 = arith.constant 7 : i32
    %24 = vector.broadcast %c7_i32_13 : i32 to vector<64x1xi32>
    %25 = arith.cmpi ne, %21, %24 : vector<64x1xi32>
    %26 = tpu.iota {dimensions = array<i32: 0>} : vector<16x1xi32>
    %c3_i32 = arith.constant 3 : i32
    %27 = vector.broadcast %c3_i32 : i32 to vector<16x1xi32>
    %28 = arith.andi %26, %27 : vector<16x1xi32>
    %c0_i32_14 = arith.constant 0 : i32
    %29 = vector.broadcast %c0_i32_14 : i32 to vector<16x1xi32>
    %30 = arith.cmpi ne, %28, %29 : vector<16x1xi32>
    %c3_i32_15 = arith.constant 3 : i32
    %31 = vector.broadcast %c3_i32_15 : i32 to vector<16x1xi32>
    %32 = arith.cmpi ne, %28, %31 : vector<16x1xi32>
    %33 = tpu.iota {dimensions = array<i32: 0>} : vector<4x1xi32>
    %c1_i32 = arith.constant 1 : i32
    %34 = vector.broadcast %c1_i32 : i32 to vector<4x1xi32>
    %35 = arith.andi %33, %34 : vector<4x1xi32>
    %c0_i32_16 = arith.constant 0 : i32
    %36 = vector.broadcast %c0_i32_16 : i32 to vector<4x1xi32>
    %37 = arith.cmpi ne, %35, %36 : vector<4x1xi32>
    %c1_i32_17 = arith.constant 1 : i32
    %38 = vector.broadcast %c1_i32_17 : i32 to vector<4x1xi32>
    %39 = arith.cmpi ne, %35, %38 : vector<4x1xi32>
    %c0_18 = arith.constant 0 : index
    %c0_19 = arith.constant 0 : index
    %c0_20 = arith.constant 0 : index
    %40 = vector.load %arg1[%c0_18, %c0_19, %c0_20] : memref<1x256x3xf32, #tpu.memory_space<vmem>>, vector<1x256x3xf32>
    %41 = vector.shape_cast %40 : vector<1x256x3xf32> to vector<256x3xf32>
    %c24_21 = arith.constant 24 : index
    %c0_22 = arith.constant 0 : index
    %42 = vector.load %arg14[%c24_21, %c0_22] : memref<297x3xf32, #tpu.memory_space<vmem>>, vector<256x3xf32>
    tpu.vector_store %arg14[%c24_21, %c0_22], %41 {strides = array<i32>} : memref<297x3xf32, #tpu.memory_space<vmem>>, vector<256x3xf32>,
    %c7_23 = arith.constant 7 : index
    %c0_24 = arith.constant 0 : index
    %43 = vector.load %arg14[%c7_23, %c0_24] : memref<297x3xf32, #tpu.memory_space<vmem>>, vector<256x3xf32>
    %cst_25 = arith.constant 0.000000e+00 : f32
    %44 = vector.shape_cast %16 : vector<256x1xi1> to vector<256x1xi1>
    %45 = vector.broadcast %44 : vector<256x1xi1> to vector<256x3xi1>
    %46 = vector.broadcast %cst_25 : f32 to vector<256x3xf32>
    %47 = arith.select %45, %43, %46 : vector<256x3xi1>, vector<256x3xf32>
    %c0_26 = arith.constant 0 : index
    %c0_27 = arith.constant 0 : index
    %c0_28 = arith.constant 0 : index
    %48 = vector.load %arg2[%c0_26, %c0_27, %c0_28] : memref<9x3x16xf32, #tpu.memory_space<vmem>>, vector<1x3x16xf32>
    %49 = vector.shape_cast %48 : vector<1x3x16xf32> to vector<3x16xf32>
    %cst_29 = arith.constant dense<0.000000e+00> : vector<256x16xf32>
    %50 = tpu.matmul %47, %49, %cst_29 {dimension_numbers = #tpu.dot_dimension_numbers<[1], [0], [0], [1], [0, 0, 1, 1], [], []>} : vector<256x3xf32>, vector<3x16xf32>, vector<256x16xf32> -> vector<256x16xf32>
    %c8 = arith.constant 8 : index
    %c0_30 = arith.constant 0 : index
    %51 = vector.load %arg14[%c8, %c0_30] : memref<297x3xf32, #tpu.memory_space<vmem>>, vector<256x3xf32>
    %c1 = arith.constant 1 : index
    %c0_31 = arith.constant 0 : index
    %c0_32 = arith.constant 0 : index
    %52 = vector.load %arg2[%c1, %c0_31, %c0_32] : memref<9x3x16xf32, #tpu.memory_space<vmem>>, vector<1x3x16xf32>
    %53 = vector.shape_cast %52 : vector<1x3x16xf32> to vector<3x16xf32>
    %cst_33 = arith.constant dense<0.000000e+00> : vector<256x16xf32>
    %54 = tpu.matmul %51, %53, %cst_33 {dimension_numbers = #tpu.dot_dimension_numbers<[1], [0], [0], [1], [0, 0, 1, 1], [], []>} : vector<256x3xf32>, vector<3x16xf32>, vector<256x16xf32> -> vector<256x16xf32>
    %55 = arith.addf %50, %54 : vector<256x16xf32>
    %c9 = arith.constant 9 : index
    %c0_34 = arith.constant 0 : index
    %56 = vector.load %arg14[%c9, %c0_34] : memref<297x3xf32, #tpu.memory_space<vmem>>, vector<256x3xf32>
    %cst_35 = arith.constant 0.000000e+00 : f32
    %57 = vector.shape_cast %18 : vector<256x1xi1> to vector<256x1xi1>
    %58 = vector.broadcast %57 : vector<256x1xi1> to vector<256x3xi1>
    %59 = vector.broadcast %cst_35 : f32 to vector<256x3xf32>
    %60 = arith.select %58, %56, %59 : vector<256x3xi1>, vector<256x3xf32>
    %c2 = arith.constant 2 : index
    %c0_36 = arith.constant 0 : index
    %c0_37 = arith.constant 0 : index
    %61 = vector.load %arg2[%c2, %c0_36, %c0_37] : memref<9x3x16xf32, #tpu.memory_space<vmem>>, vector<1x3x16xf32>
    %62 = vector.shape_cast %61 : vector<1x3x16xf32> to vector<3x16xf32>
    %cst_38 = arith.constant dense<0.000000e+00> : vector<256x16xf32>
    %63 = tpu.matmul %60, %62, %cst_38 {dimension_numbers = #tpu.dot_dimension_numbers<[1], [0], [0], [1], [0, 0, 1, 1], [], []>} : vector<256x3xf32>, vector<3x16xf32>, vector<256x16xf32> -> vector<256x16xf32>
    %64 = arith.addf %55, %63 : vector<256x16xf32>
    %c23 = arith.constant 23 : index
    %c0_39 = arith.constant 0 : index
    %65 = vector.load %arg14[%c23, %c0_39] : memref<297x3xf32, #tpu.memory_space<vmem>>, vector<256x3xf32>
    %cst_40 = arith.constant 0.000000e+00 : f32
    %66 = vector.shape_cast %16 : vector<256x1xi1> to vector<256x1xi1>
    %67 = vector.broadcast %66 : vector<256x1xi1> to vector<256x3xi1>
    %68 = vector.broadcast %cst_40 : f32 to vector<256x3xf32>
    %69 = arith.select %67, %65, %68 : vector<256x3xi1>, vector<256x3xf32>
    %c3_41 = arith.constant 3 : index
    %c0_42 = arith.constant 0 : index
    %c0_43 = arith.constant 0 : index
    %70 = vector.load %arg2[%c3_41, %c0_42, %c0_43] : memref<9x3x16xf32, #tpu.memory_space<vmem>>, vector<1x3x16xf32>
    %71 = vector.shape_cast %70 : vector<1x3x16xf32> to vector<3x16xf32>
    %cst_44 = arith.constant dense<0.000000e+00> : vector<256x16xf32>
    %72 = tpu.matmul %69, %71, %cst_44 {dimension_numbers = #tpu.dot_dimension_numbers<[1], [0], [0], [1], [0, 0, 1, 1], [], []>} : vector<256x3xf32>, vector<3x16xf32>, vector<256x16xf32> -> vector<256x16xf32>
    %73 = arith.addf %64, %72 : vector<256x16xf32>
    %c24_45 = arith.constant 24 : index
    %c0_46 = arith.constant 0 : index
    %74 = vector.load %arg14[%c24_45, %c0_46] : memref<297x3xf32, #tpu.memory_space<vmem>>, vector<256x3xf32>
    %c4 = arith.constant 4 : index
    %c0_47 = arith.constant 0 : index
    %c0_48 = arith.constant 0 : index
    %75 = vector.load %arg2[%c4, %c0_47, %c0_48] : memref<9x3x16xf32, #tpu.memory_space<vmem>>, vector<1x3x16xf32>
    %76 = vector.shape_cast %75 : vector<1x3x16xf32> to vector<3x16xf32>
    %cst_49 = arith.constant dense<0.000000e+00> : vector<256x16xf32>
    %77 = tpu.matmul %74, %76, %cst_49 {dimension_numbers = #tpu.dot_dimension_numbers<[1], [0], [0], [1], [0, 0, 1, 1], [], []>} : vector<256x3xf32>, vector<3x16xf32>, vector<256x16xf32> -> vector<256x16xf32>
    %78 = arith.addf %73, %77 : vector<256x16xf32>
    %c25 = arith.constant 25 : index
    %c0_50 = arith.constant 0 : index
    %79 = vector.load %arg14[%c25, %c0_50] : memref<297x3xf32, #tpu.memory_space<vmem>>, vector<256x3xf32>
    %cst_51 = arith.constant 0.000000e+00 : f32
    %80 = vector.shape_cast %18 : vector<256x1xi1> to vector<256x1xi1>
    %81 = vector.broadcast %80 : vector<256x1xi1> to vector<256x3xi1>
    %82 = vector.broadcast %cst_51 : f32 to vector<256x3xf32>
    %83 = arith.select %81, %79, %82 : vector<256x3xi1>, vector<256x3xf32>
    %c5_52 = arith.constant 5 : index
    %c0_53 = arith.constant 0 : index
    %c0_54 = arith.constant 0 : index
    %84 = vector.load %arg2[%c5_52, %c0_53, %c0_54] : memref<9x3x16xf32, #tpu.memory_space<vmem>>, vector<1x3x16xf32>
    %85 = vector.shape_cast %84 : vector<1x3x16xf32> to vector<3x16xf32>
    %cst_55 = arith.constant dense<0.000000e+00> : vector<256x16xf32>
    %86 = tpu.matmul %83, %85, %cst_55 {dimension_numbers = #tpu.dot_dimension_numbers<[1], [0], [0], [1], [0, 0, 1, 1], [], []>} : vector<256x3xf32>, vector<3x16xf32>, vector<256x16xf32> -> vector<256x16xf32>
    %87 = arith.addf %78, %86 : vector<256x16xf32>
    %c39 = arith.constant 39 : index
    %c0_56 = arith.constant 0 : index
    %88 = vector.load %arg14[%c39, %c0_56] : memref<297x3xf32, #tpu.memory_space<vmem>>, vector<256x3xf32>
    %cst_57 = arith.constant 0.000000e+00 : f32
    %89 = vector.shape_cast %16 : vector<256x1xi1> to vector<256x1xi1>
    %90 = vector.broadcast %89 : vector<256x1xi1> to vector<256x3xi1>
    %91 = vector.broadcast %cst_57 : f32 to vector<256x3xf32>
    %92 = arith.select %90, %88, %91 : vector<256x3xi1>, vector<256x3xf32>
    %c6 = arith.constant 6 : index
    %c0_58 = arith.constant 0 : index
    %c0_59 = arith.constant 0 : index
    %93 = vector.load %arg2[%c6, %c0_58, %c0_59] : memref<9x3x16xf32, #tpu.memory_space<vmem>>, vector<1x3x16xf32>
    %94 = vector.shape_cast %93 : vector<1x3x16xf32> to vector<3x16xf32>
    %cst_60 = arith.constant dense<0.000000e+00> : vector<256x16xf32>
    %95 = tpu.matmul %92, %94, %cst_60 {dimension_numbers = #tpu.dot_dimension_numbers<[1], [0], [0], [1], [0, 0, 1, 1], [], []>} : vector<256x3xf32>, vector<3x16xf32>, vector<256x16xf32> -> vector<256x16xf32>
    %96 = arith.addf %87, %95 : vector<256x16xf32>
    %c40 = arith.constant 40 : index
    %c0_61 = arith.constant 0 : index
    %97 = vector.load %arg14[%c40, %c0_61] : memref<297x3xf32, #tpu.memory_space<vmem>>, vector<256x3xf32>
    %c7_62 = arith.constant 7 : index
    %c0_63 = arith.constant 0 : index
    %c0_64 = arith.constant 0 : index
    %98 = vector.load %arg2[%c7_62, %c0_63, %c0_64] : memref<9x3x16xf32, #tpu.memory_space<vmem>>, vector<1x3x16xf32>
    %99 = vector.shape_cast %98 : vector<1x3x16xf32> to vector<3x16xf32>
    %cst_65 = arith.constant dense<0.000000e+00> : vector<256x16xf32>
    %100 = tpu.matmul %97, %99, %cst_65 {dimension_numbers = #tpu.dot_dimension_numbers<[1], [0], [0], [1], [0, 0, 1, 1], [], []>} : vector<256x3xf32>, vector<3x16xf32>, vector<256x16xf32> -> vector<256x16xf32>
    %101 = arith.addf %96, %100 : vector<256x16xf32>
    %c41 = arith.constant 41 : index
    %c0_66 = arith.constant 0 : index
    %102 = vector.load %arg14[%c41, %c0_66] : memref<297x3xf32, #tpu.memory_space<vmem>>, vector<256x3xf32>
    %cst_67 = arith.constant 0.000000e+00 : f32
    %103 = vector.shape_cast %18 : vector<256x1xi1> to vector<256x1xi1>
    %104 = vector.broadcast %103 : vector<256x1xi1> to vector<256x3xi1>
    %105 = vector.broadcast %cst_67 : f32 to vector<256x3xf32>
    %106 = arith.select %104, %102, %105 : vector<256x3xi1>, vector<256x3xf32>
    %c8_68 = arith.constant 8 : index
    %c0_69 = arith.constant 0 : index
    %c0_70 = arith.constant 0 : index
    %107 = vector.load %arg2[%c8_68, %c0_69, %c0_70] : memref<9x3x16xf32, #tpu.memory_space<vmem>>, vector<1x3x16xf32>
    %108 = vector.shape_cast %107 : vector<1x3x16xf32> to vector<3x16xf32>
    %cst_71 = arith.constant dense<0.000000e+00> : vector<256x16xf32>
    %109 = tpu.matmul %106, %108, %cst_71 {dimension_numbers = #tpu.dot_dimension_numbers<[1], [0], [0], [1], [0, 0, 1, 1], [], []>} : vector<256x3xf32>, vector<3x16xf32>, vector<256x16xf32> -> vector<256x16xf32>
    %110 = arith.addf %101, %109 : vector<256x16xf32>
    %c0_72 = arith.constant 0 : index
    %c0_73 = arith.constant 0 : index
    %111 = vector.load %arg3[%c0_72, %c0_73] : memref<1x16xf32, #tpu.memory_space<vmem>>, vector<1x16xf32>
    %112 = vector.broadcast %111 : vector<1x16xf32> to vector<256x16xf32>
    %113 = arith.addf %110, %112 : vector<256x16xf32>
    %c0_74 = arith.constant 0 : index
    %c0_75 = arith.constant 0 : index
    %114 = vector.load %arg15[%c0_74, %c0_75] : memref<256x16xf32, #tpu.memory_space<vmem>>, vector<256x16xf32>
    tpu.vector_store %arg15[%c0_74, %c0_75], %113 {strides = array<i32>} : memref<256x16xf32, #tpu.memory_space<vmem>>, vector<256x16xf32>,
    %c0_76 = arith.constant 0 : index
    %c0_77 = arith.constant 0 : index
    %115 = tpu.strided_load %arg15[%c0_76, %c0_77] {strides = array<i32: 2, 1>} : memref<256x16xf32, #tpu.memory_space<vmem>>, vector<128x16xf32>
    %c1_78 = arith.constant 1 : index
    %c0_79 = arith.constant 0 : index
    %116 = tpu.strided_load %arg15[%c1_78, %c0_79] {strides = array<i32: 2, 1>} : memref<256x16xf32, #tpu.memory_space<vmem>>, vector<128x16xf32>
    %117 = arith.maximumf %115, %116 : vector<128x16xf32>
    %118 = vector.shape_cast %117 : vector<128x16xf32> to vector<8x2x8x16xf32>
    %119 = vector.extract_strided_slice %118 {offsets = [0, 0, 0, 0], sizes = [8, 1, 8, 16], strides = [1, 1, 1, 1]} : vector<8x2x8x16xf32> to vector<8x1x8x16xf32>
    %120 = vector.shape_cast %119 : vector<8x1x8x16xf32> to vector<8x8x16xf32>
    %121 = vector.extract_strided_slice %118 {offsets = [0, 1, 0, 0], sizes = [8, 1, 8, 16], strides = [1, 1, 1, 1]} : vector<8x2x8x16xf32> to vector<8x1x8x16xf32>
    %122 = vector.shape_cast %121 : vector<8x1x8x16xf32> to vector<8x8x16xf32>
    %123 = arith.maximumf %120, %122 : vector<8x8x16xf32>
    %124 = vector.shape_cast %123 : vector<8x8x16xf32> to vector<64x16xf32>
    %c0_80 = arith.constant 0 : index
    %c0_81 = arith.constant 0 : index
    %c0_82 = arith.constant 0 : index
    %125 = vector.load %arg10[%c0_80, %c0_81, %c0_82] : memref<1x64x16xf32, #tpu.memory_space<vmem>>, vector<1x64x16xf32>
    %126 = vector.shape_cast %125 : vector<1x64x16xf32> to vector<64x16xf32>
    %127 = vector.shape_cast %124 : vector<64x16xf32> to vector<1x64x16xf32>
    tpu.vector_store %arg10[%c0_80, %c0_81, %c0_82], %127 {strides = array<i32>} : memref<1x64x16xf32, #tpu.memory_space<vmem>>, vector<1x64x16xf32>,
    %c16 = arith.constant 16 : index
    %c0_83 = arith.constant 0 : index
    %128 = vector.load %arg16[%c16, %c0_83] : memref<89x16xf32, #tpu.memory_space<vmem>>, vector<64x16xf32>
    tpu.vector_store %arg16[%c16, %c0_83], %124 {strides = array<i32>} : memref<89x16xf32, #tpu.memory_space<vmem>>, vector<64x16xf32>,
    %c7_84 = arith.constant 7 : index
    %c0_85 = arith.constant 0 : index
    %129 = vector.load %arg16[%c7_84, %c0_85] : memref<89x16xf32, #tpu.memory_space<vmem>>, vector<64x16xf32>
    %cst_86 = arith.constant 0.000000e+00 : f32
    %130 = vector.shape_cast %23 : vector<64x1xi1> to vector<64x1xi1>
    %131 = vector.broadcast %130 : vector<64x1xi1> to vector<64x16xi1>
    %132 = vector.broadcast %cst_86 : f32 to vector<64x16xf32>
    %133 = arith.select %131, %129, %132 : vector<64x16xi1>, vector<64x16xf32>
    %c0_87 = arith.constant 0 : index
    %c0_88 = arith.constant 0 : index
    %c0_89 = arith.constant 0 : index
    %134 = vector.load %arg4[%c0_87, %c0_88, %c0_89] : memref<9x16x32xf32, #tpu.memory_space<vmem>>, vector<1x16x32xf32>
    %135 = vector.shape_cast %134 : vector<1x16x32xf32> to vector<16x32xf32>
    %cst_90 = arith.constant dense<0.000000e+00> : vector<64x32xf32>
    %136 = tpu.matmul %133, %135, %cst_90 {dimension_numbers = #tpu.dot_dimension_numbers<[1], [0], [0], [1], [0, 0, 1, 1], [], []>} : vector<64x16xf32>, vector<16x32xf32>, vector<64x32xf32> -> vector<64x32xf32>
    %c8_91 = arith.constant 8 : index
    %c0_92 = arith.constant 0 : index
    %137 = vector.load %arg16[%c8_91, %c0_92] : memref<89x16xf32, #tpu.memory_space<vmem>>, vector<64x16xf32>
    %c1_93 = arith.constant 1 : index
    %c0_94 = arith.constant 0 : index
    %c0_95 = arith.constant 0 : index
    %138 = vector.load %arg4[%c1_93, %c0_94, %c0_95] : memref<9x16x32xf32, #tpu.memory_space<vmem>>, vector<1x16x32xf32>
    %139 = vector.shape_cast %138 : vector<1x16x32xf32> to vector<16x32xf32>
    %cst_96 = arith.constant dense<0.000000e+00> : vector<64x32xf32>
    %140 = tpu.matmul %137, %139, %cst_96 {dimension_numbers = #tpu.dot_dimension_numbers<[1], [0], [0], [1], [0, 0, 1, 1], [], []>} : vector<64x16xf32>, vector<16x32xf32>, vector<64x32xf32> -> vector<64x32xf32>
    %141 = arith.addf %136, %140 : vector<64x32xf32>
    %c9_97 = arith.constant 9 : index
    %c0_98 = arith.constant 0 : index
    %142 = vector.load %arg16[%c9_97, %c0_98] : memref<89x16xf32, #tpu.memory_space<vmem>>, vector<64x16xf32>
    %cst_99 = arith.constant 0.000000e+00 : f32
    %143 = vector.shape_cast %25 : vector<64x1xi1> to vector<64x1xi1>
    %144 = vector.broadcast %143 : vector<64x1xi1> to vector<64x16xi1>
    %145 = vector.broadcast %cst_99 : f32 to vector<64x16xf32>
    %146 = arith.select %144, %142, %145 : vector<64x16xi1>, vector<64x16xf32>
    %c2_100 = arith.constant 2 : index
    %c0_101 = arith.constant 0 : index
    %c0_102 = arith.constant 0 : index
    %147 = vector.load %arg4[%c2_100, %c0_101, %c0_102] : memref<9x16x32xf32, #tpu.memory_space<vmem>>, vector<1x16x32xf32>
    %148 = vector.shape_cast %147 : vector<1x16x32xf32> to vector<16x32xf32>
    %cst_103 = arith.constant dense<0.000000e+00> : vector<64x32xf32>
    %149 = tpu.matmul %146, %148, %cst_103 {dimension_numbers = #tpu.dot_dimension_numbers<[1], [0], [0], [1], [0, 0, 1, 1], [], []>} : vector<64x16xf32>, vector<16x32xf32>, vector<64x32xf32> -> vector<64x32xf32>
    %150 = arith.addf %141, %149 : vector<64x32xf32>
    %c15 = arith.constant 15 : index
    %c0_104 = arith.constant 0 : index
    %151 = vector.load %arg16[%c15, %c0_104] : memref<89x16xf32, #tpu.memory_space<vmem>>, vector<64x16xf32>
    %cst_105 = arith.constant 0.000000e+00 : f32
    %152 = vector.shape_cast %23 : vector<64x1xi1> to vector<64x1xi1>
    %153 = vector.broadcast %152 : vector<64x1xi1> to vector<64x16xi1>
    %154 = vector.broadcast %cst_105 : f32 to vector<64x16xf32>
    %155 = arith.select %153, %151, %154 : vector<64x16xi1>, vector<64x16xf32>
    %c3_106 = arith.constant 3 : index
    %c0_107 = arith.constant 0 : index
    %c0_108 = arith.constant 0 : index
    %156 = vector.load %arg4[%c3_106, %c0_107, %c0_108] : memref<9x16x32xf32, #tpu.memory_space<vmem>>, vector<1x16x32xf32>
    %157 = vector.shape_cast %156 : vector<1x16x32xf32> to vector<16x32xf32>
    %cst_109 = arith.constant dense<0.000000e+00> : vector<64x32xf32>
    %158 = tpu.matmul %155, %157, %cst_109 {dimension_numbers = #tpu.dot_dimension_numbers<[1], [0], [0], [1], [0, 0, 1, 1], [], []>} : vector<64x16xf32>, vector<16x32xf32>, vector<64x32xf32> -> vector<64x32xf32>
    %159 = arith.addf %150, %158 : vector<64x32xf32>
    %c16_110 = arith.constant 16 : index
    %c0_111 = arith.constant 0 : index
    %160 = vector.load %arg16[%c16_110, %c0_111] : memref<89x16xf32, #tpu.memory_space<vmem>>, vector<64x16xf32>
    %c4_112 = arith.constant 4 : index
    %c0_113 = arith.constant 0 : index
    %c0_114 = arith.constant 0 : index
    %161 = vector.load %arg4[%c4_112, %c0_113, %c0_114] : memref<9x16x32xf32, #tpu.memory_space<vmem>>, vector<1x16x32xf32>
    %162 = vector.shape_cast %161 : vector<1x16x32xf32> to vector<16x32xf32>
    %cst_115 = arith.constant dense<0.000000e+00> : vector<64x32xf32>
    %163 = tpu.matmul %160, %162, %cst_115 {dimension_numbers = #tpu.dot_dimension_numbers<[1], [0], [0], [1], [0, 0, 1, 1], [], []>} : vector<64x16xf32>, vector<16x32xf32>, vector<64x32xf32> -> vector<64x32xf32>
    %164 = arith.addf %159, %163 : vector<64x32xf32>
    %c17 = arith.constant 17 : index
    %c0_116 = arith.constant 0 : index
    %165 = vector.load %arg16[%c17, %c0_116] : memref<89x16xf32, #tpu.memory_space<vmem>>, vector<64x16xf32>
    %cst_117 = arith.constant 0.000000e+00 : f32
    %166 = vector.shape_cast %25 : vector<64x1xi1> to vector<64x1xi1>
    %167 = vector.broadcast %166 : vector<64x1xi1> to vector<64x16xi1>
    %168 = vector.broadcast %cst_117 : f32 to vector<64x16xf32>
    %169 = arith.select %167, %165, %168 : vector<64x16xi1>, vector<64x16xf32>
    %c5_118 = arith.constant 5 : index
    %c0_119 = arith.constant 0 : index
    %c0_120 = arith.constant 0 : index
    %170 = vector.load %arg4[%c5_118, %c0_119, %c0_120] : memref<9x16x32xf32, #tpu.memory_space<vmem>>, vector<1x16x32xf32>
    %171 = vector.shape_cast %170 : vector<1x16x32xf32> to vector<16x32xf32>
    %cst_121 = arith.constant dense<0.000000e+00> : vector<64x32xf32>
    %172 = tpu.matmul %169, %171, %cst_121 {dimension_numbers = #tpu.dot_dimension_numbers<[1], [0], [0], [1], [0, 0, 1, 1], [], []>} : vector<64x16xf32>, vector<16x32xf32>, vector<64x32xf32> -> vector<64x32xf32>
    %173 = arith.addf %164, %172 : vector<64x32xf32>
    %c23_122 = arith.constant 23 : index
    %c0_123 = arith.constant 0 : index
    %174 = vector.load %arg16[%c23_122, %c0_123] : memref<89x16xf32, #tpu.memory_space<vmem>>, vector<64x16xf32>
    %cst_124 = arith.constant 0.000000e+00 : f32
    %175 = vector.shape_cast %23 : vector<64x1xi1> to vector<64x1xi1>
    %176 = vector.broadcast %175 : vector<64x1xi1> to vector<64x16xi1>
    %177 = vector.broadcast %cst_124 : f32 to vector<64x16xf32>
    %178 = arith.select %176, %174, %177 : vector<64x16xi1>, vector<64x16xf32>
    %c6_125 = arith.constant 6 : index
    %c0_126 = arith.constant 0 : index
    %c0_127 = arith.constant 0 : index
    %179 = vector.load %arg4[%c6_125, %c0_126, %c0_127] : memref<9x16x32xf32, #tpu.memory_space<vmem>>, vector<1x16x32xf32>
    %180 = vector.shape_cast %179 : vector<1x16x32xf32> to vector<16x32xf32>
    %cst_128 = arith.constant dense<0.000000e+00> : vector<64x32xf32>
    %181 = tpu.matmul %178, %180, %cst_128 {dimension_numbers = #tpu.dot_dimension_numbers<[1], [0], [0], [1], [0, 0, 1, 1], [], []>} : vector<64x16xf32>, vector<16x32xf32>, vector<64x32xf32> -> vector<64x32xf32>
    %182 = arith.addf %173, %181 : vector<64x32xf32>
    %c24_129 = arith.constant 24 : index
    %c0_130 = arith.constant 0 : index
    %183 = vector.load %arg16[%c24_129, %c0_130] : memref<89x16xf32, #tpu.memory_space<vmem>>, vector<64x16xf32>
    %c7_131 = arith.constant 7 : index
    %c0_132 = arith.constant 0 : index
    %c0_133 = arith.constant 0 : index
    %184 = vector.load %arg4[%c7_131, %c0_132, %c0_133] : memref<9x16x32xf32, #tpu.memory_space<vmem>>, vector<1x16x32xf32>
    %185 = vector.shape_cast %184 : vector<1x16x32xf32> to vector<16x32xf32>
    %cst_134 = arith.constant dense<0.000000e+00> : vector<64x32xf32>
    %186 = tpu.matmul %183, %185, %cst_134 {dimension_numbers = #tpu.dot_dimension_numbers<[1], [0], [0], [1], [0, 0, 1, 1], [], []>} : vector<64x16xf32>, vector<16x32xf32>, vector<64x32xf32> -> vector<64x32xf32>
    %187 = arith.addf %182, %186 : vector<64x32xf32>
    %c25_135 = arith.constant 25 : index
    %c0_136 = arith.constant 0 : index
    %188 = vector.load %arg16[%c25_135, %c0_136] : memref<89x16xf32, #tpu.memory_space<vmem>>, vector<64x16xf32>
    %cst_137 = arith.constant 0.000000e+00 : f32
    %189 = vector.shape_cast %25 : vector<64x1xi1> to vector<64x1xi1>
    %190 = vector.broadcast %189 : vector<64x1xi1> to vector<64x16xi1>
    %191 = vector.broadcast %cst_137 : f32 to vector<64x16xf32>
    %192 = arith.select %190, %188, %191 : vector<64x16xi1>, vector<64x16xf32>
    %c8_138 = arith.constant 8 : index
    %c0_139 = arith.constant 0 : index
    %c0_140 = arith.constant 0 : index
    %193 = vector.load %arg4[%c8_138, %c0_139, %c0_140] : memref<9x16x32xf32, #tpu.memory_space<vmem>>, vector<1x16x32xf32>
    %194 = vector.shape_cast %193 : vector<1x16x32xf32> to vector<16x32xf32>
    %cst_141 = arith.constant dense<0.000000e+00> : vector<64x32xf32>
    %195 = tpu.matmul %192, %194, %cst_141 {dimension_numbers = #tpu.dot_dimension_numbers<[1], [0], [0], [1], [0, 0, 1, 1], [], []>} : vector<64x16xf32>, vector<16x32xf32>, vector<64x32xf32> -> vector<64x32xf32>
    %196 = arith.addf %187, %195 : vector<64x32xf32>
    %c0_142 = arith.constant 0 : index
    %c0_143 = arith.constant 0 : index
    %197 = vector.load %arg5[%c0_142, %c0_143] : memref<1x32xf32, #tpu.memory_space<vmem>>, vector<1x32xf32>
    %198 = vector.broadcast %197 : vector<1x32xf32> to vector<64x32xf32>
    %199 = arith.addf %196, %198 : vector<64x32xf32>
    %c0_144 = arith.constant 0 : index
    %c0_145 = arith.constant 0 : index
    %200 = vector.load %arg17[%c0_144, %c0_145] : memref<64x32xf32, #tpu.memory_space<vmem>>, vector<64x32xf32>
    tpu.vector_store %arg17[%c0_144, %c0_145], %199 {strides = array<i32>} : memref<64x32xf32, #tpu.memory_space<vmem>>, vector<64x32xf32>,
    %c0_146 = arith.constant 0 : index
    %c0_147 = arith.constant 0 : index
    %201 = tpu.strided_load %arg17[%c0_146, %c0_147] {strides = array<i32: 2, 1>} : memref<64x32xf32, #tpu.memory_space<vmem>>, vector<32x32xf32>
    %c1_148 = arith.constant 1 : index
    %c0_149 = arith.constant 0 : index
    %202 = tpu.strided_load %arg17[%c1_148, %c0_149] {strides = array<i32: 2, 1>} : memref<64x32xf32, #tpu.memory_space<vmem>>, vector<32x32xf32>
    %203 = arith.maximumf %201, %202 : vector<32x32xf32>
    %204 = vector.shape_cast %203 : vector<32x32xf32> to vector<4x2x4x32xf32>
    %205 = vector.extract_strided_slice %204 {offsets = [0, 0, 0, 0], sizes = [4, 1, 4, 32], strides = [1, 1, 1, 1]} : vector<4x2x4x32xf32> to vector<4x1x4x32xf32>
    %206 = vector.shape_cast %205 : vector<4x1x4x32xf32> to vector<4x4x32xf32>
    %207 = vector.extract_strided_slice %204 {offsets = [0, 1, 0, 0], sizes = [4, 1, 4, 32], strides = [1, 1, 1, 1]} : vector<4x2x4x32xf32> to vector<4x1x4x32xf32>
    %208 = vector.shape_cast %207 : vector<4x1x4x32xf32> to vector<4x4x32xf32>
    %209 = arith.maximumf %206, %208 : vector<4x4x32xf32>
    %210 = vector.shape_cast %209 : vector<4x4x32xf32> to vector<16x32xf32>
    %c0_150 = arith.constant 0 : index
    %c0_151 = arith.constant 0 : index
    %c0_152 = arith.constant 0 : index
    %211 = vector.load %arg11[%c0_150, %c0_151, %c0_152] : memref<1x16x32xf32, #tpu.memory_space<vmem>>, vector<1x16x32xf32>
    %212 = vector.shape_cast %211 : vector<1x16x32xf32> to vector<16x32xf32>
    %213 = vector.shape_cast %210 : vector<16x32xf32> to vector<1x16x32xf32>
    tpu.vector_store %arg11[%c0_150, %c0_151, %c0_152], %213 {strides = array<i32>} : memref<1x16x32xf32, #tpu.memory_space<vmem>>, vector<1x16x32xf32>,
    %c8_153 = arith.constant 8 : index
    %c0_154 = arith.constant 0 : index
    %214 = vector.load %arg18[%c8_153, %c0_154] : memref<29x32xf32, #tpu.memory_space<vmem>>, vector<16x32xf32>
    tpu.vector_store %arg18[%c8_153, %c0_154], %210 {strides = array<i32>} : memref<29x32xf32, #tpu.memory_space<vmem>>, vector<16x32xf32>,
    %c3_155 = arith.constant 3 : index
    %c0_156 = arith.constant 0 : index
    %215 = vector.load %arg18[%c3_155, %c0_156] : memref<29x32xf32, #tpu.memory_space<vmem>>, vector<16x32xf32>
    %cst_157 = arith.constant 0.000000e+00 : f32
    %216 = vector.shape_cast %30 : vector<16x1xi1> to vector<16x1xi1>
    %217 = vector.broadcast %216 : vector<16x1xi1> to vector<16x32xi1>
    %218 = vector.broadcast %cst_157 : f32 to vector<16x32xf32>
    %219 = arith.select %217, %215, %218 : vector<16x32xi1>, vector<16x32xf32>
    %c0_158 = arith.constant 0 : index
    %c0_159 = arith.constant 0 : index
    %c0_160 = arith.constant 0 : index
    %220 = vector.load %arg6[%c0_158, %c0_159, %c0_160] : memref<9x32x64xf32, #tpu.memory_space<vmem>>, vector<1x32x64xf32>
    %221 = vector.shape_cast %220 : vector<1x32x64xf32> to vector<32x64xf32>
    %cst_161 = arith.constant dense<0.000000e+00> : vector<16x64xf32>
    %222 = tpu.matmul %219, %221, %cst_161 {dimension_numbers = #tpu.dot_dimension_numbers<[1], [0], [0], [1], [0, 0, 1, 1], [], []>} : vector<16x32xf32>, vector<32x64xf32>, vector<16x64xf32> -> vector<16x64xf32>
    %c4_162 = arith.constant 4 : index
    %c0_163 = arith.constant 0 : index
    %223 = vector.load %arg18[%c4_162, %c0_163] : memref<29x32xf32, #tpu.memory_space<vmem>>, vector<16x32xf32>
    %c1_164 = arith.constant 1 : index
    %c0_165 = arith.constant 0 : index
    %c0_166 = arith.constant 0 : index
    %224 = vector.load %arg6[%c1_164, %c0_165, %c0_166] : memref<9x32x64xf32, #tpu.memory_space<vmem>>, vector<1x32x64xf32>
    %225 = vector.shape_cast %224 : vector<1x32x64xf32> to vector<32x64xf32>
    %cst_167 = arith.constant dense<0.000000e+00> : vector<16x64xf32>
    %226 = tpu.matmul %223, %225, %cst_167 {dimension_numbers = #tpu.dot_dimension_numbers<[1], [0], [0], [1], [0, 0, 1, 1], [], []>} : vector<16x32xf32>, vector<32x64xf32>, vector<16x64xf32> -> vector<16x64xf32>
    %227 = arith.addf %222, %226 : vector<16x64xf32>
    %c5_168 = arith.constant 5 : index
    %c0_169 = arith.constant 0 : index
    %228 = vector.load %arg18[%c5_168, %c0_169] : memref<29x32xf32, #tpu.memory_space<vmem>>, vector<16x32xf32>
    %cst_170 = arith.constant 0.000000e+00 : f32
    %229 = vector.shape_cast %32 : vector<16x1xi1> to vector<16x1xi1>
    %230 = vector.broadcast %229 : vector<16x1xi1> to vector<16x32xi1>
    %231 = vector.broadcast %cst_170 : f32 to vector<16x32xf32>
    %232 = arith.select %230, %228, %231 : vector<16x32xi1>, vector<16x32xf32>
    %c2_171 = arith.constant 2 : index
    %c0_172 = arith.constant 0 : index
    %c0_173 = arith.constant 0 : index
    %233 = vector.load %arg6[%c2_171, %c0_172, %c0_173] : memref<9x32x64xf32, #tpu.memory_space<vmem>>, vector<1x32x64xf32>
    %234 = vector.shape_cast %233 : vector<1x32x64xf32> to vector<32x64xf32>
    %cst_174 = arith.constant dense<0.000000e+00> : vector<16x64xf32>
    %235 = tpu.matmul %232, %234, %cst_174 {dimension_numbers = #tpu.dot_dimension_numbers<[1], [0], [0], [1], [0, 0, 1, 1], [], []>} : vector<16x32xf32>, vector<32x64xf32>, vector<16x64xf32> -> vector<16x64xf32>
    %236 = arith.addf %227, %235 : vector<16x64xf32>
    %c7_175 = arith.constant 7 : index
    %c0_176 = arith.constant 0 : index
    %237 = vector.load %arg18[%c7_175, %c0_176] : memref<29x32xf32, #tpu.memory_space<vmem>>, vector<16x32xf32>
    %cst_177 = arith.constant 0.000000e+00 : f32
    %238 = vector.shape_cast %30 : vector<16x1xi1> to vector<16x1xi1>
    %239 = vector.broadcast %238 : vector<16x1xi1> to vector<16x32xi1>
    %240 = vector.broadcast %cst_177 : f32 to vector<16x32xf32>
    %241 = arith.select %239, %237, %240 : vector<16x32xi1>, vector<16x32xf32>
    %c3_178 = arith.constant 3 : index
    %c0_179 = arith.constant 0 : index
    %c0_180 = arith.constant 0 : index
    %242 = vector.load %arg6[%c3_178, %c0_179, %c0_180] : memref<9x32x64xf32, #tpu.memory_space<vmem>>, vector<1x32x64xf32>
    %243 = vector.shape_cast %242 : vector<1x32x64xf32> to vector<32x64xf32>
    %cst_181 = arith.constant dense<0.000000e+00> : vector<16x64xf32>
    %244 = tpu.matmul %241, %243, %cst_181 {dimension_numbers = #tpu.dot_dimension_numbers<[1], [0], [0], [1], [0, 0, 1, 1], [], []>} : vector<16x32xf32>, vector<32x64xf32>, vector<16x64xf32> -> vector<16x64xf32>
    %245 = arith.addf %236, %244 : vector<16x64xf32>
    %c8_182 = arith.constant 8 : index
    %c0_183 = arith.constant 0 : index
    %246 = vector.load %arg18[%c8_182, %c0_183] : memref<29x32xf32, #tpu.memory_space<vmem>>, vector<16x32xf32>
    %c4_184 = arith.constant 4 : index
    %c0_185 = arith.constant 0 : index
    %c0_186 = arith.constant 0 : index
    %247 = vector.load %arg6[%c4_184, %c0_185, %c0_186] : memref<9x32x64xf32, #tpu.memory_space<vmem>>, vector<1x32x64xf32>
    %248 = vector.shape_cast %247 : vector<1x32x64xf32> to vector<32x64xf32>
    %cst_187 = arith.constant dense<0.000000e+00> : vector<16x64xf32>
    %249 = tpu.matmul %246, %248, %cst_187 {dimension_numbers = #tpu.dot_dimension_numbers<[1], [0], [0], [1], [0, 0, 1, 1], [], []>} : vector<16x32xf32>, vector<32x64xf32>, vector<16x64xf32> -> vector<16x64xf32>
    %250 = arith.addf %245, %249 : vector<16x64xf32>
    %c9_188 = arith.constant 9 : index
    %c0_189 = arith.constant 0 : index
    %251 = vector.load %arg18[%c9_188, %c0_189] : memref<29x32xf32, #tpu.memory_space<vmem>>, vector<16x32xf32>
    %cst_190 = arith.constant 0.000000e+00 : f32
    %252 = vector.shape_cast %32 : vector<16x1xi1> to vector<16x1xi1>
    %253 = vector.broadcast %252 : vector<16x1xi1> to vector<16x32xi1>
    %254 = vector.broadcast %cst_190 : f32 to vector<16x32xf32>
    %255 = arith.select %253, %251, %254 : vector<16x32xi1>, vector<16x32xf32>
    %c5_191 = arith.constant 5 : index
    %c0_192 = arith.constant 0 : index
    %c0_193 = arith.constant 0 : index
    %256 = vector.load %arg6[%c5_191, %c0_192, %c0_193] : memref<9x32x64xf32, #tpu.memory_space<vmem>>, vector<1x32x64xf32>
    %257 = vector.shape_cast %256 : vector<1x32x64xf32> to vector<32x64xf32>
    %cst_194 = arith.constant dense<0.000000e+00> : vector<16x64xf32>
    %258 = tpu.matmul %255, %257, %cst_194 {dimension_numbers = #tpu.dot_dimension_numbers<[1], [0], [0], [1], [0, 0, 1, 1], [], []>} : vector<16x32xf32>, vector<32x64xf32>, vector<16x64xf32> -> vector<16x64xf32>
    %259 = arith.addf %250, %258 : vector<16x64xf32>
    %c11 = arith.constant 11 : index
    %c0_195 = arith.constant 0 : index
    %260 = vector.load %arg18[%c11, %c0_195] : memref<29x32xf32, #tpu.memory_space<vmem>>, vector<16x32xf32>
    %cst_196 = arith.constant 0.000000e+00 : f32
    %261 = vector.shape_cast %30 : vector<16x1xi1> to vector<16x1xi1>
    %262 = vector.broadcast %261 : vector<16x1xi1> to vector<16x32xi1>
    %263 = vector.broadcast %cst_196 : f32 to vector<16x32xf32>
    %264 = arith.select %262, %260, %263 : vector<16x32xi1>, vector<16x32xf32>
    %c6_197 = arith.constant 6 : index
    %c0_198 = arith.constant 0 : index
    %c0_199 = arith.constant 0 : index
    %265 = vector.load %arg6[%c6_197, %c0_198, %c0_199] : memref<9x32x64xf32, #tpu.memory_space<vmem>>, vector<1x32x64xf32>
    %266 = vector.shape_cast %265 : vector<1x32x64xf32> to vector<32x64xf32>
    %cst_200 = arith.constant dense<0.000000e+00> : vector<16x64xf32>
    %267 = tpu.matmul %264, %266, %cst_200 {dimension_numbers = #tpu.dot_dimension_numbers<[1], [0], [0], [1], [0, 0, 1, 1], [], []>} : vector<16x32xf32>, vector<32x64xf32>, vector<16x64xf32> -> vector<16x64xf32>
    %268 = arith.addf %259, %267 : vector<16x64xf32>
    %c12_201 = arith.constant 12 : index
    %c0_202 = arith.constant 0 : index
    %269 = vector.load %arg18[%c12_201, %c0_202] : memref<29x32xf32, #tpu.memory_space<vmem>>, vector<16x32xf32>
    %c7_203 = arith.constant 7 : index
    %c0_204 = arith.constant 0 : index
    %c0_205 = arith.constant 0 : index
    %270 = vector.load %arg6[%c7_203, %c0_204, %c0_205] : memref<9x32x64xf32, #tpu.memory_space<vmem>>, vector<1x32x64xf32>
    %271 = vector.shape_cast %270 : vector<1x32x64xf32> to vector<32x64xf32>
    %cst_206 = arith.constant dense<0.000000e+00> : vector<16x64xf32>
    %272 = tpu.matmul %269, %271, %cst_206 {dimension_numbers = #tpu.dot_dimension_numbers<[1], [0], [0], [1], [0, 0, 1, 1], [], []>} : vector<16x32xf32>, vector<32x64xf32>, vector<16x64xf32> -> vector<16x64xf32>
    %273 = arith.addf %268, %272 : vector<16x64xf32>
    %c13 = arith.constant 13 : index
    %c0_207 = arith.constant 0 : index
    %274 = vector.load %arg18[%c13, %c0_207] : memref<29x32xf32, #tpu.memory_space<vmem>>, vector<16x32xf32>
    %cst_208 = arith.constant 0.000000e+00 : f32
    %275 = vector.shape_cast %32 : vector<16x1xi1> to vector<16x1xi1>
    %276 = vector.broadcast %275 : vector<16x1xi1> to vector<16x32xi1>
    %277 = vector.broadcast %cst_208 : f32 to vector<16x32xf32>
    %278 = arith.select %276, %274, %277 : vector<16x32xi1>, vector<16x32xf32>
    %c8_209 = arith.constant 8 : index
    %c0_210 = arith.constant 0 : index
    %c0_211 = arith.constant 0 : index
    %279 = vector.load %arg6[%c8_209, %c0_210, %c0_211] : memref<9x32x64xf32, #tpu.memory_space<vmem>>, vector<1x32x64xf32>
    %280 = vector.shape_cast %279 : vector<1x32x64xf32> to vector<32x64xf32>
    %cst_212 = arith.constant dense<0.000000e+00> : vector<16x64xf32>
    %281 = tpu.matmul %278, %280, %cst_212 {dimension_numbers = #tpu.dot_dimension_numbers<[1], [0], [0], [1], [0, 0, 1, 1], [], []>} : vector<16x32xf32>, vector<32x64xf32>, vector<16x64xf32> -> vector<16x64xf32>
    %282 = arith.addf %273, %281 : vector<16x64xf32>
    %c0_213 = arith.constant 0 : index
    %c0_214 = arith.constant 0 : index
    %283 = vector.load %arg7[%c0_213, %c0_214] : memref<1x64xf32, #tpu.memory_space<vmem>>, vector<1x64xf32>
    %284 = vector.broadcast %283 : vector<1x64xf32> to vector<16x64xf32>
    %285 = arith.addf %282, %284 : vector<16x64xf32>
    %c0_215 = arith.constant 0 : index
    %c0_216 = arith.constant 0 : index
    %286 = vector.load %arg19[%c0_215, %c0_216] : memref<16x64xf32, #tpu.memory_space<vmem>>, vector<16x64xf32>
    tpu.vector_store %arg19[%c0_215, %c0_216], %285 {strides = array<i32>} : memref<16x64xf32, #tpu.memory_space<vmem>>, vector<16x64xf32>,
    %c0_217 = arith.constant 0 : index
    %c0_218 = arith.constant 0 : index
    %287 = tpu.strided_load %arg19[%c0_217, %c0_218] {strides = array<i32: 2, 1>} : memref<16x64xf32, #tpu.memory_space<vmem>>, vector<8x64xf32>
    %c1_219 = arith.constant 1 : index
    %c0_220 = arith.constant 0 : index
    %288 = tpu.strided_load %arg19[%c1_219, %c0_220] {strides = array<i32: 2, 1>} : memref<16x64xf32, #tpu.memory_space<vmem>>, vector<8x64xf32>
    %289 = arith.maximumf %287, %288 : vector<8x64xf32>
    %290 = vector.shape_cast %289 : vector<8x64xf32> to vector<2x2x2x64xf32>
    %291 = vector.extract_strided_slice %290 {offsets = [0, 0, 0, 0], sizes = [2, 1, 2, 64], strides = [1, 1, 1, 1]} : vector<2x2x2x64xf32> to vector<2x1x2x64xf32>
    %292 = vector.shape_cast %291 : vector<2x1x2x64xf32> to vector<2x2x64xf32>
    %293 = vector.extract_strided_slice %290 {offsets = [0, 1, 0, 0], sizes = [2, 1, 2, 64], strides = [1, 1, 1, 1]} : vector<2x2x2x64xf32> to vector<2x1x2x64xf32>
    %294 = vector.shape_cast %293 : vector<2x1x2x64xf32> to vector<2x2x64xf32>
    %295 = arith.maximumf %292, %294 : vector<2x2x64xf32>
    %296 = vector.shape_cast %295 : vector<2x2x64xf32> to vector<4x64xf32>
    %c0_221 = arith.constant 0 : index
    %c0_222 = arith.constant 0 : index
    %c0_223 = arith.constant 0 : index
    %297 = vector.load %arg12[%c0_221, %c0_222, %c0_223] : memref<1x4x64xf32, #tpu.memory_space<vmem>>, vector<1x4x64xf32>
    %298 = vector.shape_cast %297 : vector<1x4x64xf32> to vector<4x64xf32>
    %299 = vector.shape_cast %296 : vector<4x64xf32> to vector<1x4x64xf32>
    tpu.vector_store %arg12[%c0_221, %c0_222, %c0_223], %299 {strides = array<i32>} : memref<1x4x64xf32, #tpu.memory_space<vmem>>, vector<1x4x64xf32>,
    %c8_224 = arith.constant 8 : index
    %c0_225 = arith.constant 0 : index
    %300 = vector.load %arg20[%c8_224, %c0_225] : memref<15x64xf32, #tpu.memory_space<vmem>>, vector<4x64xf32>
    tpu.vector_store %arg20[%c8_224, %c0_225], %296 {strides = array<i32>} : memref<15x64xf32, #tpu.memory_space<vmem>>, vector<4x64xf32>,
    %c5_226 = arith.constant 5 : index
    %c0_227 = arith.constant 0 : index
    %301 = vector.load %arg20[%c5_226, %c0_227] : memref<15x64xf32, #tpu.memory_space<vmem>>, vector<4x64xf32>
    %cst_228 = arith.constant 0.000000e+00 : f32
    %302 = vector.shape_cast %37 : vector<4x1xi1> to vector<4x1xi1>
    %303 = vector.broadcast %302 : vector<4x1xi1> to vector<4x64xi1>
    %304 = vector.broadcast %cst_228 : f32 to vector<4x64xf32>
    %305 = arith.select %303, %301, %304 : vector<4x64xi1>, vector<4x64xf32>
    %c0_229 = arith.constant 0 : index
    %c0_230 = arith.constant 0 : index
    %c0_231 = arith.constant 0 : index
    %306 = vector.load %arg8[%c0_229, %c0_230, %c0_231] : memref<9x64x128xf32, #tpu.memory_space<vmem>>, vector<1x64x128xf32>
    %307 = vector.shape_cast %306 : vector<1x64x128xf32> to vector<64x128xf32>
    %cst_232 = arith.constant dense<0.000000e+00> : vector<4x128xf32>
    %308 = tpu.matmul %305, %307, %cst_232 {dimension_numbers = #tpu.dot_dimension_numbers<[1], [0], [0], [1], [0, 0, 1, 1], [], []>} : vector<4x64xf32>, vector<64x128xf32>, vector<4x128xf32> -> vector<4x128xf32>
    %c6_233 = arith.constant 6 : index
    %c0_234 = arith.constant 0 : index
    %309 = vector.load %arg20[%c6_233, %c0_234] : memref<15x64xf32, #tpu.memory_space<vmem>>, vector<4x64xf32>
    %c1_235 = arith.constant 1 : index
    %c0_236 = arith.constant 0 : index
    %c0_237 = arith.constant 0 : index
    %310 = vector.load %arg8[%c1_235, %c0_236, %c0_237] : memref<9x64x128xf32, #tpu.memory_space<vmem>>, vector<1x64x128xf32>
    %311 = vector.shape_cast %310 : vector<1x64x128xf32> to vector<64x128xf32>
    %cst_238 = arith.constant dense<0.000000e+00> : vector<4x128xf32>
    %312 = tpu.matmul %309, %311, %cst_238 {dimension_numbers = #tpu.dot_dimension_numbers<[1], [0], [0], [1], [0, 0, 1, 1], [], []>} : vector<4x64xf32>, vector<64x128xf32>, vector<4x128xf32> -> vector<4x128xf32>
    %313 = arith.addf %308, %312 : vector<4x128xf32>
    %c7_239 = arith.constant 7 : index
    %c0_240 = arith.constant 0 : index
    %314 = vector.load %arg20[%c7_239, %c0_240] : memref<15x64xf32, #tpu.memory_space<vmem>>, vector<4x64xf32>
    %cst_241 = arith.constant 0.000000e+00 : f32
    %315 = vector.shape_cast %39 : vector<4x1xi1> to vector<4x1xi1>
    %316 = vector.broadcast %315 : vector<4x1xi1> to vector<4x64xi1>
    %317 = vector.broadcast %cst_241 : f32 to vector<4x64xf32>
    %318 = arith.select %316, %314, %317 : vector<4x64xi1>, vector<4x64xf32>
    %c2_242 = arith.constant 2 : index
    %c0_243 = arith.constant 0 : index
    %c0_244 = arith.constant 0 : index
    %319 = vector.load %arg8[%c2_242, %c0_243, %c0_244] : memref<9x64x128xf32, #tpu.memory_space<vmem>>, vector<1x64x128xf32>
    %320 = vector.shape_cast %319 : vector<1x64x128xf32> to vector<64x128xf32>
    %cst_245 = arith.constant dense<0.000000e+00> : vector<4x128xf32>
    %321 = tpu.matmul %318, %320, %cst_245 {dimension_numbers = #tpu.dot_dimension_numbers<[1], [0], [0], [1], [0, 0, 1, 1], [], []>} : vector<4x64xf32>, vector<64x128xf32>, vector<4x128xf32> -> vector<4x128xf32>
    %322 = arith.addf %313, %321 : vector<4x128xf32>
    %c7_246 = arith.constant 7 : index
    %c0_247 = arith.constant 0 : index
    %323 = vector.load %arg20[%c7_246, %c0_247] : memref<15x64xf32, #tpu.memory_space<vmem>>, vector<4x64xf32>
    %cst_248 = arith.constant 0.000000e+00 : f32
    %324 = vector.shape_cast %37 : vector<4x1xi1> to vector<4x1xi1>
    %325 = vector.broadcast %324 : vector<4x1xi1> to vector<4x64xi1>
    %326 = vector.broadcast %cst_248 : f32 to vector<4x64xf32>
    %327 = arith.select %325, %323, %326 : vector<4x64xi1>, vector<4x64xf32>
    %c3_249 = arith.constant 3 : index
    %c0_250 = arith.constant 0 : index
    %c0_251 = arith.constant 0 : index
    %328 = vector.load %arg8[%c3_249, %c0_250, %c0_251] : memref<9x64x128xf32, #tpu.memory_space<vmem>>, vector<1x64x128xf32>
    %329 = vector.shape_cast %328 : vector<1x64x128xf32> to vector<64x128xf32>
    %cst_252 = arith.constant dense<0.000000e+00> : vector<4x128xf32>
    %330 = tpu.matmul %327, %329, %cst_252 {dimension_numbers = #tpu.dot_dimension_numbers<[1], [0], [0], [1], [0, 0, 1, 1], [], []>} : vector<4x64xf32>, vector<64x128xf32>, vector<4x128xf32> -> vector<4x128xf32>
    %331 = arith.addf %322, %330 : vector<4x128xf32>
    %c8_253 = arith.constant 8 : index
    %c0_254 = arith.constant 0 : index
    %332 = vector.load %arg20[%c8_253, %c0_254] : memref<15x64xf32, #tpu.memory_space<vmem>>, vector<4x64xf32>
    %c4_255 = arith.constant 4 : index
    %c0_256 = arith.constant 0 : index
    %c0_257 = arith.constant 0 : index
    %333 = vector.load %arg8[%c4_255, %c0_256, %c0_257] : memref<9x64x128xf32, #tpu.memory_space<vmem>>, vector<1x64x128xf32>
    %334 = vector.shape_cast %333 : vector<1x64x128xf32> to vector<64x128xf32>
    %cst_258 = arith.constant dense<0.000000e+00> : vector<4x128xf32>
    %335 = tpu.matmul %332, %334, %cst_258 {dimension_numbers = #tpu.dot_dimension_numbers<[1], [0], [0], [1], [0, 0, 1, 1], [], []>} : vector<4x64xf32>, vector<64x128xf32>, vector<4x128xf32> -> vector<4x128xf32>
    %336 = arith.addf %331, %335 : vector<4x128xf32>
    %c9_259 = arith.constant 9 : index
    %c0_260 = arith.constant 0 : index
    %337 = vector.load %arg20[%c9_259, %c0_260] : memref<15x64xf32, #tpu.memory_space<vmem>>, vector<4x64xf32>
    %cst_261 = arith.constant 0.000000e+00 : f32
    %338 = vector.shape_cast %39 : vector<4x1xi1> to vector<4x1xi1>
    %339 = vector.broadcast %338 : vector<4x1xi1> to vector<4x64xi1>
    %340 = vector.broadcast %cst_261 : f32 to vector<4x64xf32>
    %341 = arith.select %339, %337, %340 : vector<4x64xi1>, vector<4x64xf32>
    %c5_262 = arith.constant 5 : index
    %c0_263 = arith.constant 0 : index
    %c0_264 = arith.constant 0 : index
    %342 = vector.load %arg8[%c5_262, %c0_263, %c0_264] : memref<9x64x128xf32, #tpu.memory_space<vmem>>, vector<1x64x128xf32>
    %343 = vector.shape_cast %342 : vector<1x64x128xf32> to vector<64x128xf32>
    %cst_265 = arith.constant dense<0.000000e+00> : vector<4x128xf32>
    %344 = tpu.matmul %341, %343, %cst_265 {dimension_numbers = #tpu.dot_dimension_numbers<[1], [0], [0], [1], [0, 0, 1, 1], [], []>} : vector<4x64xf32>, vector<64x128xf32>, vector<4x128xf32> -> vector<4x128xf32>
    %345 = arith.addf %336, %344 : vector<4x128xf32>
    %c9_266 = arith.constant 9 : index
    %c0_267 = arith.constant 0 : index
    %346 = vector.load %arg20[%c9_266, %c0_267] : memref<15x64xf32, #tpu.memory_space<vmem>>, vector<4x64xf32>
    %cst_268 = arith.constant 0.000000e+00 : f32
    %347 = vector.shape_cast %37 : vector<4x1xi1> to vector<4x1xi1>
    %348 = vector.broadcast %347 : vector<4x1xi1> to vector<4x64xi1>
    %349 = vector.broadcast %cst_268 : f32 to vector<4x64xf32>
    %350 = arith.select %348, %346, %349 : vector<4x64xi1>, vector<4x64xf32>
    %c6_269 = arith.constant 6 : index
    %c0_270 = arith.constant 0 : index
    %c0_271 = arith.constant 0 : index
    %351 = vector.load %arg8[%c6_269, %c0_270, %c0_271] : memref<9x64x128xf32, #tpu.memory_space<vmem>>, vector<1x64x128xf32>
    %352 = vector.shape_cast %351 : vector<1x64x128xf32> to vector<64x128xf32>
    %cst_272 = arith.constant dense<0.000000e+00> : vector<4x128xf32>
    %353 = tpu.matmul %350, %352, %cst_272 {dimension_numbers = #tpu.dot_dimension_numbers<[1], [0], [0], [1], [0, 0, 1, 1], [], []>} : vector<4x64xf32>, vector<64x128xf32>, vector<4x128xf32> -> vector<4x128xf32>
    %354 = arith.addf %345, %353 : vector<4x128xf32>
    %c10 = arith.constant 10 : index
    %c0_273 = arith.constant 0 : index
    %355 = vector.load %arg20[%c10, %c0_273] : memref<15x64xf32, #tpu.memory_space<vmem>>, vector<4x64xf32>
    %c7_274 = arith.constant 7 : index
    %c0_275 = arith.constant 0 : index
    %c0_276 = arith.constant 0 : index
    %356 = vector.load %arg8[%c7_274, %c0_275, %c0_276] : memref<9x64x128xf32, #tpu.memory_space<vmem>>, vector<1x64x128xf32>
    %357 = vector.shape_cast %356 : vector<1x64x128xf32> to vector<64x128xf32>
    %cst_277 = arith.constant dense<0.000000e+00> : vector<4x128xf32>
    %358 = tpu.matmul %355, %357, %cst_277 {dimension_numbers = #tpu.dot_dimension_numbers<[1], [0], [0], [1], [0, 0, 1, 1], [], []>} : vector<4x64xf32>, vector<64x128xf32>, vector<4x128xf32> -> vector<4x128xf32>
    %359 = arith.addf %354, %358 : vector<4x128xf32>
    %c11_278 = arith.constant 11 : index
    %c0_279 = arith.constant 0 : index
    %360 = vector.load %arg20[%c11_278, %c0_279] : memref<15x64xf32, #tpu.memory_space<vmem>>, vector<4x64xf32>
    %cst_280 = arith.constant 0.000000e+00 : f32
    %361 = vector.shape_cast %39 : vector<4x1xi1> to vector<4x1xi1>
    %362 = vector.broadcast %361 : vector<4x1xi1> to vector<4x64xi1>
    %363 = vector.broadcast %cst_280 : f32 to vector<4x64xf32>
    %364 = arith.select %362, %360, %363 : vector<4x64xi1>, vector<4x64xf32>
    %c8_281 = arith.constant 8 : index
    %c0_282 = arith.constant 0 : index
    %c0_283 = arith.constant 0 : index
    %365 = vector.load %arg8[%c8_281, %c0_282, %c0_283] : memref<9x64x128xf32, #tpu.memory_space<vmem>>, vector<1x64x128xf32>
    %366 = vector.shape_cast %365 : vector<1x64x128xf32> to vector<64x128xf32>
    %cst_284 = arith.constant dense<0.000000e+00> : vector<4x128xf32>
    %367 = tpu.matmul %364, %366, %cst_284 {dimension_numbers = #tpu.dot_dimension_numbers<[1], [0], [0], [1], [0, 0, 1, 1], [], []>} : vector<4x64xf32>, vector<64x128xf32>, vector<4x128xf32> -> vector<4x128xf32>
    %368 = arith.addf %359, %367 : vector<4x128xf32>
    %c0_285 = arith.constant 0 : index
    %c0_286 = arith.constant 0 : index
    %369 = vector.load %arg9[%c0_285, %c0_286] : memref<1x128xf32, #tpu.memory_space<vmem>>, vector<1x128xf32>
    %370 = vector.broadcast %369 : vector<1x128xf32> to vector<4x128xf32>
    %371 = arith.addf %368, %370 : vector<4x128xf32>
    %c0_287 = arith.constant 0 : index
    %c0_288 = arith.constant 0 : index
    %372 = vector.load %arg21[%c0_287, %c0_288] : memref<4x128xf32, #tpu.memory_space<vmem>>, vector<4x128xf32>
    tpu.vector_store %arg21[%c0_287, %c0_288], %371 {strides = array<i32>} : memref<4x128xf32, #tpu.memory_space<vmem>>, vector<4x128xf32>,
    %c0_289 = arith.constant 0 : index
    %c0_290 = arith.constant 0 : index
    %373 = tpu.strided_load %arg21[%c0_289, %c0_290] {strides = array<i32: 2, 1>} : memref<4x128xf32, #tpu.memory_space<vmem>>, vector<2x128xf32>
    %c1_291 = arith.constant 1 : index
    %c0_292 = arith.constant 0 : index
    %374 = tpu.strided_load %arg21[%c1_291, %c0_292] {strides = array<i32: 2, 1>} : memref<4x128xf32, #tpu.memory_space<vmem>>, vector<2x128xf32>
    %375 = arith.maximumf %373, %374 : vector<2x128xf32>
    %376 = vector.shape_cast %375 : vector<2x128xf32> to vector<1x2x1x128xf32>
    %377 = vector.extract_strided_slice %376 {offsets = [0, 0, 0, 0], sizes = [1, 1, 1, 128], strides = [1, 1, 1, 1]} : vector<1x2x1x128xf32> to vector<1x1x1x128xf32>
    %378 = vector.shape_cast %377 : vector<1x1x1x128xf32> to vector<1x1x128xf32>
    %379 = vector.extract_strided_slice %376 {offsets = [0, 1, 0, 0], sizes = [1, 1, 1, 128], strides = [1, 1, 1, 1]} : vector<1x2x1x128xf32> to vector<1x1x1x128xf32>
    %380 = vector.shape_cast %379 : vector<1x1x1x128xf32> to vector<1x1x128xf32>
    %381 = arith.maximumf %378, %380 : vector<1x1x128xf32>
    %382 = vector.shape_cast %381 : vector<1x1x128xf32> to vector<1x128xf32>
    %c0_293 = arith.constant 0 : index
    %c0_294 = arith.constant 0 : index
    %c0_295 = arith.constant 0 : index
    %383 = vector.load %arg13[%c0_293, %c0_294, %c0_295] : memref<1x1x128xf32, #tpu.memory_space<vmem>>, vector<1x1x128xf32>
    %384 = vector.shape_cast %383 : vector<1x1x128xf32> to vector<1x128xf32>
    %385 = vector.shape_cast %382 : vector<1x128xf32> to vector<1x1x128xf32>
    tpu.vector_store %arg13[%c0_293, %c0_294, %c0_295], %385 {strides = array<i32>} : memref<1x1x128xf32, #tpu.memory_space<vmem>>, vector<1x1x128xf32>,
    return
  }
  func.func @transform_0(%arg0: i32) -> (i32, i32, i32) {
    %c0_i32 = arith.constant 0 : i32
    %c0_i32_0 = arith.constant 0 : i32
    %c0_i32_1 = arith.constant 0 : i32
    return %arg0, %c0_i32, %c0_i32_0 : i32, i32, i32
  }
  func.func @transform_1(%arg0: i32) -> (i32, i32, i32) {
    %c0_i32 = arith.constant 0 : i32
    %c0_i32_0 = arith.constant 0 : i32
    %c0_i32_1 = arith.constant 0 : i32
    %c0_i32_2 = arith.constant 0 : i32
    return %c0_i32, %c0_i32_0, %c0_i32_1 : i32, i32, i32
  }
  func.func @transform_2(%arg0: i32) -> (i32, i32) {
    %c0_i32 = arith.constant 0 : i32
    %c0_i32_0 = arith.constant 0 : i32
    %c0_i32_1 = arith.constant 0 : i32
    return %c0_i32, %c0_i32_0 : i32, i32
  }
  func.func @transform_3(%arg0: i32) -> (i32, i32, i32) {
    %c0_i32 = arith.constant 0 : i32
    %c0_i32_0 = arith.constant 0 : i32
    %c0_i32_1 = arith.constant 0 : i32
    %c0_i32_2 = arith.constant 0 : i32
    return %c0_i32, %c0_i32_0, %c0_i32_1 : i32, i32, i32
  }
  func.func @transform_4(%arg0: i32) -> (i32, i32) {
    %c0_i32 = arith.constant 0 : i32
    %c0_i32_0 = arith.constant 0 : i32
    %c0_i32_1 = arith.constant 0 : i32
    return %c0_i32, %c0_i32_0 : i32, i32
  }
  func.func @transform_5(%arg0: i32) -> (i32, i32, i32) {
    %c0_i32 = arith.constant 0 : i32
    %c0_i32_0 = arith.constant 0 : i32
    %c0_i32_1 = arith.constant 0 : i32
    %c0_i32_2 = arith.constant 0 : i32
    return %c0_i32, %c0_i32_0, %c0_i32_1 : i32, i32, i32
  }
  func.func @transform_6(%arg0: i32) -> (i32, i32) {
    %c0_i32 = arith.constant 0 : i32
    %c0_i32_0 = arith.constant 0 : i32
    %c0_i32_1 = arith.constant 0 : i32
    return %c0_i32, %c0_i32_0 : i32, i32
  }
  func.func @transform_7(%arg0: i32) -> (i32, i32, i32) {
    %c0_i32 = arith.constant 0 : i32
    %c0_i32_0 = arith.constant 0 : i32
    %c0_i32_1 = arith.constant 0 : i32
    %c0_i32_2 = arith.constant 0 : i32
    return %c0_i32, %c0_i32_0, %c0_i32_1 : i32, i32, i32
  }
  func.func @transform_8(%arg0: i32) -> (i32, i32) {
    %c0_i32 = arith.constant 0 : i32
    %c0_i32_0 = arith.constant 0 : i32
    %c0_i32_1 = arith.constant 0 : i32
    return %c0_i32, %c0_i32_0 : i32, i32
  }
  func.func @transform_9(%arg0: i32) -> (i32, i32, i32) {
    %c0_i32 = arith.constant 0 : i32
    %c0_i32_0 = arith.constant 0 : i32
    %c0_i32_1 = arith.constant 0 : i32
    return %arg0, %c0_i32, %c0_i32_0 : i32, i32, i32
  }
  func.func @transform_10(%arg0: i32) -> (i32, i32, i32) {
    %c0_i32 = arith.constant 0 : i32
    %c0_i32_0 = arith.constant 0 : i32
    %c0_i32_1 = arith.constant 0 : i32
    return %arg0, %c0_i32, %c0_i32_0 : i32, i32, i32
  }
  func.func @transform_11(%arg0: i32) -> (i32, i32, i32) {
    %c0_i32 = arith.constant 0 : i32
    %c0_i32_0 = arith.constant 0 : i32
    %c0_i32_1 = arith.constant 0 : i32
    return %arg0, %c0_i32, %c0_i32_0 : i32, i32, i32
  }
  func.func @transform_12(%arg0: i32) -> (i32, i32, i32) {
    %c0_i32 = arith.constant 0 : i32
    %c0_i32_0 = arith.constant 0 : i32
    %c0_i32_1 = arith.constant 0 : i32
    return %arg0, %c0_i32, %c0_i32_0 : i32, i32, i32
  }
}

</mosaic_0001>

<bundles_post_ra>
// kernel: base_encoder_forward.1
= control target key start
LH: loop header
LB: loop body
LE: loop exit
PB: predicated region body
PF: predicated region fallthrough
CT: control target
= control target key end

     0   :  { %s8736_s0 = inlined_call_operand.vmem [shape: f32[2,256,3], index: 0, kind: input, shape index: {}]   ;;  %s8737_s1 = inlined_call_operand.vmem [shape: f32[9,3,16], index: 1, kind: input, shape index: {}]   ;;  %s8738_s2 = inlined_call_operand.vmem [shape: f32[1,16], index: 2, kind: input, shape index: {}]   ;;  %s8739_s3 = inlined_call_operand.hbm [shape: f32[9,16,32], index: 3, kind: input, shape index: {}]   ;;  %s8740_s4 = inlined_call_operand.vmem [shape: f32[1,32], index: 4, kind: input, shape index: {}]   ;;  %s8741_s5 = inlined_call_operand.hbm [shape: f32[9,32,64], index: 5, kind: input, shape index: {}]   ;;  %s8742_s6 = inlined_call_operand.vmem [shape: f32[1,64], index: 6, kind: input, shape index: {}]   ;;  %s8743_s7 = inlined_call_operand.vmem [shape: f32[9,64,128], index: 7, kind: input, shape index: {}]   ;;  %s8744_s8 = inlined_call_operand.vmem [shape: f32[1,128], index: 8, kind: input, shape index: {}]   ;;  %s8745_s9 = inlined_call_operand.hbm [shape: f32[2,64,16], index: 9, kind: output, shape index: {0}]   ;;  %s8746_s10 = inlined_call_operand.hbm [shape: f32[2,16,32], index: 10, kind: output, shape index: {1}]   ;;  %s8747_s11 = inlined_call_operand.hbm [shape: f32[2,4,64], index: 11, kind: output, shape index: {2}]   ;;  %s8748_s12 = inlined_call_operand.hbm [shape: f32[2,1,128], index: 12, kind: output, shape index: {3}]  }
   0x1   :  { %8841 = sst [smem:[#allocation86_spill]] %s8736_s0 }
   0x2   :  { %8842 = sst [smem:[#allocation87_spill]] %s8737_s1 }
   0x3   :  { %8843 = sst [smem:[#allocation88_spill]] %s8738_s2 }
   0x4   :  { %8844 = sst [smem:[#allocation89_spill]] %s8739_s3 }
   0x5   :  { %8845 = sst [smem:[#allocation90_spill]] %s8740_s4 }
   0x6   :  { %8846 = sst [smem:[#allocation91_spill]] %s8741_s5 }
   0x7   :  { %8847 = sst [smem:[#allocation92_spill]] %s8742_s6 }
   0x8   :  { %8848 = sst [smem:[#allocation93_spill]] %s8743_s7 }
   0x9   :  { %18 = vsyncpa [#allocation11], 0 }
   0xa   :  { %19 = vsyncpa [#allocation14], 0 }
   0xb   :  { %20 = vsyncpa [#allocation12], 0 }
   0xc   :  { %22 = vsyncpa [#allocation12 + $0x1], 0 }
   0xd   :  { %23 = vsyncpa [#allocation17], 0 }
   0xe   :  { %25 = vsyncpa [#allocation17 + $0x1], 0 }
   0xf   :  { %26 = vsyncpa [#allocation20], 0 }
  0x10   :  { %28 = vsyncpa [#allocation20 + $0x1], 0  ;;  %s6398_s21 = smov 0   ;;  %s6400_s22 = smov 0  }
  0x11   :  { %s6402_s23 = smov 0   ;;  %s6404_s24 = smov 0  }
  0x12 LB: > { %8849 = sst [smem:[#allocation26_spill]] %s6320_s23  ;;  %s6419_s25 = sadd.s32 4294967295, %s6324_s24   ;;  %s6324_s24 = sphi %s6404_s24, %s9128_s24   ;;  %s6320_s23 = sphi %s6402_s23, %s9130_s23   ;;  %s6316_s22 = sphi %s6400_s22, %s9132_s22   ;;  %s6312_s21 = sphi %s6398_s21, %s9131_s21  }
  0x13   : > { %s8749_s26 = sadd.s32 4294967294, %s6324_s24   ;;  %s6423_s27 = sadd.s32 1, %s6324_s24  }
  0x14   : > { %8850 = sst [smem:[#allocation27_spill]] %s6423_s27  ;;  %s235_s28 = sadd.s32 1, %s6320_s23 }
  0x15   : > { %s232_s29 = ssub.s32 %s6324_s24, %s6423_s27  ;;  %p245_p0 = scmp.ne.s32.totalorder %s6320_s23, %s6316_s22 }
  0x16   : > { %p233_p1 = scmp.eq.s32.totalorder %s232_s29, 0  ;;  %p246_p2 = scmp.eq.s32.totalorder %s6419_s25, 1 }
  0x17   : > { %p251_p3 = scmp.ne.s32.totalorder %s6316_s22, %s6312_s21  ;;  %p252_p4 = scmp.eq.s32.totalorder %s8749_s26, 1 }
  0x18   : > { %s6436_s30 = scalar_select %p233_p1, %s6320_s23, %s235_s28  }
  0x19   : > { %p6438_p5 = por %p246_p2, %p245_p0  ;;  %p6442_p6 = por %p252_p4, %p251_p3 }
  0x1a   : > { %8851 = sst [smem:[#allocation28_spill]] %s6436_s30  ;;  %p5523_p7 = scmp.ge.s32.totalorder %s6324_s24, 1 }
  0x1b   : > { %p337_p8 = scmp.lt.s32.totalorder %s6324_s24, 3  ;;  %p6054_p9 = scmp.eq.s32.totalorder %s6419_s25, 0 }
  0x1c   : > { %s8855_s3 = sld [smem:[#allocation89_spill]]  ;;  %s6326_s19 = smov [#allocation10]  }
  0x1d   : > { %p6449_p10 = pnand %p5523_p7, %p337_p8  ;;  %s356_s20 = sshll.u32 %s6326_s19, 4  ;;  %s357_s20 = int_to_ptr.vmem [resolvable:$true] %s356_s20 }
  0x1e   : > { %s8856_s5 = sld [smem:[#allocation91_spill]]  ;;  %s6327_s30 = smov 128  }
  0x1f   : > { %p6034_p11 = pneg %p6449_p10  ;;  %s6328_s23 = smov 8  }
  0x20   : > { %s6329_s27 = smov [#allocation13]  }
  0x21   : > { %p6035_p12 = pnand %p6054_p9, %p6034_p11  ;;  %s373_s16 = sshll.u32 %s6329_s27, 4  ;;  %s374_s16 = int_to_ptr.vmem [resolvable:$true] %s373_s16 }
  0x22   : > { %s354_s18 = sshll.u32 %s8855_s3, 4  ;;  %406 = sbr.rel (%p6449_p10) target bundleno = 1642 (0x66a), region = 56  ;;  %s355_s18 = int_to_ptr.hbm [resolvable:$true] %s354_s18 }
  0x23   : > { %6037 = dma.hbm_to_vmem [thread:$0]  (!%p6035_p12), %s355_s18, 2304, %s357_s20, [#allocation11], %s6327_s30, %s6327_s30, %s6328_s23  }
  0x24   : > { %s371_s26 = sshll.u32 %s8856_s5, 4  ;;  %s372_s26 = int_to_ptr.hbm [resolvable:$true] %s371_s26 }
  0x25   : > { %6040 = dma.hbm_to_vmem [thread:$0]  (!%p6035_p12), %s372_s26, 4608, %s374_s16, [#allocation14], %s6327_s30, %s6327_s30, %s6328_s23  }
  0x27   : > { %6291 = dma.done.wait (%p6054_p9), [#allocation11], 2304  }
  0x28   : > { %6293 = vsyncadd (%p6054_p9), [#allocation11], 4294964992 }
  0x29   : > { %6295 = dma.done.wait (%p6054_p9), [#allocation14], 4608  }
  0x2a   : > { %6297 = vsyncadd (%p6054_p9), [#allocation14], 4294962688  ;;  %vm473_vm0 = vcmask 23552   ;;  %p468_p13 = scmp.lt.s32.totalorder %s6419_s25, 1  ;;  %v493_v0 = vlaneseq  ;;  %v8768_v1 = vmov 0.0   ;;  %vm476_vm1 = vcmask 16384  }
  0x2b   : > { %474 = vst.msk [vmem:[#allocation2 + $0x7] sm:$0xff] %vm473_vm0, %v8768_v1  ;;  %vm8753_vm2 = vcmask 1042432   ;;  %s8858_s0 = sld [smem:[#allocation86_spill]]  ;;  %v8867_v38 = vmov 0  ;;  %v8874_v54 = vmov 0  ;;  %s5278_s28 = sand.u32 1, %s6419_s25  }
  0x2c   : > { %475 = vst.msk [vmem:[#allocation2 + $0xf] sm:$0xff] %vm473_vm0, %v8768_v1  ;;  %s469_s23 = scalar_select %p468_p13, %s6419_s25, 1  ;;  %v6479_v2 = vshrl.u32 %v493_v0, 7 }
  0x2d   : > { %478 = vst.msk [vmem:[#allocation2 + $0x118] sm:$0xff] %vm473_vm0, %v8768_v1  ;;  %s8861_s1 = sld [smem:[#allocation87_spill]]  ;;  %s8654_s20 = scalar_lea.sflag [#allocation17], %s5278_s28 }
  0x2e   : > { %8857 = vst [vmem:[#allocation29_spill] sm:$0xff] %v6479_v2  ;;  %s6013_s26 = sshll.u32 %s469_s23, 8  ;;  %v526_v3 = vand.u32 15, %v6479_v2  ;;  %v6534_v19 = vadd.s32 16, %v6479_v2  ;;  %v6555_v30 = vadd.s32 8, %v6479_v2  ;;  %v6568_v37 = vadd.s32 32, %v6479_v2 }
  0x2f   : > { %479 = vst.msk [vmem:[#allocation2 + $0x120] sm:$0xff] %vm473_vm0, %v8768_v1  ;;  %v6589_v46 = vadd.s32 24, %v6479_v2  ;;  %v6607_v53 = vadd.s32 48, %v6479_v2  ;;  %v6628_v63 = vadd.s32 40, %v6479_v2  ;;  %s9031_s2 = sld [smem:[#allocation88_spill]]  ;;  %s6182_s5 = scalar_lea.hbm %s8746_s10, 32 }
  0x30   : > { %477 = vst.msk [vmem:[#allocation2 + $0x17] sm:$0x1] %vm476_vm1, %v8768_v1  ;;  %vm6492_vm3 = vcmp.ne.s32.totalorder %v526_v3, 0  ;;  %v528_v22 = vand.u32 15, %v6534_v19  ;;  %v527_v35 = vand.u32 15, %v6555_v30  ;;  %v530_v43 = vand.u32 15, %v6568_v37 }
  0x31   : > { %s6490_s15 = scalar_lea.vmem %s8858_s0, %s6013_s26  ;;  %480 = vst.msk [vmem:[#allocation2 + $0x128] sm:$0x1] %vm476_vm1, %v8768_v1  ;;  %v529_v51 = vand.u32 15, %v6589_v46  ;;  %v532_v59 = vand.u32 15, %v6607_v53  ;;  %s7591_s26 = sand.u32 1, %s6316_s22  }
  0x32   : > { %v656_v8 = vld [vmem:[%s6490_s15 + $0x8] sm:$0xff]  ;;  %v657_v9 = vld [vmem:[%s6490_s15 + $0x10] sm:$0xff]  ;;  %v683_v14 = vld [vmem:[%s6490_s15 + $0xe0] sm:$0xff]  ;;  %8862 = vst [vmem:[#allocation30_spill] sm:$0xff] %v6534_v19  ;;  %vm6549_vm4 = vcmp.ne.s32.totalorder %v528_v22, 0  ;;  %vm6571_vm5 = vcmp.ne.s32.totalorder %v527_v35, 15 }
  0x33   : > { %v5535_v5 = vld [vmem:[%s8861_s1 + $0x4] sm:$0x7]  ;;  %v847_v6 = vld [vmem:[%s8861_s1] sm:$0x7]  ;;  %v5670_v7 = vld [vmem:[%s8861_s1 + $0x10] sm:$0x7] }
  0x34   : > { %5536 = vmatpush.msk.msra.mxu0 %vm8753_vm2, %v5535_v5  ;;  %5569 = vmatpush.msk.msra.mxu1 %vm8753_vm2, %v847_v6  ;;  %v719_v10 = vld [vmem:[#allocation2 + $0x7] sm:$0xff]  ;;  %688 = vst.msk [vmem:[#allocation2 + $0x20] sm:$0xff] %vm473_vm0, %v656_v8  ;;  %v5602_v15 = vld [vmem:[%s8861_s1 + $0x8] sm:$0x7]  ;;  %v655_v16 = vld [vmem:[%s6490_s15] sm:$0xff]  ;;  %v8868_v38 = vsel %vm6571_vm5, 4294967295, %v8867_v38 }
  0x35   : > { %v848_v11 = vld [vmem:[#allocation2 + $0x8] sm:$0xff]  ;;  %v815_v12 = vsel %vm6492_vm3, %v719_v10, 0.0  ;;  %6016 = vmatpush.msk.msra.mxu2 %vm8753_vm2, %v5535_v5  ;;  %v684_v13 = vld [vmem:[%s6490_s15 + $0xe8] sm:$0xff]  ;;  %689 = vst.msk [vmem:[#allocation2 + $0x28] sm:$0xff] %vm473_vm0, %v657_v9  ;;  %6017 = vmatpush.msk.msra.mxu3 %vm8753_vm2, %v847_v6  ;;  %v658_v18 = vld [vmem:[%s6490_s15 + $0x18] sm:$0xff]  ;;  %vm6583_vm6 = vcmp.ne.s32.totalorder %v530_v43, 0 }
  0x36   : > { %5671 = vmatpush.msk.msrb.mxu0 %vm8753_vm2, %v5670_v7  ;;  %5570 = vmatmul.msk.f32.vlgmr.msra.gmra.mxu1 %vm473_vm0, %v815_v12  ;;  %716 = vst.msk [vmem:[#allocation2 + $0x100] sm:$0xff] %vm473_vm0, %v684_v13  ;;  %v5636_v17 = vld [vmem:[%s8861_s1 + $0xc] sm:$0x7]  ;;  %v720_v21 = vld [vmem:[#allocation2 + $0xf] sm:$0xff]  ;;  %v659_v27 = vld [vmem:[%s6490_s15 + $0x20] sm:$0xff]  ;;  %vm6610_vm7 = vcmp.ne.s32.totalorder %v529_v51, 15 }
  0x37   : > { %5537 = vmatmul.msk.f32.vlgmr.msra.gmra.mxu0 %vm473_vm0, %v848_v11  ;;  %5603 = vmatpush.msk.msrb.mxu2 %vm8753_vm2, %v5602_v15  ;;  %715 = vst.msk [vmem:[#allocation2 + $0xf8] sm:$0xff] %vm473_vm0, %v683_v14  ;;  %v849_v20 = vld [vmem:[#allocation2 + $0x10] sm:$0xff]  ;;  %v660_v36 = vld [vmem:[%s6490_s15 + $0x28] sm:$0xff]  ;;  %v661_v44 = vld [vmem:[%s6490_s15 + $0x30] sm:$0xff]  ;;  %v8875_v54 = vsel %vm6610_vm7, 4294967295, %v8874_v54  ;;  %vm6622_vm8 = vcmp.ne.s32.totalorder %v532_v59, 0 }
  0x38   : > { %5637 = vmatpush.msk.msrb.mxu3 %vm8753_vm2, %v5636_v17  ;;  %687 = vst.msk [vmem:[#allocation2 + $0x18] sm:$0xff] %vm473_vm0, %v655_v16  ;;  %v1307_v33 = vld [vmem:[#allocation2 + $0x9] sm:$0xff]  ;;  %v663_v60 = vld [vmem:[%s6490_s15 + $0x40] sm:$0xff]  ;;  %v531_v7 = vand.u32 15, %v6628_v63  ;;  %v664_v8 = vld [vmem:[%s6490_s15 + $0x48] sm:$0xff]  ;;  %v502_v9 = vadd.s32 64, %v6479_v2 }
  0x39   : > { %690 = vst.msk [vmem:[#allocation2 + $0x30] sm:$0xff] %vm473_vm0, %v658_v18  ;;  %v662_v52 = vld [vmem:[%s6490_s15 + $0x38] sm:$0xff]  ;;  %v8880_v10 = vmov 0  ;;  %v665_v16 = vld [vmem:[%s6490_s15 + $0x50] sm:$0xff]  ;;  %v503_v43 = vadd.s32 72, %v6479_v2  ;;  %s5530_s27 = sshll.u32 %s7591_s26, 6 }
  0x3a   : > { %691 = vst.msk [vmem:[#allocation2 + $0x38] sm:$0xff] %vm473_vm0, %v659_v27  ;;  %vm6642_vm9 = vcmp.ne.s32.totalorder %v531_v7, 15  ;;  %v534_v15 = vand.u32 15, %v502_v9  ;;  %s7608_s30 = scalar_lea.vmem [#allocation15], %s5530_s27  ;;  %s9110_s4 = sld [smem:[#allocation90_spill]] }
  0x3b   : > { %8865 = vst [vmem:[#allocation31_spill] sm:$0xff] %v6555_v30  ;;  %v851_v40 = vld [vmem:[#allocation2 + $0x20] sm:$0xff]  ;;  %v8881_v10 = vsel %vm6642_vm9, 4294967295, %v8880_v10  ;;  %v535_v51 = vand.u32 15, %v503_v43  ;;  %v8901_v43 = vmov 0  ;;  %s5531_s19 = sshll.u32 %s7591_s26, 4 }
  0x3c   : > { %v6539_v23 = vld [vmem:[#allocation2 + $0x27] sm:$0xff]  ;;  %8866 = vst [vmem:[#allocation32_spill] sm:$0xff] %v6568_v37  ;;  %vm6653_vm10 = vcmp.ne.s32.totalorder %v534_v15, 0  ;;  %v8896_v15 = vmov 0  ;;  %s9112_s7 = sld [smem:[#allocation93_spill]]  ;;  %s5532_s29 = sshll.u32 %s7591_s26, 2 }
  0x3d   : > { %v879_v25 = vld [vmem:[#allocation2 + $0x100] sm:$0xff]  ;;  %692 = vst.msk [vmem:[#allocation2 + $0x40] sm:$0xff] %vm473_vm0, %v660_v36  ;;  %v852_v47 = vld [vmem:[#allocation2 + $0x28] sm:$0xff]  ;;  %v819_v48 = vsel %vm6583_vm6, %v6539_v23, 0.0  ;;  %v1715_v50 = vsel %vm6549_vm4, %v6539_v23, 0.0  ;;  %vm6701_vm13 = vcmp.ne.s32.totalorder %v535_v51, 15 }
  0x3e   : > { %5571 = vmatmul.msk.f32.gmra.mxu1 %vm473_vm0, %v720_v21  ;;  %5568 = vmatmul.msk.f32.vlgmr.msra.gmra.mxu2 %vm473_vm0, %v879_v25  ;;  %v750_v26 = vld [vmem:[#allocation2 + $0xff] sm:$0xff]  ;;  %8869 = vst [vmem:[#allocation33_spill] sm:$0xff] %v8868_v38  ;;  %s9122_s6 = sld [smem:[#allocation92_spill]]  ;;  %s8590_s16 = scalar_lea.vmem [#allocation18], %s5532_s29 }
  0x3f   : > { %5538 = vmatmul.msk.f32.gmra.mxu0 %vm473_vm0, %v849_v20  ;;  %5601 = vmatmul.msk.f32.vlgmr.msra.gmra.mxu3 %vm473_vm0, %v750_v26  ;;  %v721_v29 = vld [vmem:[#allocation2 + $0x17] sm:$0xff]  ;;  %v722_v41 = vld [vmem:[#allocation2 + $0x1f] sm:$0xff]  ;;  %693 = vst.msk [vmem:[#allocation2 + $0x48] sm:$0xff] %vm473_vm0, %v661_v44  ;;  %v6659_v20 = vadd.s32 56, %v6479_v2  ;;  %s6015_s29 = sshll.u32 %s6419_s25, 4 }
  0x40   : > { %v850_v31 = vld [vmem:[#allocation2 + $0x18] sm:$0xff]  ;;  %v817_v32 = vsel %vm6549_vm4, %v721_v29, 0.0  ;;  %v1713_v34 = vsel %vm6492_vm3, %v721_v29, 0.0  ;;  %8872 = vst [vmem:[#allocation34_spill] sm:$0xff] %v6589_v46  ;;  %v1310_v55 = vld [vmem:[#allocation2 + $0x21] sm:$0xff]  ;;  %v853_v56 = vld [vmem:[#allocation2 + $0x30] sm:$0xff]  ;;  %s5316_s27 = scalar_lea.hbm %s8746_s10, %s6015_s29 }
  0x41   : > { %v1308_v39 = vld [vmem:[#allocation2 + $0x11] sm:$0xff]  ;;  %v6594_v49 = vld [vmem:[#allocation2 + $0x19] sm:$0xff]  ;;  %8873 = vst [vmem:[#allocation35_spill] sm:$0xff] %v6607_v53  ;;  %v1406_v58 = vsel %vm6610_vm7, %v1310_v55, 0.0  ;;  %v1311_v5 = vld [vmem:[#allocation2 + $0x29] sm:$0xff]  ;;  %v533_v27 = vand.u32 15, %v6659_v20 }
  0x42   : > { %v1404_v42 = vsel %vm6571_vm5, %v1308_v39, 0.0  ;;  %694 = vst.msk [vmem:[#allocation2 + $0x50] sm:$0xff] %vm473_vm0, %v662_v52  ;;  %v724_v57 = vld [vmem:[#allocation2 + $0x2f] sm:$0xff]  ;;  %v725_v62 = vld [vmem:[#allocation2 + $0x37] sm:$0xff]  ;;  %v668_v52 = vld [vmem:[%s6490_s15 + $0x68] sm:$0xff]  ;;  %v506_v55 = vadd.s32 96, %v6479_v2 }
  0x43   : > { %8876 = vst [vmem:[#allocation36_spill] sm:$0xff] %v8875_v54  ;;  %v854_v0 = vld [vmem:[#allocation2 + $0x38] sm:$0xff]  ;;  %v821_v3 = vsel %vm6622_vm8, %v725_v62, 0.0  ;;  %v1717_v6 = vsel %vm6583_vm6, %v725_v62, 0.0  ;;  %v666_v29 = vld [vmem:[%s6490_s15 + $0x58] sm:$0xff]  ;;  %vm6673_vm11 = vcmp.ne.s32.totalorder %v533_v27, 15 }
  0x44   : > { %695 = vst.msk [vmem:[#allocation2 + $0x58] sm:$0xff] %vm473_vm0, %v663_v60  ;;  %v1312_v11 = vld [vmem:[#allocation2 + $0x31] sm:$0xff]  ;;  %v855_v12 = vld [vmem:[#allocation2 + $0x40] sm:$0xff]  ;;  %v538_v62 = vand.u32 15, %v506_v55  ;;  %v8899_v27 = vmov 0  ;;  %v8904_v55 = vmov 0 }
  0x45   : > { %8879 = vst [vmem:[#allocation37_spill] sm:$0xff] %v6628_v63  ;;  %v726_v13 = vld [vmem:[#allocation2 + $0x3f] sm:$0xff]  ;;  %v1408_v14 = vsel %vm6642_vm9, %v1312_v11, 0.0  ;;  %s5319_s18 = sshll.u32 %s5316_s27, 4  ;;  %s5320_s18 = int_to_ptr.hbm [resolvable:$true] %s5319_s18 }
  0x46   : > { %5572 = vmatmul.msk.f32.gmra.mxu1 %vm473_vm0, %v817_v32  ;;  %5604 = vmatmul.msk.f32.vlgmr.msrb.gmra.mxu2 %vm473_vm0, %v1307_v33  ;;  %696 = vst.msk [vmem:[#allocation2 + $0x60] sm:$0xff] %vm473_vm0, %v664_v8  ;;  %v727_v18 = vld [vmem:[#allocation2 + $0x47] sm:$0xff]  ;;  %v1313_v25 = vld [vmem:[#allocation2 + $0x39] sm:$0xff]  ;;  %v8886_v32 = vmov 0  ;;  %vm6712_vm14 = vcmp.ne.s32.totalorder %v538_v62, 0 }
  0x47   : > { %5539 = vmatmul.msk.f32.gmra.mxu0 %vm473_vm0, %v850_v31  ;;  %5638 = vmatmul.msk.f32.vlgmr.msrb.gmra.mxu3 %vm473_vm0, %v1713_v34  ;;  %8882 = vst [vmem:[#allocation38_spill] sm:$0xff] %v8881_v10  ;;  %v856_v21 = vld [vmem:[#allocation2 + $0x48] sm:$0xff]  ;;  %v823_v22 = vsel %vm6653_vm10, %v727_v18, 0.0  ;;  %v1719_v26 = vsel %vm6622_vm8, %v727_v18, 0.0  ;;  %v504_v31 = vadd.s32 80, %v6479_v2  ;;  %v8887_v32 = vsel %vm6673_vm11, 4294967295, %v8886_v32 }
  0x48   : > { %697 = vst.msk [vmem:[#allocation2 + $0x68] sm:$0xff] %vm473_vm0, %v665_v16  ;;  %v1314_v33 = vld [vmem:[#allocation2 + $0x41] sm:$0xff] }
  0x49   : > { %8885 = vst [vmem:[#allocation39_spill] sm:$0xff] %v6659_v20  ;;  %v857_v34 = vld [vmem:[#allocation2 + $0x50] sm:$0xff]  ;;  %v1410_v36 = vsel %vm6673_vm11, %v1314_v33, 0.0  ;;  %v536_v39 = vand.u32 15, %v504_v31  ;;  %v507_v31 = vadd.s32 104, %v6479_v2 }
  0x4a   : > { %698 = vst.msk [vmem:[#allocation2 + $0x70] sm:$0xff] %vm473_vm0, %v666_v29  ;;  %v728_v35 = vld [vmem:[#allocation2 + $0x4f] sm:$0xff] }
  0x4b   : > { %8888 = vst [vmem:[#allocation40_spill] sm:$0xff] %v8887_v32  ;;  %vm6684_vm12 = vcmp.ne.s32.totalorder %v536_v39, 0  ;;  %v858_v44 = vld [vmem:[#allocation2 + $0x58] sm:$0xff]  ;;  %v539_v39 = vand.u32 15, %v507_v31  ;;  %v511_v31 = vadd.s32 136, %v6479_v2  ;;  %v7158_v10 = vld [vmem:[#allocation2 + $0x49] sm:$0xff] }
  0x4c   : > { %700 = vst.msk [vmem:[#allocation2 + $0x80] sm:$0xff] %vm473_vm0, %v668_v52  ;;  %v673_v52 = vld [vmem:[%s6490_s15 + $0x90] sm:$0xff] }
  0x4d   : > { %v730_v59 = vld [vmem:[#allocation2 + $0x5f] sm:$0xff]  ;;  %vm6757_vm2 = vcmp.ne.s32.totalorder %v539_v39, 15  ;;  %705 = vst.msk [vmem:[#allocation2 + $0xa8] sm:$0xff] %vm473_vm0, %v673_v52 }
  0x4e   : > { %5573 = vmatmul.msk.f32.gmra.mxu1 %vm473_vm0, %v722_v41  ;;  %5605 = vmatmul.msk.f32.gmra.mxu2 %vm473_vm0, %v1404_v42  ;;  %v729_v42 = vld [vmem:[#allocation2 + $0x57] sm:$0xff]  ;;  %v8902_v43 = vsel %vm6757_vm2, 4294967295, %v8901_v43 }
  0x4f   : > { %5540 = vmatmul.msk.f32.gmra.mxu0 %vm473_vm0, %v851_v40  ;;  %5639 = vmatmul.msk.f32.gmra.mxu3 %vm473_vm0, %v722_v41  ;;  %v667_v40 = vld [vmem:[%s6490_s15 + $0x60] sm:$0xff]  ;;  %v8889_v41 = vmov 0  ;;  %v860_v7 = vld [vmem:[#allocation2 + $0x68] sm:$0xff]  ;;  %8903 = vst [vmem:[#allocation43_spill] sm:$0xff] %v8902_v43 }
  0x50   : > { %v8890_v41 = vsel %vm6684_vm12, 4294967295, %v8889_v41  ;;  %699 = vst.msk [vmem:[#allocation2 + $0x78] sm:$0xff] %vm473_vm0, %v667_v40  ;;  %v1317_v9 = vld [vmem:[#allocation2 + $0x59] sm:$0xff]  ;;  %v1318_v16 = vld [vmem:[#allocation2 + $0x61] sm:$0xff] }
  0x51   : > { %v861_v18 = vld [vmem:[#allocation2 + $0x70] sm:$0xff]  ;;  %v672_v40 = vld [vmem:[%s6490_s15 + $0x88] sm:$0xff] }
  0x52   : > { %704 = vst.msk [vmem:[#allocation2 + $0xa0] sm:$0xff] %vm473_vm0, %v672_v40  ;;  %v7180_v32 = vld [vmem:[#allocation2 + $0x59] sm:$0xff] }
  0x56   : > { %5574 = vmatmul.msk.f32.gmra.mxu1 %vm473_vm0, %v819_v48  ;;  %5606 = vmatmul.msk.f32.gmra.mxu2 %vm473_vm0, %v6594_v49  ;;  %v1315_v48 = vld [vmem:[#allocation2 + $0x49] sm:$0xff] }
  0x57   : > { %5541 = vmatmul.msk.f32.gmra.mxu0 %vm473_vm0, %v852_v47  ;;  %5640 = vmatmul.msk.f32.gmra.mxu3 %vm473_vm0, %v1715_v50  ;;  %v825_v47 = vsel %vm6684_vm12, %v729_v42, 0.0  ;;  %v1721_v50 = vsel %vm6653_vm10, %v729_v42, 0.0  ;;  %v733_v29 = vld [vmem:[#allocation2 + $0x77] sm:$0xff]  ;;  %v510_v42 = vadd.s32 128, %v6479_v2 }
  0x58   : > { %v862_v33 = vld [vmem:[#allocation2 + $0x78] sm:$0xff] }
  0x59   : > { %v542_v51 = vand.u32 15, %v510_v42 }
  0x5e   : > { %5575 = vmatmul.msk.f32.gmra.mxu1 %vm473_vm0, %v724_v57  ;;  %5607 = vmatmul.msk.f32.gmra.mxu2 %vm473_vm0, %v1406_v58  ;;  %v859_v58 = vld [vmem:[#allocation2 + $0x60] sm:$0xff] }
  0x5f   : > { %5542 = vmatmul.msk.f32.gmra.mxu0 %vm473_vm0, %v853_v56  ;;  %5641 = vmatmul.msk.f32.gmra.mxu3 %vm473_vm0, %v724_v57  ;;  %v8891_v56 = vmov 0  ;;  %v1316_v57 = vld [vmem:[#allocation2 + $0x51] sm:$0xff] }
  0x60   : > { %v8892_v56 = vsel %vm6701_vm13, 4294967295, %v8891_v56  ;;  %v1412_v60 = vsel %vm6701_vm13, %v1316_v57, 0.0 }
  0x61   : > { %8893 = vst [vmem:[#allocation41_spill] sm:$0xff] %v8892_v56  ;;  %v7202_v56 = vld [vmem:[#allocation2 + $0x69] sm:$0xff] }
  0x66   : > { %5576 = vmatmul.msk.f32.gmra.mxu1 %vm473_vm0, %v821_v3  ;;  %5608 = vmatmul.msk.f32.gmra.mxu2 %vm473_vm0, %v1311_v5  ;;  %v8894_v3 = vmov 0  ;;  %v731_v5 = vld [vmem:[#allocation2 + $0x67] sm:$0xff] }
  0x67   : > { %5543 = vmatmul.msk.f32.gmra.mxu0 %vm473_vm0, %v854_v0  ;;  %5642 = vmatmul.msk.f32.gmra.mxu3 %vm473_vm0, %v1717_v6  ;;  %v669_v0 = vld [vmem:[%s6490_s15 + $0x70] sm:$0xff]  ;;  %v8895_v3 = vsel %vm6712_vm14, 4294967295, %v8894_v3  ;;  %v505_v6 = vadd.s32 88, %v6479_v2  ;;  %v827_v8 = vsel %vm6712_vm14, %v731_v5, 0.0  ;;  %v1723_v11 = vsel %vm6684_vm12, %v731_v5, 0.0  ;;  %v1321_v5 = vld [vmem:[#allocation2 + $0x79] sm:$0xff] }
  0x68   : > { %701 = vst.msk [vmem:[#allocation2 + $0x88] sm:$0xff] %vm473_vm0, %v669_v0 }
  0x6e   : > { %5577 = vmatmul.msk.f32.gmra.mxu1 %vm473_vm0, %v726_v13  ;;  %5609 = vmatmul.msk.f32.gmra.mxu2 %vm473_vm0, %v1408_v14  ;;  %v508_v14 = vadd.s32 112, %v6479_v2 }
  0x6f   : > { %5544 = vmatmul.msk.f32.gmra.mxu0 %vm473_vm0, %v855_v12  ;;  %5643 = vmatmul.msk.f32.gmra.mxu3 %vm473_vm0, %v726_v13  ;;  %v537_v12 = vand.u32 15, %v505_v6  ;;  %v670_v13 = vld [vmem:[%s6490_s15 + $0x78] sm:$0xff]  ;;  %v735_v57 = vld [vmem:[#allocation2 + $0x87] sm:$0xff] }
  0x70   : > { %702 = vst.msk [vmem:[#allocation2 + $0x90] sm:$0xff] %vm473_vm0, %v670_v13  ;;  %v864_v62 = vld [vmem:[#allocation2 + $0x88] sm:$0xff] }
  0x71   : > { %vm6729_vm15 = vcmp.ne.s32.totalorder %v537_v12, 15  ;;  %v1322_v12 = vld [vmem:[#allocation2 + $0x81] sm:$0xff] }
  0x72   : > { %v8897_v15 = vsel %vm6729_vm15, 4294967295, %v8896_v15 }
  0x73   : > { %8898 = vst [vmem:[#allocation42_spill] sm:$0xff] %v8897_v15  ;;  %v7224_v15 = vld [vmem:[#allocation2 + $0x79] sm:$0xff] }
  0x76   : > { %5578 = vmatmul.msk.f32.gmra.mxu1 %vm473_vm0, %v823_v22  ;;  %5610 = vmatmul.msk.f32.gmra.mxu2 %vm473_vm0, %v1313_v25  ;;  %v1414_v22 = vsel %vm6729_vm15, %v1318_v16, 0.0  ;;  %v540_v25 = vand.u32 15, %v508_v14 }
  0x77   : > { %5545 = vmatmul.msk.f32.gmra.mxu0 %vm473_vm0, %v856_v21  ;;  %5644 = vmatmul.msk.f32.gmra.mxu3 %vm473_vm0, %v1719_v26  ;;  %v732_v21 = vld [vmem:[#allocation2 + $0x6f] sm:$0xff]  ;;  %v671_v26 = vld [vmem:[%s6490_s15 + $0x80] sm:$0xff] }
  0x78   : > { %vm6740_vm1 = vcmp.ne.s32.totalorder %v540_v25, 0  ;;  %703 = vst.msk [vmem:[#allocation2 + $0x98] sm:$0xff] %vm473_vm0, %v671_v26  ;;  %v865_v16 = vld [vmem:[#allocation2 + $0x90] sm:$0xff]  ;;  %v675_v25 = vld [vmem:[%s6490_s15 + $0xa0] sm:$0xff]  ;;  %v8909_v26 = vmov 0 }
  0x79   : > { %v8900_v27 = vsel %vm6740_vm1, 4294967295, %v8899_v27  ;;  %v1727_v6 = vsel %vm6740_vm1, %v735_v57, 0.0  ;;  %707 = vst.msk [vmem:[#allocation2 + $0xb8] sm:$0xff] %vm473_vm0, %v675_v25  ;;  %v513_v25 = vadd.s32 152, %v6479_v2 }
  0x7e   : > { %5579 = vmatmul.msk.f32.gmra.mxu1 %vm473_vm0, %v728_v35  ;;  %5611 = vmatmul.msk.f32.gmra.mxu2 %vm473_vm0, %v1410_v36  ;;  %v1725_v36 = vsel %vm6712_vm14, %v733_v29, 0.0  ;;  %vm6768_vm14 = vcmp.ne.s32.totalorder %v542_v51, 0  ;;  %v514_v51 = vadd.s32 160, %v6479_v2 }
  0x7f   : > { %5546 = vmatmul.msk.f32.gmra.mxu0 %vm473_vm0, %v857_v34  ;;  %5645 = vmatmul.msk.f32.gmra.mxu3 %vm473_vm0, %v728_v35  ;;  %v829_v34 = vsel %vm6740_vm1, %v733_v29, 0.0  ;;  %v1319_v35 = vld [vmem:[#allocation2 + $0x69] sm:$0xff]  ;;  %v8905_v55 = vsel %vm6768_vm14, 4294967295, %v8904_v55  ;;  %v831_v0 = vsel %vm6768_vm14, %v735_v57, 0.0  ;;  %v737_v29 = vld [vmem:[#allocation2 + $0x97] sm:$0xff]  ;;  %v8911_v57 = vmov 0 }
  0x86   : > { %5580 = vmatmul.msk.f32.gmra.mxu1 %vm473_vm0, %v825_v47  ;;  %5612 = vmatmul.msk.f32.gmra.mxu2 %vm473_vm0, %v1315_v48  ;;  %v863_v47 = vld [vmem:[#allocation2 + $0x80] sm:$0xff] }
  0x87   : > { %5547 = vmatmul.msk.f32.gmra.mxu0 %vm473_vm0, %v858_v44  ;;  %5646 = vmatmul.msk.f32.gmra.mxu3 %vm473_vm0, %v1721_v50  ;;  %v1320_v44 = vld [vmem:[#allocation2 + $0x71] sm:$0xff]  ;;  %v734_v48 = vld [vmem:[#allocation2 + $0x7f] sm:$0xff] }
  0x88   : > { %v1416_v50 = vsel %vm6757_vm2, %v1320_v44, 0.0  ;;  %v1323_v44 = vld [vmem:[#allocation2 + $0x89] sm:$0xff] }
  0x8e   : > { %5581 = vmatmul.msk.f32.gmra.mxu1 %vm473_vm0, %v730_v59  ;;  %5613 = vmatmul.msk.f32.gmra.mxu2 %vm473_vm0, %v1412_v60 }
  0x8f   : > { %5548 = vmatmul.msk.f32.gmra.mxu0 %vm473_vm0, %v859_v58  ;;  %5647 = vmatmul.msk.f32.gmra.mxu3 %vm473_vm0, %v730_v59  ;;  %v509_v58 = vadd.s32 120, %v6479_v2 }
  0x96   : > { %5582 = vmatmul.msk.f32.gmra.mxu1 %vm473_vm0, %v827_v8  ;;  %5614 = vmatmul.msk.f32.gmra.mxu2 %vm473_vm0, %v1317_v9  ;;  %v674_v8 = vld [vmem:[%s6490_s15 + $0x98] sm:$0xff]  ;;  %v512_v9 = vadd.s32 144, %v6479_v2 }
  0x97   : > { %5549 = vmatmul.msk.f32.gmra.mxu0 %vm473_vm0, %v860_v7  ;;  %5648 = vmatmul.msk.f32.gmra.mxu3 %vm473_vm0, %v1723_v11  ;;  %v541_v7 = vand.u32 15, %v509_v58  ;;  %706 = vst.msk [vmem:[#allocation2 + $0xb0] sm:$0xff] %vm473_vm0, %v674_v8  ;;  %v8906_v11 = vmov 0  ;;  %v1324_v58 = vld [vmem:[#allocation2 + $0x91] sm:$0xff]  ;;  %v738_v8 = vld [vmem:[#allocation2 + $0x9f] sm:$0xff] }
  0x99   : > { %vm6785_vm12 = vcmp.ne.s32.totalorder %v541_v7, 15  ;;  %v867_v7 = vld [vmem:[#allocation2 + $0xa0] sm:$0xff] }
  0x9a   : > { %v8907_v11 = vsel %vm6785_vm12, 4294967295, %v8906_v11 }
  0x9b   : > { %8908 = vst [vmem:[#allocation44_spill] sm:$0xff] %v8907_v11 }
  0x9e   : > { %5583 = vmatmul.msk.f32.gmra.mxu1 %vm473_vm0, %v732_v21  ;;  %5615 = vmatmul.msk.f32.gmra.mxu2 %vm473_vm0, %v1414_v22  ;;  %v544_v22 = vand.u32 15, %v512_v9 }
  0x9f   : > { %5550 = vmatmul.msk.f32.gmra.mxu0 %vm473_vm0, %v861_v18  ;;  %5649 = vmatmul.msk.f32.gmra.mxu3 %vm473_vm0, %v732_v21  ;;  %v736_v18 = vld [vmem:[#allocation2 + $0x8f] sm:$0xff]  ;;  %v1418_v21 = vsel %vm6785_vm12, %v1322_v12, 0.0 }
  0xa0   : > { %vm6796_vm1 = vcmp.ne.s32.totalorder %v544_v22, 0 }
  0xa1   : > { %v8910_v26 = vsel %vm6796_vm1, 4294967295, %v8909_v26  ;;  %v833_v39 = vsel %vm6796_vm1, %v737_v29, 0.0 }
  0xa6   : > { %5584 = vmatmul.msk.f32.gmra.mxu1 %vm473_vm0, %v829_v34  ;;  %5616 = vmatmul.msk.f32.gmra.mxu2 %vm473_vm0, %v1319_v35 }
  0xa7   : > { %5551 = vmatmul.msk.f32.gmra.mxu0 %vm473_vm0, %v862_v33  ;;  %5650 = vmatmul.msk.f32.gmra.mxu3 %vm473_vm0, %v1725_v36  ;;  %v866_v36 = vld [vmem:[#allocation2 + $0x98] sm:$0xff] }
  0xae   : > { %5585 = vmatmul.msk.f32.gmra.mxu1 %vm473_vm0, %v734_v48  ;;  %5617 = vmatmul.msk.f32.gmra.mxu2 %vm473_vm0, %v1416_v50  ;;  %v676_v50 = vld [vmem:[%s6490_s15 + $0xa8] sm:$0xff] }
  0xaf   : > { %5552 = vmatmul.msk.f32.gmra.mxu0 %vm473_vm0, %v863_v47  ;;  %5651 = vmatmul.msk.f32.gmra.mxu3 %vm473_vm0, %v734_v48  ;;  %v1729_v47 = vsel %vm6768_vm14, %v737_v29, 0.0  ;;  %v543_v48 = vand.u32 15, %v511_v31  ;;  %708 = vst.msk [vmem:[#allocation2 + $0xc0] sm:$0xff] %vm473_vm0, %v676_v50 }
  0xb1   : > { %vm6815_vm12 = vcmp.ne.s32.totalorder %v543_v48, 15 }
  0xb2   : > { %v8912_v57 = vsel %vm6815_vm12, 4294967295, %v8911_v57  ;;  %v1420_v12 = vsel %vm6815_vm12, %v1324_v58, 0.0  ;;  %v8915_v58 = vmov 0 }
  0xb3   : > { %v1211_v60 = vpop.f32.mrf.mxu1 }
  0xb4   : > { %v999_v59 = vpop.f32.mrf.mxu0 }
  0xb5   : > { %v1212_v52 = vadd.f32 %v1211_v60, %v999_v59  ;;  %v677_v59 = vld [vmem:[%s6490_s15 + $0xb0] sm:$0xff]  ;;  %v8913_v60 = vmov 0 }
  0xb6   : > { %5586 = vmatmul.msk.f32.gmra.mxu1 %vm473_vm0, %v831_v0  ;;  %5618 = vmatmul.msk.f32.gmra.mxu2 %vm473_vm0, %v1321_v5  ;;  %709 = vst.msk [vmem:[#allocation2 + $0xc8] sm:$0xff] %vm473_vm0, %v677_v59 }
  0xb7   : > { %5553 = vmatmul.msk.f32.gmra.mxu0 %vm473_vm0, %v864_v62  ;;  %5652 = vmatmul.msk.f32.gmra.mxu3 %vm473_vm0, %v1727_v6 }
  0xbb   : > { %v1214_v14 = vpop.f32.mrf.mxu1 }
  0xbc   : > { %v1002_v13 = vpop.f32.mrf.mxu0 }
  0xbd   : > { %v1215_v22 = vadd.f32 %v1214_v14, %v1002_v13  ;;  %v678_v13 = vld [vmem:[%s6490_s15 + $0xb8] sm:$0xff]  ;;  %v516_v14 = vadd.s32 176, %v6479_v2 }
  0xbe   : > { %5587 = vmatmul.msk.f32.gmra.mxu1 %vm473_vm0, %v736_v18  ;;  %5619 = vmatmul.msk.f32.gmra.mxu2 %vm473_vm0, %v1418_v21  ;;  %v739_v21 = vld [vmem:[#allocation2 + $0xa7] sm:$0xff]  ;;  %710 = vst.msk [vmem:[#allocation2 + $0xd0] sm:$0xff] %vm473_vm0, %v678_v13 }
  0xbf   : > { %5554 = vmatmul.msk.f32.gmra.mxu0 %vm473_vm0, %v865_v16  ;;  %5653 = vmatmul.msk.f32.gmra.mxu3 %vm473_vm0, %v736_v18  ;;  %v546_v16 = vand.u32 15, %v514_v51  ;;  %v1731_v50 = vsel %vm6796_vm1, %v739_v21, 0.0  ;;  %v545_v51 = vand.u32 15, %v513_v25  ;;  %v8917_v25 = vmov 0 }
  0xc1   : > { %v1092_v33 = vpop.f32.mrf.mxu2  ;;  %vm6828_vm14 = vcmp.ne.s32.totalorder %v546_v16, 0  ;;  %vm6847_vm12 = vcmp.ne.s32.totalorder %v545_v51, 15  ;;  %v740_v16 = vld [vmem:[#allocation2 + $0xaf] sm:$0xff]  ;;  %v870_v51 = vld [vmem:[#allocation2 + $0xb8] sm:$0xff] }
  0xc2   : > { %v1304_v34 = vpop.f32.mrf.mxu3  ;;  %v8914_v60 = vsel %vm6828_vm14, 4294967295, %v8913_v60  ;;  %v8916_v58 = vsel %vm6847_vm12, 4294967295, %v8915_v58 }
  0xc3   : > { %v6804_v40 = vadd.f32 %v1304_v34, %v1092_v33  ;;  %v1217_v42 = vpop.f32.mrf.mxu1 }
  0xc4   : > { %v1005_v35 = vpop.f32.mrf.mxu0 }
  0xc5   : > { %v873_v1 = vld [vmem:[#allocation2 + $0xd0] sm:$0xff] }
  0xc6   : > { %5588 = vmatmul.msk.f32.gmra.mxu1 %vm473_vm0, %v833_v39  ;;  %5620 = vmatmul.msk.f32.gmra.mxu2 %vm473_vm0, %v1323_v44  ;;  %v835_v39 = vsel %vm6828_vm14, %v739_v21, 0.0  ;;  %v744_v24 = vld [vmem:[#allocation2 + $0xcf] sm:$0xff] }
  0xc7   : > { %5555 = vmatmul.msk.f32.gmra.mxu0 %vm473_vm0, %v866_v36  ;;  %5654 = vmatmul.msk.f32.gmra.mxu3 %vm473_vm0, %v1729_v47  ;;  %v868_v36 = vld [vmem:[#allocation2 + $0xa8] sm:$0xff]  ;;  %v1325_v47 = vld [vmem:[#allocation2 + $0x99] sm:$0xff] }
  0xc9   : > { %v1553_v62 = vpop.f32.mrf.mxu2 }
  0xca   : > { %v1649_v0 = vadd.f32 %v1553_v62, %v1212_v52  ;;  %v1863_v5 = vpop.f32.mrf.mxu3  ;;  %v1218_v52 = vadd.f32 %v1217_v42, %v1005_v35  ;;  %v6851_v62 = vld [vmem:[#allocation2 + $0xa1] sm:$0xff]  ;;  %v679_v42 = vld [vmem:[%s6490_s15 + $0xc0] sm:$0xff] }
  0xcb   : > { %v1220_v9 = vpop.f32.mrf.mxu1  ;;  %v1422_v21 = vsel %vm6847_vm12, %v6851_v62, 0.0  ;;  %711 = vst.msk [vmem:[#allocation2 + $0xd8] sm:$0xff] %vm473_vm0, %v679_v42 }
  0xcc   : > { %v1008_v6 = vpop.f32.mrf.mxu0  ;;  %v6821_v18 = vadd.f32 %v1863_v5, %v1649_v0 }
  0xce   : > { %5589 = vmatmul.msk.f32.gmra.mxu1 %vm473_vm0, %v738_v8  ;;  %5621 = vmatmul.msk.f32.gmra.mxu2 %vm473_vm0, %v1420_v12  ;;  %v869_v12 = vld [vmem:[#allocation2 + $0xb0] sm:$0xff] }
  0xcf   : > { %5556 = vmatmul.msk.f32.gmra.mxu0 %vm473_vm0, %v867_v7  ;;  %5655 = vmatmul.msk.f32.gmra.mxu3 %vm473_vm0, %v738_v8 }
  0xd1   : > { %v1556_v29 = vpop.f32.mrf.mxu2 }
  0xd2   : > { %v1650_v31 = vadd.f32 %v1556_v29, %v1215_v22  ;;  %v1866_v33 = vpop.f32.mrf.mxu3  ;;  %v548_v22 = vand.u32 15, %v516_v14  ;;  %v741_v29 = vld [vmem:[#allocation2 + $0xb7] sm:$0xff] }
  0xd3   : > { %v1223_v44 = vpop.f32.mrf.mxu1  ;;  %v874_v63 = vld [vmem:[#allocation2 + $0xd8] sm:$0xff] }
  0xd4   : > { %v1011_v34 = vpop.f32.mrf.mxu0  ;;  %v6836_v48 = vadd.f32 %v1866_v33, %v1650_v31  ;;  %vm6863_vm1 = vcmp.ne.s32.totalorder %v548_v22, 0  ;;  %v1221_v31 = vadd.f32 %v1220_v9, %v1008_v6  ;;  %v515_v33 = vadd.s32 168, %v6479_v2  ;;  %v680_v9 = vld [vmem:[%s6490_s15 + $0xc8] sm:$0xff] }
  0xd5   : > { %v8918_v25 = vsel %vm6863_vm1, 4294967295, %v8917_v25  ;;  %v837_v13 = vsel %vm6863_vm1, %v741_v29, 0.0  ;;  %712 = vst.msk [vmem:[#allocation2 + $0xe0] sm:$0xff] %vm473_vm0, %v680_v9  ;;  %v517_v9 = vadd.s32 184, %v6479_v2 }
  0xd6   : > { %5590 = vmatmul.msk.f32.gmra.mxu1 %vm473_vm0, %v835_v39  ;;  %5622 = vmatmul.msk.f32.gmra.mxu2 %vm473_vm0, %v1325_v47  ;;  %8919 = vst [vmem:[#allocation45_spill] sm:$0xff] %v8918_v25  ;;  %v547_v6 = vand.u32 15, %v515_v33  ;;  %v871_v33 = vld [vmem:[#allocation2 + $0xc0] sm:$0xff] }
  0xd7   : > { %5557 = vmatmul.msk.f32.gmra.mxu0 %vm473_vm0, %v868_v36  ;;  %5656 = vmatmul.msk.f32.gmra.mxu3 %vm473_vm0, %v1731_v50 }
  0xd8   : > { %vm6885_vm12 = vcmp.ne.s32.totalorder %v547_v6, 15 }
  0xd9   : > { %v1559_v0 = vpop.f32.mrf.mxu2 }
  0xda   : > { %v1651_v5 = vadd.f32 %v1559_v0, %v1218_v52  ;;  %v1869_v7 = vpop.f32.mrf.mxu3  ;;  %v6871_v52 = vld [vmem:[#allocation2 + $0xa9] sm:$0xff] }
  0xdb   : > { %v1226_v59 = vpop.f32.mrf.mxu1 }
  0xdc   : > { %v1014_v8 = vpop.f32.mrf.mxu0  ;;  %v6856_v35 = vadd.f32 %v1869_v7, %v1651_v5  ;;  %v1733_v5 = vsel %vm6828_vm14, %v741_v29, 0.0  ;;  %v518_v7 = vadd.s32 192, %v6479_v2  ;;  %v6971_v19 = vld [vmem:[#allocation2 + $0xe0] sm:$0xff] }
  0xdd   : > { %v1227_v6 = vadd.f32 %v1226_v59, %v1014_v8  ;;  %v549_v8 = vand.u32 15, %v517_v9  ;;  %v682_v59 = vld [vmem:[%s6490_s15 + $0xd8] sm:$0xff]  ;;  %8935 = vst [vmem:[#allocation49_spill] sm:$0xff] %v6971_v19  ;;  %v7002_v25 = vld [vmem:[#allocation2 + $0xd9] sm:$0xff] }
  0xde   : > { %5591 = vmatmul.msk.f32.gmra.mxu1 %vm473_vm0, %v740_v16  ;;  %5623 = vmatmul.msk.f32.gmra.mxu2 %vm473_vm0, %v1422_v21  ;;  %v6889_v21 = vld [vmem:[#allocation2 + $0xb1] sm:$0xff]  ;;  %714 = vst.msk [vmem:[#allocation2 + $0xf0] sm:$0xff] %vm473_vm0, %v682_v59 }
  0xdf   : > { %5558 = vmatmul.msk.f32.gmra.mxu0 %vm473_vm0, %v869_v12  ;;  %5657 = vmatmul.msk.f32.gmra.mxu3 %vm473_vm0, %v740_v16  ;;  %v1224_v12 = vadd.f32 %v1223_v44, %v1011_v34  ;;  %v8920_v16 = vmov 0  ;;  %v681_v44 = vld [vmem:[%s6490_s15 + $0xd0] sm:$0xff] }
  0xe0   : > { %v8921_v16 = vsel %vm6885_vm12, 4294967295, %v8920_v16  ;;  %713 = vst.msk [vmem:[#allocation2 + $0xe8] sm:$0xff] %vm473_vm0, %v681_v44 }
  0xe1   : > { %v1562_v36 = vpop.f32.mrf.mxu2 }
  0xe2   : > { %v1652_v39 = vadd.f32 %v1562_v36, %v1221_v31  ;;  %v1872_v47 = vpop.f32.mrf.mxu3  ;;  %v742_v36 = vld [vmem:[#allocation2 + $0xbf] sm:$0xff] }
  0xe3   : > { %v1229_v14 = vpop.f32.mrf.mxu1 }
  0xe4   : > { %v1017_v50 = vpop.f32.mrf.mxu0  ;;  %v6873_v0 = vadd.f32 %v1872_v47, %v1652_v39  ;;  %v1424_v47 = vsel %vm6885_vm12, %v6889_v21, 0.0  ;;  %vm6923_vm12 = vcmp.ne.s32.totalorder %v549_v8, 15 }
  0xe6   : > { %5592 = vmatmul.msk.f32.gmra.mxu1 %vm473_vm0, %v837_v13  ;;  %5624 = vmatmul.msk.f32.gmra.mxu2 %vm473_vm0, %v6871_v52  ;;  %v8922_v13 = vmov 0 }
  0xe7   : > { %5559 = vmatmul.msk.f32.gmra.mxu0 %vm473_vm0, %v870_v51  ;;  %5658 = vmatmul.msk.f32.gmra.mxu3 %vm473_vm0, %v1733_v5  ;;  %v550_v51 = vand.u32 15, %v518_v7  ;;  %v743_v5 = vld [vmem:[#allocation2 + $0xc7] sm:$0xff] }
  0xe8   : > { %v1735_v44 = vsel %vm6863_vm1, %v743_v5, 0.0 }
  0xe9   : > { %v1565_v22 = vpop.f32.mrf.mxu2  ;;  %vm6901_vm14 = vcmp.ne.s32.totalorder %v550_v51, 0 }
  0xea   : > { %v1653_v42 = vadd.f32 %v1565_v22, %v1224_v12  ;;  %v1875_v29 = vpop.f32.mrf.mxu3  ;;  %v8923_v13 = vsel %vm6901_vm14, 4294967295, %v8922_v13 }
  0xeb   : > { %v1232_v39 = vpop.f32.mrf.mxu1  ;;  %8924 = vst [vmem:[#allocation46_spill] sm:$0xff] %v8923_v13  ;;  %v6998_v13 = vld [vmem:[#allocation2 + $0xe8] sm:$0xff] }
  0xec   : > { %v1020_v31 = vpop.f32.mrf.mxu0  ;;  %v6894_v34 = vadd.f32 %v1875_v29, %v1653_v42  ;;  %v872_v29 = vld [vmem:[#allocation2 + $0xc8] sm:$0xff]  ;;  %8941 = vst [vmem:[#allocation52_spill] sm:$0xff] %v6998_v13 }
  0xed   : > { %v1233_v8 = vadd.f32 %v1232_v39, %v1020_v31  ;;  %v5738_v31 = vld [vmem:[%s8861_s1 + $0x18] sm:$0x7]  ;;  %v5772_v39 = vld [vmem:[%s8861_s1 + $0x1c] sm:$0x7] }
  0xee   : > { %5593 = vmatmul.msk.f32.gmra.mxu1 %vm473_vm0, %v742_v36  ;;  %5625 = vmatmul.msk.f32.gmra.mxu2 %vm473_vm0, %v1424_v47  ;;  %v6909_v47 = vld [vmem:[#allocation2 + $0xb9] sm:$0xff] }
  0xef   : > { %5560 = vmatmul.msk.f32.gmra.mxu0 %vm473_vm0, %v871_v33  ;;  %5659 = vmatmul.msk.f32.gmra.mxu3 %vm473_vm0, %v742_v36  ;;  %v839_v33 = vsel %vm6901_vm14, %v743_v5, 0.0  ;;  %v6927_v5 = vld [vmem:[#allocation2 + $0xc1] sm:$0xff] }
  0xf1   : > { %v1568_v7 = vpop.f32.mrf.mxu2 }
  0xf2   : > { %v1654_v12 = vadd.f32 %v1568_v7, %v1227_v6  ;;  %v1878_v22 = vpop.f32.mrf.mxu3  ;;  %v520_v6 = vadd.s32 208, %v6479_v2  ;;  %v1230_v7 = vadd.f32 %v1229_v14, %v1017_v50  ;;  %v8927_v50 = vmov 0  ;;  %v745_v14 = vld [vmem:[#allocation2 + $0xd7] sm:$0xff] }
  0xf3   : > { %v1235_v36 = vpop.f32.mrf.mxu1 }
  0xf4   : > { %v1023_v42 = vpop.f32.mrf.mxu0  ;;  %v6911_v51 = vadd.f32 %v1878_v22, %v1654_v12  ;;  %v8925_v12 = vmov 0  ;;  %v552_v53 = vand.u32 15, %v520_v6 }
  0xf5   : > { %v8926_v12 = vsel %vm6923_vm12, 4294967295, %v8925_v12 }
  0xf6   : > { %5594 = vmatmul.msk.f32.gmra.mxu1 %vm473_vm0, %v839_v33  ;;  %5626 = vmatmul.msk.f32.gmra.mxu2 %vm473_vm0, %v6909_v47  ;;  %vm6938_vm1 = vcmp.ne.s32.totalorder %v552_v53, 0  ;;  %v1737_v53 = vsel %vm6901_vm14, %v745_v14, 0.0  ;;  %vm8930_vm14 = vcmask 1042432  }
  0xf7   : > { %5561 = vmatmul.msk.f32.gmra.mxu0 %vm473_vm0, %v872_v29  ;;  %5660 = vmatmul.msk.f32.gmra.mxu3 %vm473_vm0, %v1735_v44  ;;  %v1426_v44 = vsel %vm6923_vm12, %v6927_v5, 0.0  ;;  %v8928_v50 = vsel %vm6938_vm1, 4294967295, %v8927_v50  ;;  %vm8934_vm2 = vmmov %vm8930_vm14 }
  0xf8   : > { %8929 = vst [vmem:[#allocation47_spill] sm:$0xff] %v8928_v50  ;;  %5739 = vmatpush.msk.msra.mxu2 %vm8930_vm14, %v5738_v31  ;;  %5773 = vmatpush.msk.msra.mxu3 %vm8934_vm2, %v5772_v39  ;;  %v5806_v31 = vld [vmem:[%s8861_s1 + $0x20] sm:$0x7]  ;;  %v8937_v39 = vmov 0  ;;  %v7023_v50 = vld [vmem:[#allocation2 + $0xf0] sm:$0xff] }
  0xf9   : > { %v1571_v9 = vpop.f32.mrf.mxu2  ;;  %5807 = vmatpush.msk.msra.mxu0 %vm8930_vm14, %v5806_v31  ;;  %8946 = vst [vmem:[#allocation55_spill] sm:$0xff] %v7023_v50 }
  0xfa   : > { %v1655_v22 = vadd.f32 %v1571_v9, %v1230_v7  ;;  %v1881_v29 = vpop.f32.mrf.mxu3  ;;  %v519_v7 = vadd.s32 200, %v6479_v2 }
  0xfb   : > { %v1238_v20 = vpop.f32.mrf.mxu1 }
  0xfc   : > { %v1026_v33 = vpop.f32.mrf.mxu0  ;;  %v6932_v59 = vadd.f32 %v1881_v29, %v1655_v22  ;;  %v551_v46 = vand.u32 15, %v519_v7  ;;  %v8931_v7 = vmov 0 }
  0xfe   : > { %5595 = vmatmul.msk.f32.gmra.mxu1 %vm473_vm0, %v744_v24  ;;  %5627 = vmatmul.msk.f32.gmra.mxu2 %vm473_vm0, %v1426_v44  ;;  %v6945_v44 = vld [vmem:[#allocation2 + $0xc9] sm:$0xff]  ;;  %vm6964_vm12 = vcmp.ne.s32.totalorder %v551_v46, 15 }
  0xff   : > { %5562 = vmatmul.msk.f32.gmra.mxu0 %vm473_vm0, %v873_v1  ;;  %5661 = vmatmul.msk.f32.gmra.mxu3 %vm473_vm0, %v744_v24  ;;  %v841_v1 = vsel %vm6938_vm1, %v745_v14, 0.0  ;;  %v522_v14 = vadd.s32 224, %v6479_v2  ;;  %v8932_v7 = vsel %vm6964_vm12, 4294967295, %v8931_v7 }
 0x100   : > { %8933 = vst [vmem:[#allocation48_spill] sm:$0xff] %v8932_v7 }
 0x101   : > { %v1574_v9 = vpop.f32.mrf.mxu2 }
 0x102   : > { %v1656_v6 = vadd.f32 %v1574_v9, %v1233_v8  ;;  %v1884_v22 = vpop.f32.mrf.mxu3  ;;  %v1236_v8 = vadd.f32 %v1235_v36, %v1023_v42  ;;  %v554_v42 = vand.u32 15, %v522_v14  ;;  %v747_v14 = vld [vmem:[#allocation2 + $0xe7] sm:$0xff] }
 0x103   : > { %v1241_v37 = vpop.f32.mrf.mxu1 }
 0x104   : > { %v1029_v29 = vpop.f32.mrf.mxu0  ;;  %v6947_v24 = vadd.f32 %v1884_v22, %v1656_v6  ;;  %vm6986_vm2 = vcmp.ne.s32.totalorder %v554_v42, 0 }
 0x105   : > { %v8938_v39 = vsel %vm6986_vm2, 4294967295, %v8937_v39  ;;  %v843_v31 = vsel %vm6986_vm2, %v747_v14, 0.0 }
 0x106   : > { %5596 = vmatmul.msk.f32.gmra.mxu1 %vm473_vm0, %v841_v1  ;;  %5628 = vmatmul.msk.f32.gmra.mxu2 %vm473_vm0, %v6945_v44  ;;  %8939 = vst [vmem:[#allocation51_spill] sm:$0xff] %v8938_v39 }
 0x107   : > { %5563 = vmatmul.msk.f32.gmra.mxu0 %vm473_vm0, %v874_v63  ;;  %5662 = vmatmul.msk.f32.gmra.mxu3 %vm473_vm0, %v1737_v53  ;;  %v6968_v63 = vld [vmem:[#allocation2 + $0xd1] sm:$0xff]  ;;  %v746_v53 = vld [vmem:[#allocation2 + $0xdf] sm:$0xff] }
 0x108   : > { %v1428_v46 = vsel %vm6964_vm12, %v6968_v63, 0.0  ;;  %vm8940_vm12 = vmmov %vm8930_vm14 }
 0x109   : > { %v1577_v9 = vpop.f32.mrf.mxu2 }
 0x10a   : > { %v1657_v6 = vadd.f32 %v1577_v9, %v1236_v8  ;;  %v1887_v22 = vpop.f32.mrf.mxu3  ;;  %v5704_v8 = vld [vmem:[%s8861_s1 + $0x14] sm:$0x7]  ;;  %s6176_s1 = sshra.s32 %s5320_s18, 4  ;;  %s6177_s1 = int_to_ptr.hbm [resolvable:$true] %s6176_s1 }
 0x10b   : > { %v1244_v30 = vpop.f32.mrf.mxu1  ;;  %v685_v9 = vld [vmem:[%s6490_s15 + $0xf0] sm:$0xff]  ;;  %5705 = vmatpush.msk.msrb.mxu1 %vm8940_vm12, %v5704_v8  ;;  %p6183_p3 = scmp.lt.s32.totalorder %s6177_s1, %s8746_s10 }
 0x10c   : > { %v1032_v1 = vpop.f32.mrf.mxu0  ;;  %v6976_v36 = vadd.f32 %v1887_v22, %v1657_v6  ;;  %v1239_v6 = vadd.f32 %v1238_v20, %v1026_v33  ;;  %v521_v22 = vadd.s32 216, %v6479_v2  ;;  %717 = vst.msk [vmem:[#allocation2 + $0x108] sm:$0xff] %vm473_vm0, %v685_v9  ;;  %v1739_v33 = vsel %vm6938_vm1, %v747_v14, 0.0  ;;  %v7020_v14 = vld [vmem:[#allocation2 + $0xe1] sm:$0xff] }
 0x10d   : > { %v524_v9 = vadd.s32 240, %v6479_v2 }
 0x10e   : > { %8936 = vst [vmem:[#allocation50_spill] sm:$0xff] %v6976_v36  ;;  %5597 = vmatmul.msk.f32.gmra.mxu1 %vm473_vm0, %v746_v53  ;;  %5629 = vmatmul.msk.f32.gmra.mxu2 %vm473_vm0, %v1428_v46  ;;  %v553_v8 = vand.u32 15, %v521_v22 }
 0x10f   : > { %5564 = vmatmul.msk.f32.gmra.mxu0 %vm473_vm0, %v6971_v19  ;;  %5663 = vmatmul.msk.f32.gmra.mxu3 %vm473_vm0, %v746_v53 }
 0x110   : > { %vm7016_vm12 = vcmp.ne.s32.totalorder %v553_v8, 15 }
 0x111   : > { %v1580_v53 = vpop.f32.mrf.mxu2 }
 0x112   : > { %v1658_v46 = vadd.f32 %v1580_v53, %v1239_v6  ;;  %v1890_v42 = vpop.f32.mrf.mxu3  ;;  %v686_v6 = vld [vmem:[%s6490_s15 + $0xf8] sm:$0xff]  ;;  %v1242_v53 = vadd.f32 %v1241_v37, %v1029_v29  ;;  %v1430_v37 = vsel %vm7016_vm12, %v7020_v14, 0.0  ;;  %v556_v29 = vand.u32 15, %v524_v9  ;;  %s8326_s15 = scalar_lea.vmem [#allocation16], %s5531_s19  ;;  %s6014_s19 = sshll.u32 %s6419_s25, 6 }
 0x113   : > { %v1247_v19 = vpop.f32.mrf.mxu1  ;;  %718 = vst.msk [vmem:[#allocation2 + $0x110] sm:$0xff] %vm473_vm0, %v686_v6  ;;  %v8949_v6 = vmov 0  ;;  %v1245_v9 = vadd.f32 %v1244_v30, %v1032_v1  ;;  %s5317_s17 = sshll.u32 %s8326_s15, 4  ;;  %s5318_s17 = int_to_ptr.vmem [resolvable:$true] %s5317_s17 }
 0x114   : > { %v1035_v36 = vpop.f32.mrf.mxu0  ;;  %v7004_v20 = vadd.f32 %v1890_v42, %v1658_v46  ;;  %v8943_v46 = vmov 0  ;;  %vm7039_vm14 = vcmp.ne.s32.totalorder %v556_v29, 0  ;;  %v7051_v29 = vld [vmem:[#allocation2 + $0xe9] sm:$0xff] }
 0x115   : > { %v8944_v46 = vsel %vm7016_vm12, 4294967295, %v8943_v46  ;;  %v8950_v6 = vsel %vm7039_vm14, 4294967295, %v8949_v6  ;;  %8954 = vst [vmem:[#allocation61_spill] sm:$0xff] %v7051_v29 }
 0x116   : > { %8942 = vst [vmem:[#allocation53_spill] sm:$0xff] %v7004_v20  ;;  %5598 = vmatmul.msk.f32.gmra.mxu1 %vm473_vm0, %v843_v31  ;;  %5630 = vmatmul.msk.f32.gmra.mxu2 %vm473_vm0, %v7002_v25 }
 0x117   : > { %5565 = vmatmul.msk.f32.gmra.mxu0 %vm473_vm0, %v6998_v13  ;;  %5664 = vmatmul.msk.f32.gmra.mxu3 %vm473_vm0, %v1739_v33  ;;  %8945 = vst [vmem:[#allocation54_spill] sm:$0xff] %v8944_v46  ;;  %v7025_v13 = vld [vmem:[#allocation2 + $0xef] sm:$0xff]  ;;  %v7046_v46 = vld [vmem:[#allocation2 + $0xf8] sm:$0xff] }
 0x118   : > { %8947 = vst [vmem:[#allocation56_spill] sm:$0xff] %v7025_v13 }
 0x119   : > { %v1583_v22 = vpop.f32.mrf.mxu2  ;;  %8951 = vst [vmem:[#allocation58_spill] sm:$0xff] %v8950_v6 }
 0x11a   : > { %v1659_v42 = vadd.f32 %v1583_v22, %v1242_v53  ;;  %v1893_v31 = vpop.f32.mrf.mxu3  ;;  %v7043_v53 = vld [vmem:[#allocation2 + $0xf7] sm:$0xff]  ;;  %v523_v22 = vadd.s32 232, %v6479_v2  ;;  %8953 = vst [vmem:[#allocation60_spill] sm:$0xff] %v7046_v46 }
 0x11b   : > { %v1250_v33 = vpop.f32.mrf.mxu1  ;;  %8952 = vst [vmem:[#allocation59_spill] sm:$0xff] %v7043_v53  ;;  %v1741_v30 = vsel %vm6986_vm2, %v7043_v53, 0.0 }
 0x11c   : > { %v1038_v20 = vpop.f32.mrf.mxu0  ;;  %v7030_v8 = vadd.f32 %v1893_v31, %v1659_v42  ;;  %v555_v1 = vand.u32 15, %v523_v22 }
 0x11e   : > { %8948 = vst [vmem:[#allocation57_spill] sm:$0xff] %v7030_v8  ;;  %5599 = vmatmul.msk.f32.gmra.mxu1 %vm473_vm0, %v7025_v13  ;;  %5631 = vmatmul.msk.f32.gmra.mxu2 %vm473_vm0, %v1430_v37  ;;  %v845_v37 = vsel %vm7039_vm14, %v7043_v53, 0.0  ;;  %vm7064_vm1 = vcmp.ne.s32.totalorder %v555_v1, 15  ;;  %v1991_v53 = vld [vmem:[#allocation2 + $0x18] sm:$0xff]  ;;  %v525_v1 = vadd.s32 248, %v6479_v2  ;;  %v1993_v2 = vld [vmem:[#allocation2 + $0x28] sm:$0xff] }
 0x11f   : > { %5566 = vmatmul.msk.f32.gmra.mxu0 %vm473_vm0, %v7023_v50  ;;  %5665 = vmatmul.msk.f32.gmra.mxu3 %vm473_vm0, %v7025_v13 }
 0x121   : > { %v1586_v42 = vpop.f32.mrf.mxu2 }
 0x122   : > { %v1660_v31 = vadd.f32 %v1586_v42, %v1245_v9  ;;  %v1896_v8 = vpop.f32.mrf.mxu3  ;;  %v1248_v9 = vadd.f32 %v1247_v19, %v1035_v36  ;;  %v8956_v42 = vmov 0  ;;  %v2270_v19 = vld [vmem:[#allocation2 + $0x21] sm:$0xff]  ;;  %v1251_v36 = vadd.f32 %v1250_v33, %v1038_v20 }
 0x123   : > { %v1253_v13 = vpop.f32.mrf.mxu1  ;;  %v8957_v42 = vsel %vm7064_vm1, 4294967295, %v8956_v42  ;;  %v557_v33 = vand.u32 15, %v525_v1 }
 0x124   : > { %v1041_v50 = vpop.f32.mrf.mxu0  ;;  %v7053_v7 = vadd.f32 %v1896_v8, %v1660_v31  ;;  %8958 = vst [vmem:[#allocation63_spill] sm:$0xff] %v8957_v42  ;;  %v7068_v8 = vld [vmem:[#allocation2 + $0xf1] sm:$0xff]  ;;  %v1992_v42 = vld [vmem:[#allocation2 + $0x20] sm:$0xff] }
 0x125   : > { %8959 = vst [vmem:[#allocation64_spill] sm:$0xff] %v7068_v8 }
 0x126   : > { %8955 = vst [vmem:[#allocation62_spill] sm:$0xff] %v7053_v7  ;;  %5600 = vmatmul.msk.f32.gmra.mxu1 %vm473_vm0, %v845_v37  ;;  %5632 = vmatmul.msk.f32.gmra.mxu2 %vm473_vm0, %v7051_v29  ;;  %v1432_v37 = vsel %vm7064_vm1, %v7068_v8, 0.0  ;;  %v7088_v8 = vld [vmem:[#allocation2 + $0xf9] sm:$0xff] }
 0x127   : > { %5567 = vmatmul.msk.f32.gmra.mxu0 %vm473_vm0, %v7046_v46  ;;  %5666 = vmatmul.msk.f32.gmra.mxu3 %vm473_vm0, %v1741_v30  ;;  %v7075_v30 = vld [vmem:[#allocation2 + $0xff] sm:$0xff] }
 0x129   : > { %v1589_v31 = vpop.f32.mrf.mxu2 }
 0x12a   : > { %v1661_v7 = vadd.f32 %v1589_v31, %v1248_v9  ;;  %v1899_v22 = vpop.f32.mrf.mxu3  ;;  %v7084_v31 = vld [vmem:[#allocation2 + $0x107] sm:$0xff] }
 0x12b   : > { %v1256_v46 = vpop.f32.mrf.mxu1  ;;  %8961 = vst [vmem:[#allocation66_spill] sm:$0xff] %v7084_v31  ;;  %v1743_v20 = vsel %vm7039_vm14, %v7084_v31, 0.0 }
 0x12c   : > { %v1044_v39 = vpop.f32.mrf.mxu0  ;;  %v7073_v29 = vadd.f32 %v1899_v22, %v1661_v7 }
 0x12e   : > { %8960 = vst [vmem:[#allocation65_spill] sm:$0xff] %v7073_v29  ;;  %5706 = vmatmul.msk.f32.vlgmr.msrb.gmra.mxu1 %vm473_vm0, %v6594_v49  ;;  %5633 = vmatmul.msk.f32.gmra.mxu2 %vm473_vm0, %v1432_v37 }
 0x12f   : > { %5672 = vmatmul.msk.f32.vlgmr.msrb.gmra.mxu0 %vm473_vm0, %v1991_v53  ;;  %5667 = vmatmul.msk.f32.gmra.mxu3 %vm473_vm0, %v7075_v30  ;;  %v2302_v53 = vsel %vm6571_vm5, %v2270_v19, 0.0  ;;  %v1254_v19 = vadd.f32 %v1253_v13, %v1041_v50  ;;  %vm7100_vm5 = vcmp.ne.s32.totalorder %v557_v33, 15  ;;  %v7113_v13 = vld [vmem:[#allocation2 + $0x10f] sm:$0xff]  ;;  %v1257_v33 = vadd.f32 %v1256_v46, %v1044_v39 }
 0x130   : > { %8967 = vst [vmem:[#allocation70_spill] sm:$0xff] %v7113_v13  ;;  %v7121_v50 = vld [vmem:[#allocation2 + $0x31] sm:$0xff]  ;;  %v8970_v39 = vsel %vm6492_vm3, %v6539_v23, 0.0  ;;  %vm8980_vm3 = vnez %v8902_v43  ;;  %v7246_v43 = vld [vmem:[#allocation2 + $0x89] sm:$0xff] }
 0x131   : > { %v1592_v9 = vpop.f32.mrf.mxu2  ;;  %8968 = vst [vmem:[#allocation71_spill] sm:$0xff] %v7121_v50  ;;  %v2581_v23 = vld [vmem:[#allocation2 + $0x37] sm:$0xff] }
 0x132   : > { %v1662_v7 = vadd.f32 %v1592_v9, %v1251_v36  ;;  %v1902_v22 = vpop.f32.mrf.mxu3  ;;  %v8963_v36 = vmov 0  ;;  %v7104_v9 = vld [vmem:[#allocation2 + $0x101] sm:$0xff] }
 0x133   : > { %v1259_v49 = vpop.f32.mrf.mxu1  ;;  %v8964_v36 = vsel %vm7100_vm5, 4294967295, %v8963_v36  ;;  %v1434_v6 = vsel %vm7100_vm5, %v7104_v9, 0.0 }
 0x134   : > { %v1047_v29 = vpop.f32.mrf.mxu0  ;;  %v7090_v37 = vadd.f32 %v1902_v22, %v1662_v7  ;;  %8965 = vst [vmem:[#allocation68_spill] sm:$0xff] %v8964_v36 }
 0x135   : > { %v1260_v46 = vadd.f32 %v1259_v49, %v1047_v29 }
 0x136   : > { %8962 = vst [vmem:[#allocation67_spill] sm:$0xff] %v7090_v37  ;;  %5707 = vmatmul.msk.f32.gmra.mxu1 %vm473_vm0, %v2302_v53  ;;  %5634 = vmatmul.msk.f32.gmra.mxu2 %vm473_vm0, %v7088_v8 }
 0x137   : > { %5673 = vmatmul.msk.f32.gmra.mxu0 %vm473_vm0, %v1992_v42  ;;  %5668 = vmatmul.msk.f32.gmra.mxu3 %vm473_vm0, %v1743_v20  ;;  %v7106_v42 = vld [vmem:[#allocation2 + $0x29] sm:$0xff] }
 0x139   : > { %v1595_v7 = vpop.f32.mrf.mxu2 }
 0x13a   : > { %v1663_v22 = vadd.f32 %v1595_v7, %v1254_v19  ;;  %v1905_v37 = vpop.f32.mrf.mxu3 }
 0x13b   : > { %v1262_v53 = vpop.f32.mrf.mxu1 }
 0x13c   : > { %v1050_v1 = vpop.f32.mrf.mxu0  ;;  %v7111_v20 = vadd.f32 %v1905_v37, %v1663_v22  ;;  %v1994_v22 = vld [vmem:[#allocation2 + $0x30] sm:$0xff] }
 0x13d   : > { %v1263_v4 = vadd.f32 %v1262_v53, %v1050_v1 }
 0x13e   : > { %8966 = vst [vmem:[#allocation69_spill] sm:$0xff] %v7111_v20  ;;  %5708 = vmatmul.msk.f32.gmra.mxu1 %vm473_vm0, %v7106_v42  ;;  %5635 = vmatmul.msk.f32.gmra.mxu2 %vm473_vm0, %v1434_v6  ;;  %v2304_v20 = vsel %vm6610_vm7, %v7121_v50, 0.0  ;;  %v1995_v50 = vld [vmem:[#allocation2 + $0x38] sm:$0xff] }
 0x13f   : > { %5674 = vmatmul.msk.f32.gmra.mxu0 %vm473_vm0, %v1993_v2  ;;  %5669 = vmatmul.msk.f32.gmra.mxu3 %vm473_vm0, %v7113_v13 }
 0x141   : > { %v1598_v19 = vpop.f32.mrf.mxu2 }
 0x142   : > { %v1664_v7 = vadd.f32 %v1598_v19, %v1257_v33  ;;  %v1908_v38 = vpop.f32.mrf.mxu3 }
 0x143   : > { %v1265_v31 = vpop.f32.mrf.mxu1 }
 0x144   : > { %v1053_v37 = vpop.f32.mrf.mxu0  ;;  %v7126_v36 = vadd.f32 %v1908_v38, %v1664_v7  ;;  %v7136_v38 = vld [vmem:[#allocation2 + $0x39] sm:$0xff] }
 0x145   : > { %v1266_v1 = vadd.f32 %v1265_v31, %v1053_v37  ;;  %v7167_v31 = vld [vmem:[#allocation2 + $0x51] sm:$0xff]  ;;  %v2583_v37 = vld [vmem:[#allocation2 + $0x47] sm:$0xff] }
 0x146   : > { %8969 = vst [vmem:[#allocation72_spill] sm:$0xff] %v7126_v36  ;;  %5709 = vmatmul.msk.f32.gmra.mxu1 %vm473_vm0, %v2304_v20  ;;  %5740 = vmatmul.msk.f32.vlgmr.msra.gmra.mxu2 %vm473_vm0, %v8970_v39  ;;  %v2580_v36 = vld [vmem:[#allocation2 + $0x2f] sm:$0xff] }
 0x147   : > { %5675 = vmatmul.msk.f32.gmra.mxu0 %vm473_vm0, %v1994_v22  ;;  %5774 = vmatmul.msk.f32.vlgmr.msra.gmra.mxu3 %vm473_vm0, %v1993_v2  ;;  %v7145_v2 = vld [vmem:[#allocation2 + $0x41] sm:$0xff] }
 0x149   : > { %v1601_v6 = vpop.f32.mrf.mxu2 }
 0x14a   : > { %v1665_v33 = vadd.f32 %v1601_v6, %v1260_v46  ;;  %v1911_v19 = vpop.f32.mrf.mxu3  ;;  %v1996_v46 = vld [vmem:[#allocation2 + $0x40] sm:$0xff]  ;;  %v2306_v6 = vsel %vm6642_vm9, %v7145_v2, 0.0 }
 0x14b   : > { %v1268_v7 = vpop.f32.mrf.mxu1 }
 0x14c   : > { %v1056_v54 = vpop.f32.mrf.mxu0  ;;  %v7138_v13 = vadd.f32 %v1911_v19, %v1665_v33  ;;  %v2613_v19 = vsel %vm6549_vm4, %v2581_v23, 0.0  ;;  %v2582_v23 = vld [vmem:[#allocation2 + $0x3f] sm:$0xff]  ;;  %vm8981_vm4 = vnez %v8890_v41 }
 0x14e   : > { %8971 = vst [vmem:[#allocation73_spill] sm:$0xff] %v7138_v13  ;;  %5710 = vmatmul.msk.f32.gmra.mxu1 %vm473_vm0, %v7136_v38  ;;  %5741 = vmatmul.msk.f32.gmra.mxu2 %vm473_vm0, %v2580_v36  ;;  %v1997_v13 = vld [vmem:[#allocation2 + $0x48] sm:$0xff] }
 0x14f   : > { %5676 = vmatmul.msk.f32.gmra.mxu0 %vm473_vm0, %v1995_v50  ;;  %5775 = vmatmul.msk.f32.gmra.mxu3 %vm473_vm0, %v1994_v22 }
 0x151   : > { %v1604_v29 = vpop.f32.mrf.mxu2 }
 0x152   : > { %v1666_v49 = vadd.f32 %v1604_v29, %v1263_v4  ;;  %v1914_v20 = vpop.f32.mrf.mxu3 }
 0x153   : > { %v1271_v33 = vpop.f32.mrf.mxu1 }
 0x154   : > { %v1059_v39 = vpop.f32.mrf.mxu0  ;;  %v7152_v36 = vadd.f32 %v1914_v20, %v1666_v49 }
 0x156   : > { %8972 = vst [vmem:[#allocation74_spill] sm:$0xff] %v7152_v36  ;;  %5711 = vmatmul.msk.f32.gmra.mxu1 %vm473_vm0, %v2306_v6  ;;  %5742 = vmatmul.msk.f32.gmra.mxu2 %vm473_vm0, %v2613_v19  ;;  %v1999_v36 = vld [vmem:[#allocation2 + $0x58] sm:$0xff] }
 0x157   : > { %5677 = vmatmul.msk.f32.gmra.mxu0 %vm473_vm0, %v1996_v46  ;;  %5776 = vmatmul.msk.f32.gmra.mxu3 %vm473_vm0, %v1995_v50  ;;  %v1269_v50 = vadd.f32 %v1268_v7, %v1056_v54  ;;  %v1272_v54 = vadd.f32 %v1271_v33, %v1059_v39  ;;  %v2585_v33 = vld [vmem:[#allocation2 + $0x57] sm:$0xff] }
 0x159   : > { %v1607_v53 = vpop.f32.mrf.mxu2 }
 0x15a   : > { %v1667_v22 = vadd.f32 %v1607_v53, %v1266_v1  ;;  %v1917_v4 = vpop.f32.mrf.mxu3  ;;  %v1998_v53 = vld [vmem:[#allocation2 + $0x50] sm:$0xff] }
 0x15b   : > { %v1274_v28 = vpop.f32.mrf.mxu1 }
 0x15c   : > { %v1062_v29 = vpop.f32.mrf.mxu0  ;;  %v7160_v49 = vadd.f32 %v1917_v4, %v1667_v22  ;;  %v2308_v22 = vsel %vm6673_vm11, %v7167_v31, 0.0 }
 0x15d   : > { %v1275_v39 = vadd.f32 %v1274_v28, %v1062_v29 }
 0x15e   : > { %8973 = vst [vmem:[#allocation75_spill] sm:$0xff] %v7160_v49  ;;  %5712 = vmatmul.msk.f32.gmra.mxu1 %vm473_vm0, %v7158_v10  ;;  %5743 = vmatmul.msk.f32.gmra.mxu2 %vm473_vm0, %v2582_v23  ;;  %v2615_v49 = vsel %vm6583_vm6, %v2583_v37, 0.0  ;;  %v2584_v37 = vld [vmem:[#allocation2 + $0x4f] sm:$0xff]  ;;  %vm8984_vm6 = vnez %v8907_v11  ;;  %v7268_v11 = vld [vmem:[#allocation2 + $0x99] sm:$0xff] }
 0x15f   : > { %5678 = vmatmul.msk.f32.gmra.mxu0 %vm473_vm0, %v1997_v13  ;;  %5777 = vmatmul.msk.f32.gmra.mxu3 %vm473_vm0, %v1996_v46 }
 0x161   : > { %v1610_v20 = vpop.f32.mrf.mxu2 }
 0x162   : > { %v1668_v6 = vadd.f32 %v1610_v20, %v1269_v50  ;;  %v1920_v19 = vpop.f32.mrf.mxu3 }
 0x163   : > { %v1277_v4 = vpop.f32.mrf.mxu1 }
 0x164   : > { %v1065_v1 = vpop.f32.mrf.mxu0  ;;  %v7174_v23 = vadd.f32 %v1920_v19, %v1668_v6 }
 0x165   : > { %v1278_v29 = vadd.f32 %v1277_v4, %v1065_v1  ;;  %v2587_v4 = vld [vmem:[#allocation2 + $0x67] sm:$0xff] }
 0x166   : > { %8974 = vst [vmem:[#allocation76_spill] sm:$0xff] %v7174_v23  ;;  %5713 = vmatmul.msk.f32.gmra.mxu1 %vm473_vm0, %v2308_v22  ;;  %5744 = vmatmul.msk.f32.gmra.mxu2 %vm473_vm0, %v2615_v49  ;;  %v2001_v23 = vld [vmem:[#allocation2 + $0x68] sm:$0xff] }
 0x167   : > { %5679 = vmatmul.msk.f32.gmra.mxu0 %vm473_vm0, %v1998_v53  ;;  %5778 = vmatmul.msk.f32.gmra.mxu3 %vm473_vm0, %v1997_v13  ;;  %v7189_v13 = vld [vmem:[#allocation2 + $0x61] sm:$0xff] }
 0x169   : > { %v1613_v7 = vpop.f32.mrf.mxu2 }
 0x16a   : > { %v1669_v46 = vadd.f32 %v1613_v7, %v1272_v54  ;;  %v1923_v50 = vpop.f32.mrf.mxu3  ;;  %v2000_v7 = vld [vmem:[#allocation2 + $0x60] sm:$0xff] }
 0x16b   : > { %v1280_v45 = vpop.f32.mrf.mxu1 }
 0x16c   : > { %v1068_v20 = vpop.f32.mrf.mxu0  ;;  %v7182_v6 = vadd.f32 %v1923_v50, %v1669_v46  ;;  %v2310_v46 = vsel %vm6701_vm13, %v7189_v13, 0.0 }
 0x16d   : > { %v1281_v1 = vadd.f32 %v1280_v45, %v1068_v20 }
 0x16e   : > { %8975 = vst [vmem:[#allocation77_spill] sm:$0xff] %v7182_v6  ;;  %5714 = vmatmul.msk.f32.gmra.mxu1 %vm473_vm0, %v7180_v32  ;;  %5745 = vmatmul.msk.f32.gmra.mxu2 %vm473_vm0, %v2584_v37  ;;  %v2617_v6 = vsel %vm6622_vm8, %v2585_v33, 0.0  ;;  %v2586_v33 = vld [vmem:[#allocation2 + $0x5f] sm:$0xff]  ;;  %vm8985_vm8 = vnez %v8895_v3 }
 0x16f   : > { %5680 = vmatmul.msk.f32.gmra.mxu0 %vm473_vm0, %v1999_v36  ;;  %5779 = vmatmul.msk.f32.gmra.mxu3 %vm473_vm0, %v1998_v53 }
 0x171   : > { %v1616_v49 = vpop.f32.mrf.mxu2 }
 0x172   : > { %v1670_v19 = vadd.f32 %v1616_v49, %v1275_v39  ;;  %v1926_v22 = vpop.f32.mrf.mxu3 }
 0x173   : > { %v1283_v50 = vpop.f32.mrf.mxu1 }
 0x174   : > { %v1071_v54 = vpop.f32.mrf.mxu0  ;;  %v7196_v37 = vadd.f32 %v1926_v22, %v1670_v19 }
 0x175   : > { %v1284_v20 = vadd.f32 %v1283_v50, %v1071_v54  ;;  %v2589_v50 = vld [vmem:[#allocation2 + $0x77] sm:$0xff] }
 0x176   : > { %8976 = vst [vmem:[#allocation78_spill] sm:$0xff] %v7196_v37  ;;  %5715 = vmatmul.msk.f32.gmra.mxu1 %vm473_vm0, %v2310_v46  ;;  %5746 = vmatmul.msk.f32.gmra.mxu2 %vm473_vm0, %v2617_v6  ;;  %v2003_v37 = vld [vmem:[#allocation2 + $0x78] sm:$0xff] }
 0x177   : > { %5681 = vmatmul.msk.f32.gmra.mxu0 %vm473_vm0, %v2000_v7  ;;  %5780 = vmatmul.msk.f32.gmra.mxu3 %vm473_vm0, %v1999_v36  ;;  %v7211_v36 = vld [vmem:[#allocation2 + $0x71] sm:$0xff] }
 0x179   : > { %v1619_v28 = vpop.f32.mrf.mxu2 }
 0x17a   : > { %v1671_v53 = vadd.f32 %v1619_v28, %v1278_v29  ;;  %v1929_v39 = vpop.f32.mrf.mxu3  ;;  %v2002_v28 = vld [vmem:[#allocation2 + $0x70] sm:$0xff] }
 0x17b   : > { %v1286_v61 = vpop.f32.mrf.mxu1 }
 0x17c   : > { %v1074_v49 = vpop.f32.mrf.mxu0  ;;  %v7204_v19 = vadd.f32 %v1929_v39, %v1671_v53  ;;  %v2312_v53 = vsel %vm6729_vm15, %v7211_v36, 0.0 }
 0x17d   : > { %v1287_v54 = vadd.f32 %v1286_v61, %v1074_v49 }
 0x17e   : > { %8977 = vst [vmem:[#allocation79_spill] sm:$0xff] %v7204_v19  ;;  %5716 = vmatmul.msk.f32.gmra.mxu1 %vm473_vm0, %v7202_v56  ;;  %5747 = vmatmul.msk.f32.gmra.mxu2 %vm473_vm0, %v2586_v33  ;;  %v2619_v19 = vsel %vm6653_vm10, %v2587_v4, 0.0  ;;  %v2588_v4 = vld [vmem:[#allocation2 + $0x6f] sm:$0xff]  ;;  %vm8987_vm10 = vnez %v8912_v57 }
 0x17f   : > { %5682 = vmatmul.msk.f32.gmra.mxu0 %vm473_vm0, %v2001_v23  ;;  %5781 = vmatmul.msk.f32.gmra.mxu3 %vm473_vm0, %v2000_v7 }
 0x181   : > { %v1622_v6 = vpop.f32.mrf.mxu2 }
 0x182   : > { %v1672_v22 = vadd.f32 %v1622_v6, %v1281_v1  ;;  %v1932_v46 = vpop.f32.mrf.mxu3 }
 0x183   : > { %v1289_v39 = vpop.f32.mrf.mxu1 }
 0x184   : > { %v1077_v29 = vpop.f32.mrf.mxu0  ;;  %v7218_v33 = vadd.f32 %v1932_v46, %v1672_v22 }
 0x185   : > { %v1290_v49 = vadd.f32 %v1289_v39, %v1077_v29  ;;  %v2591_v39 = vld [vmem:[#allocation2 + $0x87] sm:$0xff] }
 0x186   : > { %8978 = vst [vmem:[#allocation80_spill] sm:$0xff] %v7218_v33  ;;  %5717 = vmatmul.msk.f32.gmra.mxu1 %vm473_vm0, %v2312_v53  ;;  %5748 = vmatmul.msk.f32.gmra.mxu2 %vm473_vm0, %v2619_v19  ;;  %v2005_v33 = vld [vmem:[#allocation2 + $0x88] sm:$0xff] }
 0x187   : > { %5683 = vmatmul.msk.f32.gmra.mxu0 %vm473_vm0, %v2002_v28  ;;  %5782 = vmatmul.msk.f32.gmra.mxu3 %vm473_vm0, %v2001_v23  ;;  %v7233_v23 = vld [vmem:[#allocation2 + $0x81] sm:$0xff] }
 0x189   : > { %v1625_v45 = vpop.f32.mrf.mxu2 }
 0x18a   : > { %v1673_v7 = vadd.f32 %v1625_v45, %v1284_v20  ;;  %v1935_v1 = vpop.f32.mrf.mxu3  ;;  %v2004_v45 = vld [vmem:[#allocation2 + $0x80] sm:$0xff] }
 0x18b   : > { %v1292_v17 = vpop.f32.mrf.mxu1 }
 0x18c   : > { %v1080_v6 = vpop.f32.mrf.mxu0  ;;  %v7226_v22 = vadd.f32 %v1935_v1, %v1673_v7  ;;  %v2314_v7 = vsel %vm8980_vm3, %v7233_v23, 0.0 }
 0x18d   : > { %v1293_v29 = vadd.f32 %v1292_v17, %v1080_v6 }
 0x18e   : > { %8979 = vst [vmem:[#allocation81_spill] sm:$0xff] %v7226_v22  ;;  %5718 = vmatmul.msk.f32.gmra.mxu1 %vm473_vm0, %v7224_v15  ;;  %5749 = vmatmul.msk.f32.gmra.mxu2 %vm473_vm0, %v2588_v4  ;;  %v2621_v22 = vsel %vm8981_vm4, %v2589_v50, 0.0  ;;  %v2590_v50 = vld [vmem:[#allocation2 + $0x7f] sm:$0xff]  ;;  %vm8988_vm4 = vnez %v8900_v27 }
 0x18f   : > { %5684 = vmatmul.msk.f32.gmra.mxu0 %vm473_vm0, %v2003_v37  ;;  %5783 = vmatmul.msk.f32.gmra.mxu3 %vm473_vm0, %v2002_v28 }
 0x191   : > { %v1628_v19 = vpop.f32.mrf.mxu2 }
 0x192   : > { %v1674_v46 = vadd.f32 %v1628_v19, %v1287_v54  ;;  %v1938_v53 = vpop.f32.mrf.mxu3 }
 0x193   : > { %v1295_v1 = vpop.f32.mrf.mxu1 }
 0x194   : > { %v1083_v20 = vpop.f32.mrf.mxu0  ;;  %v7240_v4 = vadd.f32 %v1938_v53, %v1674_v46 }
 0x195   : > { %v1296_v6 = vadd.f32 %v1295_v1, %v1083_v20  ;;  %v2593_v20 = vld [vmem:[#allocation2 + $0x97] sm:$0xff] }
 0x196   : > { %8982 = vst [vmem:[#allocation82_spill] sm:$0xff] %v7240_v4  ;;  %5719 = vmatmul.msk.f32.gmra.mxu1 %vm473_vm0, %v2314_v7  ;;  %5750 = vmatmul.msk.f32.gmra.mxu2 %vm473_vm0, %v2621_v22  ;;  %v2007_v4 = vld [vmem:[#allocation2 + $0x98] sm:$0xff] }
 0x197   : > { %5685 = vmatmul.msk.f32.gmra.mxu0 %vm473_vm0, %v2004_v45  ;;  %5784 = vmatmul.msk.f32.gmra.mxu3 %vm473_vm0, %v2003_v37  ;;  %v7255_v37 = vld [vmem:[#allocation2 + $0x91] sm:$0xff] }
 0x199   : > { %v1631_v61 = vpop.f32.mrf.mxu2 }
 0x19a   : > { %v1675_v28 = vadd.f32 %v1631_v61, %v1290_v49  ;;  %v1941_v54 = vpop.f32.mrf.mxu3  ;;  %v2006_v61 = vld [vmem:[#allocation2 + $0x90] sm:$0xff] }
 0x19b   : > { %v1298_v41 = vpop.f32.mrf.mxu1 }
 0x19c   : > { %v1086_v19 = vpop.f32.mrf.mxu0  ;;  %v7248_v46 = vadd.f32 %v1941_v54, %v1675_v28  ;;  %v2316_v28 = vsel %vm8984_vm6, %v7255_v37, 0.0 }
 0x19e   : > { %8983 = vst [vmem:[#allocation83_spill] sm:$0xff] %v7248_v46  ;;  %5720 = vmatmul.msk.f32.gmra.mxu1 %vm473_vm0, %v7246_v43  ;;  %5751 = vmatmul.msk.f32.gmra.mxu2 %vm473_vm0, %v2590_v50  ;;  %v2623_v46 = vsel %vm8985_vm8, %v2591_v39, 0.0  ;;  %vm8989_vm8 = vnez %v8916_v58 }
 0x19f   : > { %5686 = vmatmul.msk.f32.gmra.mxu0 %vm473_vm0, %v2005_v33  ;;  %5785 = vmatmul.msk.f32.gmra.mxu3 %vm473_vm0, %v2004_v45 }
 0x1a1   : > { %v1634_v22 = vpop.f32.mrf.mxu2 }
 0x1a2   : > { %v1676_v53 = vadd.f32 %v1634_v22, %v1293_v29  ;;  %v1944_v7 = vpop.f32.mrf.mxu3 }
 0x1a3   : > { %v1301_v54 = vpop.f32.mrf.mxu1 }
 0x1a4   : > { %v1089_v49 = vpop.f32.mrf.mxu0  ;;  %v7262_v50 = vadd.f32 %v1944_v7, %v1676_v53  ;;  %v2592_v53 = vld [vmem:[#allocation2 + $0x8f] sm:$0xff] }
 0x1a6   : > { %8986 = vst [vmem:[#allocation84_spill] sm:$0xff] %v7262_v50  ;;  %5721 = vmatmul.msk.f32.gmra.mxu1 %vm473_vm0, %v2316_v28  ;;  %5752 = vmatmul.msk.f32.gmra.mxu2 %vm473_vm0, %v2623_v46 }
 0x1a7   : > { %5687 = vmatmul.msk.f32.gmra.mxu0 %vm473_vm0, %v2006_v61  ;;  %5786 = vmatmul.msk.f32.gmra.mxu3 %vm473_vm0, %v2005_v33  ;;  %v1299_v33 = vadd.f32 %v1298_v41, %v1086_v19  ;;  %v1302_v19 = vadd.f32 %v1301_v54, %v1089_v49 }
 0x1a9   : > { %v1637_v17 = vpop.f32.mrf.mxu2 }
 0x1aa   : > { %v1677_v45 = vadd.f32 %v1637_v17, %v1296_v6  ;;  %v1947_v29 = vpop.f32.mrf.mxu3  ;;  %v2008_v6 = vld [vmem:[#allocation2 + $0xa0] sm:$0xff]  ;;  %v2318_v17 = vsel %vm8987_vm10, %v6851_v62, 0.0 }
 0x1ab   : > { %v2451_v39 = vpop.f32.mrf.mxu1 }
 0x1ac   : > { %v2141_v22 = vpop.f32.mrf.mxu0  ;;  %v7271_v7 = vadd.f32 %v1947_v29, %v1677_v45 }
 0x1ad   : > { %v2237_v3 = vadd.f32 %v2141_v22, %v6821_v18  ;;  %v2625_v22 = vsel %vm8988_vm4, %v2593_v20, 0.0  ;;  %v2594_v20 = vld [vmem:[#allocation2 + $0x9f] sm:$0xff]  ;;  %vm8990_vm4 = vnez %v8905_v55 }
 0x1ae   : > { %5722 = vmatmul.msk.f32.gmra.mxu1 %vm473_vm0, %v7268_v11  ;;  %5753 = vmatmul.msk.f32.gmra.mxu2 %vm473_vm0, %v2592_v53  ;;  %v2009_v53 = vld [vmem:[#allocation2 + $0xa8] sm:$0xff] }
 0x1af   : > { %v2547_v50 = vadd.f32 %v2451_v39, %v2237_v3  ;;  %5688 = vmatmul.msk.f32.gmra.mxu0 %vm473_vm0, %v2007_v4  ;;  %5787 = vmatmul.msk.f32.gmra.mxu3 %vm473_vm0, %v2006_v61 }
 0x1b1   : > { %v1640_v1 = vpop.f32.mrf.mxu2 }
 0x1b2   : > { %v1678_v46 = vadd.f32 %v1640_v1, %v1299_v33  ;;  %v1950_v28 = vpop.f32.mrf.mxu3 }
 0x1b3   : > { %v2454_v29 = vpop.f32.mrf.mxu1 }
 0x1b4   : > { %v2144_v18 = vpop.f32.mrf.mxu0  ;;  %v7284_v3 = vadd.f32 %v1950_v28, %v1678_v46 }
 0x1b5   : > { %v2238_v45 = vadd.f32 %v2144_v18, %v6836_v48  ;;  %v2010_v18 = vld [vmem:[#allocation2 + $0xb0] sm:$0xff] }
 0x1b6   : > { %5723 = vmatmul.msk.f32.gmra.mxu1 %vm473_vm0, %v2318_v17  ;;  %5754 = vmatmul.msk.f32.gmra.mxu2 %vm473_vm0, %v2625_v22  ;;  %v2320_v17 = vsel %vm8989_vm8, %v6889_v21, 0.0  ;;  %vm8993_vm8 = vnez %v8910_v26 }
 0x1b7   : > { %v2548_v61 = vadd.f32 %v2454_v29, %v2238_v45  ;;  %5689 = vmatmul.msk.f32.gmra.mxu0 %vm473_vm0, %v2008_v6  ;;  %5788 = vmatmul.msk.f32.gmra.mxu3 %vm473_vm0, %v2007_v4  ;;  %v2595_v4 = vld [vmem:[#allocation2 + $0xa7] sm:$0xff] }
 0x1b9   : > { %v1643_v41 = vpop.f32.mrf.mxu2 }
 0x1ba   : > { %v1679_v62 = vadd.f32 %v1643_v41, %v1302_v19  ;;  %v1953_v39 = vpop.f32.mrf.mxu3 }
 0x1bb   : > { %v2457_v33 = vpop.f32.mrf.mxu1 }
 0x1bc   : > { %v2147_v48 = vpop.f32.mrf.mxu0  ;;  %v7291_v1 = vadd.f32 %v1953_v39, %v1679_v62  ;;  %v2596_v39 = vld [vmem:[#allocation2 + $0xaf] sm:$0xff] }
 0x1bd   : > { %v2239_v27 = vadd.f32 %v2147_v48, %v6856_v35 }
 0x1be   : > { %5724 = vmatmul.msk.f32.gmra.mxu1 %vm473_vm0, %v6871_v52  ;;  %5755 = vmatmul.msk.f32.gmra.mxu2 %vm473_vm0, %v2594_v20  ;;  %v2627_v52 = vsel %vm8990_vm4, %v2595_v4, 0.0  ;;  %vm8992_vm4 = vnez %v8921_v16 }
 0x1bf   : > { %v2549_v46 = vadd.f32 %v2457_v33, %v2239_v27  ;;  %5690 = vmatmul.msk.f32.gmra.mxu0 %vm473_vm0, %v2009_v53  ;;  %5789 = vmatmul.msk.f32.gmra.mxu3 %vm473_vm0, %v2008_v6 }
 0x1c1   : > { %v1646_v49 = vpop.f32.mrf.mxu2 }
 0x1c2   : > { %v1680_v54 = vadd.f32 %v1646_v49, %v6804_v40  ;;  %v1956_v28 = vpop.f32.mrf.mxu3  ;;  %v2322_v49 = vsel %vm8992_vm4, %v6927_v5, 0.0  ;;  %vm8995_vm4 = vnez %v8914_v60 }
 0x1c3   : > { %v2460_v29 = vpop.f32.mrf.mxu1 }
 0x1c4   : > { %v2150_v35 = vpop.f32.mrf.mxu0  ;;  %v7305_v22 = vadd.f32 %v1956_v28, %v1680_v54 }
 0x1c5   : > { %v2240_v45 = vadd.f32 %v2150_v35, %v6873_v0  ;;  %v2011_v0 = vld [vmem:[#allocation2 + $0xb8] sm:$0xff] }
 0x1c6   : > { %8991 = vst [vmem:[#allocation85_spill] sm:$0xff] %v7305_v22  ;;  %5725 = vmatmul.msk.f32.gmra.mxu1 %vm473_vm0, %v2320_v17  ;;  %5756 = vmatmul.msk.f32.gmra.mxu2 %vm473_vm0, %v2627_v52  ;;  %v2598_v52 = vld [vmem:[#allocation2 + $0xbf] sm:$0xff] }
 0x1c7   : > { %v2550_v6 = vadd.f32 %v2460_v29, %v2240_v45  ;;  %5691 = vmatmul.msk.f32.gmra.mxu0 %vm473_vm0, %v2010_v18  ;;  %5790 = vmatmul.msk.f32.gmra.mxu3 %vm473_vm0, %v2009_v53 }
 0x1c9   : > { %v2761_v40 = vpop.f32.mrf.mxu2 }
 0x1ca   : > { %v2857_v19 = vadd.f32 %v2761_v40, %v2547_v50  ;;  %v3039_v21 = vpop.f32.mrf.mxu3  ;;  %v2597_v50 = vld [vmem:[#allocation2 + $0xb7] sm:$0xff] }
 0x1cb   : > { %v2463_v55 = vpop.f32.mrf.mxu1 }
 0x1cc   : > { %v2153_v41 = vpop.f32.mrf.mxu0  ;;  %v7312_v48 = vadd.f32 %v3039_v21, %v2857_v19 }
 0x1cd   : > { %v2241_v62 = vadd.f32 %v2153_v41, %v6894_v34  ;;  %v2012_v34 = vld [vmem:[#allocation2 + $0xc0] sm:$0xff] }
 0x1ce   : > { %5726 = vmatmul.msk.f32.gmra.mxu1 %vm473_vm0, %v6909_v47  ;;  %5757 = vmatmul.msk.f32.gmra.mxu2 %vm473_vm0, %v2596_v39  ;;  %v2629_v47 = vsel %vm8993_vm8, %v2597_v50, 0.0  ;;  %vm8994_vm8 = vnez %v8926_v12 }
 0x1cf   : > { %v2551_v27 = vadd.f32 %v2463_v55, %v2241_v62  ;;  %5692 = vmatmul.msk.f32.gmra.mxu0 %vm473_vm0, %v2011_v0  ;;  %5791 = vmatmul.msk.f32.gmra.mxu3 %vm473_vm0, %v2010_v18  ;;  %v2324_v55 = vsel %vm8994_vm8, %v6968_v63, 0.0 }
 0x1d1   : > { %v2764_v53 = vpop.f32.mrf.mxu2 }
 0x1d2   : > { %v2858_v33 = vadd.f32 %v2764_v53, %v2548_v61  ;;  %v3042_v20 = vpop.f32.mrf.mxu3 }
 0x1d3   : > { %v2466_v28 = vpop.f32.mrf.mxu1 }
 0x1d4   : > { %v2156_v4 = vpop.f32.mrf.mxu0  ;;  %v7325_v35 = vadd.f32 %v3042_v20, %v2858_v33 }
 0x1d5   : > { %v2242_v54 = vadd.f32 %v2156_v4, %v6911_v51  ;;  %v2013_v51 = vld [vmem:[#allocation2 + $0xc8] sm:$0xff] }
 0x1d6   : > { %5727 = vmatmul.msk.f32.gmra.mxu1 %vm473_vm0, %v2322_v49  ;;  %5758 = vmatmul.msk.f32.gmra.mxu2 %vm473_vm0, %v2629_v47  ;;  %v2601_v49 = vld [vmem:[#allocation2 + $0xd7] sm:$0xff] }
 0x1d7   : > { %v2552_v17 = vadd.f32 %v2466_v28, %v2242_v54  ;;  %5693 = vmatmul.msk.f32.gmra.mxu0 %vm473_vm0, %v2012_v34  ;;  %5792 = vmatmul.msk.f32.gmra.mxu3 %vm473_vm0, %v2011_v0 }
 0x1d9   : > { %v2767_v61 = vpop.f32.mrf.mxu2 }
 0x1da   : > { %v2859_v18 = vadd.f32 %v2767_v61, %v2549_v46  ;;  %v3045_v5 = vpop.f32.mrf.mxu3  ;;  %v2599_v46 = vld [vmem:[#allocation2 + $0xc7] sm:$0xff] }
 0x1db   : > { %v2469_v26 = vpop.f32.mrf.mxu1  ;;  %v8996_v61 = vld [vmem:[#allocation48_spill] sm:$0xff] }
 0x1dc   : > { %v2159_v45 = vpop.f32.mrf.mxu0  ;;  %v7332_v40 = vadd.f32 %v3045_v5, %v2859_v18  ;;  %v8998_v5 = vld [vmem:[#allocation45_spill] sm:$0xff] }
 0x1dd   : > { %v2243_v29 = vadd.f32 %v2159_v45, %v6932_v59  ;;  %v2014_v59 = vld [vmem:[#allocation2 + $0xd0] sm:$0xff]  ;;  %vm8999_vm8 = vnez %v8998_v5  ;;  %v2020_v5 = vld [vmem:[#allocation2 + $0x100] sm:$0xff] }
 0x1de   : > { %5728 = vmatmul.msk.f32.gmra.mxu1 %vm473_vm0, %v6945_v44  ;;  %5759 = vmatmul.msk.f32.gmra.mxu2 %vm473_vm0, %v2598_v52  ;;  %v2631_v44 = vsel %vm8995_vm4, %v2599_v46, 0.0  ;;  %vm8997_vm4 = vnez %v8996_v61  ;;  %v2633_v45 = vsel %vm8999_vm8, %v2601_v49, 0.0  ;;  %v9007_v49 = vld [vmem:[#allocation55_spill] sm:$0xff] }
 0x1df   : > { %v2553_v19 = vadd.f32 %v2469_v26, %v2243_v29  ;;  %5694 = vmatmul.msk.f32.gmra.mxu0 %vm473_vm0, %v2013_v51  ;;  %5793 = vmatmul.msk.f32.gmra.mxu3 %vm473_vm0, %v2012_v34  ;;  %v2600_v34 = vld [vmem:[#allocation2 + $0xcf] sm:$0xff]  ;;  %v2326_v18 = vsel %vm8997_vm4, %v7020_v14, 0.0  ;;  %v2602_v14 = vld [vmem:[#allocation2 + $0xdf] sm:$0xff] }
 0x1e1   : > { %v2770_v21 = vpop.f32.mrf.mxu2 }
 0x1e2   : > { %v2860_v41 = vadd.f32 %v2770_v21, %v2550_v6  ;;  %v3048_v0 = vpop.f32.mrf.mxu3  ;;  %v2912_v21 = vld [vmem:[#allocation2 + $0xe0] sm:$0xff] }
 0x1e3   : > { %v2472_v50 = vpop.f32.mrf.mxu1 }
 0x1e4   : > { %v2162_v62 = vpop.f32.mrf.mxu0  ;;  %v7345_v53 = vadd.f32 %v3048_v0, %v2860_v41  ;;  %v9001_v41 = vld [vmem:[#allocation52_spill] sm:$0xff]  ;;  %v9002_v0 = vld [vmem:[#allocation61_spill] sm:$0xff] }
 0x1e5   : > { %v2244_v39 = vadd.f32 %v2162_v62, %v6947_v24  ;;  %v2015_v24 = vld [vmem:[#allocation2 + $0xd8] sm:$0xff]  ;;  %v2603_v62 = vld [vmem:[#allocation2 + $0xe7] sm:$0xff] }
 0x1e6   : > { %5729 = vmatmul.msk.f32.gmra.mxu1 %vm473_vm0, %v2324_v55  ;;  %5760 = vmatmul.msk.f32.gmra.mxu2 %vm473_vm0, %v2631_v44 }
 0x1e7   : > { %v2554_v33 = vadd.f32 %v2472_v50, %v2244_v39  ;;  %5695 = vmatmul.msk.f32.gmra.mxu0 %vm473_vm0, %v2014_v59  ;;  %5794 = vmatmul.msk.f32.gmra.mxu3 %vm473_vm0, %v2013_v51  ;;  %v9003_v50 = vld [vmem:[#allocation64_spill] sm:$0xff] }
 0x1e9   : > { %v2773_v6 = vpop.f32.mrf.mxu2 }
 0x1ea   : > { %v2861_v20 = vadd.f32 %v2773_v6, %v2551_v27  ;;  %v3051_v63 = vpop.f32.mrf.mxu3  ;;  %v2328_v6 = vsel %vm7016_vm12, %v9003_v50, 0.0 }
 0x1ec   : > { %v7351_v4 = vpop.f32.mrf.mxu0  ;;  %v7353_v60 = vadd.f32 %v3051_v63, %v2861_v20  ;;  %v9005_v20 = vld [vmem:[#allocation46_spill] sm:$0xff] }
 0x1ed   : > { %vm9006_vm8 = vnez %v9005_v20  ;;  %v9017_v20 = vld [vmem:[#allocation70_spill] sm:$0xff] }
 0x1ee   : > { %5730 = vmatmul.msk.f32.gmra.mxu1 %vm473_vm0, %v7002_v25  ;;  %5761 = vmatmul.msk.f32.gmra.mxu2 %vm473_vm0, %v2600_v34  ;;  %v9000_v25 = vld [vmem:[#allocation49_spill] sm:$0xff]  ;;  %v2635_v63 = vsel %vm9006_vm8, %v2603_v62, 0.0 }
 0x1ef   : > { %5696 = vmatmul.msk.f32.gmra.mxu0 %vm473_vm0, %v2015_v24  ;;  %5795 = vmatmul.msk.f32.gmra.mxu3 %vm473_vm0, %v2014_v59  ;;  %v2913_v34 = vld [vmem:[#allocation2 + $0xe8] sm:$0xff]  ;;  %v2022_v62 = vld [vmem:[#allocation2 + $0x110] sm:$0xff] }
 0x1f1   : > { %v2776_v54 = vpop.f32.mrf.mxu2 }
 0x1f2   : > { %v2862_v28 = vadd.f32 %v2776_v54, %v2552_v17  ;;  %v3054_v27 = vpop.f32.mrf.mxu3  ;;  %v2914_v54 = vld [vmem:[#allocation2 + $0xf0] sm:$0xff] }
 0x1f4   : > { %v7360_v47 = vpop.f32.mrf.mxu0  ;;  %v7367_v51 = vadd.f32 %v3054_v27, %v2862_v28  ;;  %v9008_v28 = vld [vmem:[#allocation60_spill] sm:$0xff] }
 0x1f5   : > { %v9009_v27 = vld [vmem:[#allocation56_spill] sm:$0xff] }
 0x1f6   : > { %5731 = vmatmul.msk.f32.gmra.mxu1 %vm473_vm0, %v2326_v18  ;;  %5762 = vmatmul.msk.f32.gmra.mxu2 %vm473_vm0, %v2633_v45 }
 0x1f7   : > { %5697 = vmatmul.msk.f32.gmra.mxu0 %vm473_vm0, %v9000_v25  ;;  %5796 = vmatmul.msk.f32.gmra.mxu3 %vm473_vm0, %v2015_v24  ;;  %v2330_v25 = vsel %vm7064_vm1, %v7104_v9, 0.0  ;;  %v7429_v9 = vld [vmem:[#allocation2 + $0x111] sm:$0xff] }
 0x1f9   : > { %v2779_v17 = vpop.f32.mrf.mxu2 }
 0x1fa   : > { %v2863_v29 = vadd.f32 %v2779_v17, %v2553_v19  ;;  %v3057_v26 = vpop.f32.mrf.mxu3  ;;  %v9011_v17 = vld [vmem:[#allocation59_spill] sm:$0xff] }
 0x1fc   : > { %v7374_v52 = vpop.f32.mrf.mxu0  ;;  %v7376_v46 = vadd.f32 %v3057_v26, %v2863_v29  ;;  %v9012_v29 = vld [vmem:[#allocation47_spill] sm:$0xff] }
 0x1fd   : > { %vm9013_vm8 = vnez %v9012_v29  ;;  %v2920_v29 = vld [vmem:[#allocation2 + $0x120] sm:$0xff] }
 0x1fe   : > { %5732 = vmatmul.msk.f32.gmra.mxu1 %vm473_vm0, %v9002_v0  ;;  %5763 = vmatmul.msk.f32.gmra.mxu2 %vm473_vm0, %v2602_v14  ;;  %v2637_v26 = vsel %vm9013_vm8, %v9011_v17, 0.0  ;;  %v2915_v14 = vld [vmem:[#allocation2 + $0xf8] sm:$0xff] }
 0x1ff   : > { %5698 = vmatmul.msk.f32.gmra.mxu0 %vm473_vm0, %v9001_v41  ;;  %5797 = vmatmul.msk.f32.gmra.mxu3 %vm473_vm0, %v2912_v21  ;;  %v2021_v21 = vld [vmem:[#allocation2 + $0x108] sm:$0xff]  ;;  %v2610_v17 = vld [vmem:[#allocation2 + $0x11f] sm:$0xff] }
 0x200   : > { %v7421_v41 = vld [vmem:[#allocation2 + $0x109] sm:$0xff] }
 0x201   : > { %v2782_v59 = vpop.f32.mrf.mxu2 }
 0x202   : > { %v2864_v19 = vadd.f32 %v2782_v59, %v2554_v33  ;;  %v3060_v55 = vpop.f32.mrf.mxu3 }
 0x204   : > { %v7384_v39 = vpop.f32.mrf.mxu0  ;;  %v7391_v24 = vadd.f32 %v3060_v55, %v2864_v19  ;;  %v2332_v19 = vsel %vm7100_vm5, %v7429_v9, 0.0  ;;  %v9015_v55 = vld [vmem:[#allocation66_spill] sm:$0xff] }
 0x206   : > { %5733 = vmatmul.msk.f32.gmra.mxu1 %vm473_vm0, %v2328_v6  ;;  %5764 = vmatmul.msk.f32.gmra.mxu2 %vm473_vm0, %v2635_v63  ;;  %v2639_v6 = vsel %vm6986_vm2, %v9015_v55, 0.0  ;;  %v2609_v63 = vld [vmem:[#allocation2 + $0x117] sm:$0xff]  ;;  %v3204_v55 = vsel %vm6642_vm9, %v7167_v31, 0.0  ;;  %vm483_vm9 = vcmask 122880  }
 0x207   : > { %5699 = vmatmul.msk.f32.gmra.mxu0 %vm473_vm0, %v9007_v49  ;;  %5798 = vmatmul.msk.f32.gmra.mxu3 %vm473_vm0, %v2913_v34  ;;  %v9018_v49 = vld [vmem:[#allocation71_spill] sm:$0xff] }
 0x20c   : > { %v7398_v33 = vpop.f32.mrf.mxu0 }
 0x20e   : > { %5734 = vmatmul.msk.f32.gmra.mxu1 %vm473_vm0, %v7088_v8  ;;  %5765 = vmatmul.msk.f32.gmra.mxu2 %vm473_vm0, %v9009_v27 }
 0x20f   : > { %5700 = vmatmul.msk.f32.gmra.mxu0 %vm473_vm0, %v9008_v28  ;;  %5799 = vmatmul.msk.f32.gmra.mxu3 %vm473_vm0, %v2914_v54  ;;  %v9019_v54 = vld [vmem:[#allocation33_spill] sm:$0xff] }
 0x210   : > { %vm9020_vm2 = vnez %v9019_v54 }
 0x211   : > { %v3200_v28 = vsel %vm9020_vm2, %v9018_v49, 0.0  ;;  %v3692_v49 = vld [vmem:[#allocation10 + $0x18] sm:$0xff] }
 0x212   : > { %3731 = vmatpush.msra.mxu1 %v3692_v49 }
 0x214   : > { %v7407_v18 = vpop.f32.mrf.mxu0 }
 0x216   : > { %5735 = vmatmul.msk.f32.gmra.mxu1 %vm473_vm0, %v2330_v25  ;;  %5766 = vmatmul.msk.f32.gmra.mxu2 %vm473_vm0, %v2637_v26  ;;  %v2919_v25 = vld [vmem:[#allocation2 + $0x118] sm:$0xff] }
 0x217   : > { %5701 = vmatmul.msk.f32.gmra.mxu0 %vm473_vm0, %v2020_v5  ;;  %5800 = vmatmul.msk.f32.gmra.mxu3 %vm473_vm0, %v2915_v14 }
 0x21c   : > { %v7419_v8 = vpop.f32.mrf.mxu0 }
 0x21e   : > { %5736 = vmatmul.msk.f32.gmra.mxu1 %vm473_vm0, %v7421_v41  ;;  %5767 = vmatmul.msk.f32.gmra.mxu2 %vm473_vm0, %v7075_v30 }
 0x21f   : > { %5702 = vmatmul.msk.f32.gmra.mxu0 %vm473_vm0, %v2021_v21  ;;  %5801 = vmatmul.msk.f32.gmra.mxu3 %vm473_vm0, %v2020_v5  ;;  %v2641_v5 = vsel %vm7039_vm14, %v2609_v63, 0.0  ;;  %v3857_v63 = vld [vmem:[#allocation10 + $0x28] sm:$0xff] }
 0x220   : > { %3896 = vmatpush.msrb.mxu3 %v3857_v63  ;;  %v7546_v63 = vpop.f32.mrf.mxu1 }
 0x224   : > { %v7431_v0 = vpop.f32.mrf.mxu0 }
 0x226   : > { %5737 = vmatmul.msk.f32.gmra.mxu1 %vm473_vm0, %v2332_v19  ;;  %5768 = vmatmul.msk.f32.gmra.mxu2 %vm473_vm0, %v2639_v6  ;;  %v3183_v6 = vld [vmem:[#allocation2 + $0xa9] sm:$0xff] }
 0x227   : > { %5703 = vmatmul.msk.f32.gmra.mxu0 %vm473_vm0, %v2022_v62  ;;  %5802 = vmatmul.msk.f32.gmra.mxu3 %vm473_vm0, %v2021_v21  ;;  %v3202_v21 = vsel %vm6610_vm7, %v7145_v2, 0.0  ;;  %vm481_vm7 = vcmask 130048  }
 0x22c   : > { %v7443_v30 = vpop.f32.mrf.mxu0 }
 0x22e   : > { %5769 = vmatmul.msk.f32.gmra.mxu2 %vm473_vm0, %v9017_v20  ;;  %v3206_v20 = vsel %vm6673_vm11, %v7189_v13, 0.0 }
 0x22f   : > { %5808 = vmatmul.msk.f32.vlgmr.msra.gmra.mxu0 %vm473_vm0, %v7106_v42  ;;  %5803 = vmatmul.msk.f32.gmra.mxu3 %vm473_vm0, %v2022_v62 }
 0x234   : > { %v7450_v34 = vpop.f32.mrf.mxu0 }
 0x236   : > { %5770 = vmatmul.msk.f32.gmra.mxu2 %vm473_vm0, %v2641_v5 }
 0x237   : > { %5809 = vmatmul.msk.f32.gmra.mxu0 %vm473_vm0, %v3200_v28  ;;  %5804 = vmatmul.msk.f32.gmra.mxu3 %vm473_vm0, %v2919_v25  ;;  %v3208_v28 = vsel %vm6701_vm13, %v7211_v36, 0.0  ;;  %v3210_v25 = vsel %vm6729_vm15, %v7233_v23, 0.0  ;;  %v9027_v36 = vmov 0.0   ;;  %v3212_v23 = vsel %vm8980_vm3, %v7255_v37, 0.0 }
 0x238   : > { %482 = vst.msk [vmem:[#allocation4 + $0x7] sm:$0xff] %vm481_vm7, %v9027_v36  ;;  %vm9036_vm13 = vnez %v8916_v58  ;;  %vm9037_vm15 = vnez %v8921_v16  ;;  %v9039_v16 = vmov 0 }
 0x239   : > { %485 = vst.msk [vmem:[#allocation4 + $0x50] sm:$0xff] %vm481_vm7, %v9027_v36 }
 0x23a   : > { %484 = vst.msk [vmem:[#allocation4 + $0xf] sm:$0x1] %vm483_vm9, %v9027_v36 }
 0x23b   : > { %486 = vst.msk [vmem:[#allocation4 + $0x58] sm:$0x1] %vm483_vm9, %v9027_v36 }
 0x23c   : > { %v7460_v42 = vpop.f32.mrf.mxu0 }
 0x23e   : > { %5771 = vmatmul.msk.f32.gmra.mxu2 %vm473_vm0, %v2610_v17  ;;  %v7552_v17 = vpop.f32.mrf.mxu2 }
 0x23f   : > { %5810 = vmatmul.msk.f32.gmra.mxu0 %vm473_vm0, %v7136_v38  ;;  %5805 = vmatmul.msk.f32.gmra.mxu3 %vm473_vm0, %v2920_v29 }
 0x244   : > { %v7466_v26 = vpop.f32.mrf.mxu0 }
 0x247   : > { %5811 = vmatmul.msk.f32.gmra.mxu0 %vm473_vm0, %v3202_v21  ;;  %v9033_v21 = vmov 0 }
 0x24c   : > { %v7472_v62 = vpop.f32.mrf.mxu0 }
 0x24f   : > { %5812 = vmatmul.msk.f32.gmra.mxu0 %vm473_vm0, %v7158_v10  ;;  %v3681_v10 = vld [vmem:[#allocation10 + $0x8] sm:$0xff] }
 0x250   : > { %3796 = vmatpush.msrb.mxu2 %v3681_v10  ;;  %v3184_v10 = vld [vmem:[#allocation2 + $0xb1] sm:$0xff] }
 0x251   : > { %v3216_v54 = vsel %vm8987_vm10, %v3184_v10, 0.0  ;;  %v7570_v10 = vpop.f32.mrf.mxu1 }
 0x254   : > { %v7476_v19 = vpop.f32.mrf.mxu0 }
 0x257   : > { %5813 = vmatmul.msk.f32.gmra.mxu0 %vm473_vm0, %v3204_v55  ;;  %v7538_v55 = vld [vmem:[%s9031_s2] ss:$0 sm:$0xff]  ;;  %s6178_s2 = scalar_lea.hbm %s6177_s1, 16 }
 0x258   : > { %p6179_p0 = scmp.ne.s32.totalorder %s6177_s1, %s6178_s2  ;;  %p6184_p4 = scmp.lt.s32.totalorder %s6182_s5, %s6178_s2 }
 0x25a   : > { %p6180_p1 = pnand %p6179_p0, %p6438_p5  ;;  %p6185_p7 = por %p6184_p4, %p6183_p3 }
 0x25c   : > { %v7482_v50 = vpop.f32.mrf.mxu0  ;;  %p6181_p2 = pneg %p6180_p1 }
 0x25e   : > { %p6186_p8 = pnand %p6185_p7, %p6181_p2 }
 0x25f   : > { %5814 = vmatmul.msk.f32.gmra.mxu0 %vm473_vm0, %v7180_v32 }
 0x264   : > { %v7486_v2 = vpop.f32.mrf.mxu0 }
 0x267   : > { %5815 = vmatmul.msk.f32.gmra.mxu0 %vm473_vm0, %v3206_v20 }
 0x26c   : > { %v7492_v31 = vpop.f32.mrf.mxu0 }
 0x26f   : > { %5816 = vmatmul.msk.f32.gmra.mxu0 %vm473_vm0, %v7202_v56 }
 0x274   : > { %v7496_v32 = vpop.f32.mrf.mxu0 }
 0x277   : > { %5817 = vmatmul.msk.f32.gmra.mxu0 %vm473_vm0, %v3208_v28  ;;  %v9032_v28 = vld [vmem:[#allocation29_spill] sm:$0xff] }
 0x27c   : > { %v7502_v13 = vpop.f32.mrf.mxu0 }
 0x27f   : > { %5818 = vmatmul.msk.f32.gmra.mxu0 %vm473_vm0, %v7224_v15 }
 0x284   : > { %v7506_v27 = vpop.f32.mrf.mxu0 }
 0x287   : > { %5819 = vmatmul.msk.f32.gmra.mxu0 %vm473_vm0, %v3210_v25  ;;  %v3691_v25 = vld [vmem:[#allocation10 + $0x10] sm:$0xff] }
 0x288   : > { %3732 = vmatpush.msra.mxu1 %v3691_v25  ;;  %v3186_v25 = vld [vmem:[#allocation2 + $0xc1] sm:$0xff] }
 0x28c   : > { %v7512_v56 = vpop.f32.mrf.mxu0 }
 0x28f   : > { %5820 = vmatmul.msk.f32.gmra.mxu0 %vm473_vm0, %v7246_v43  ;;  %v3182_v43 = vld [vmem:[#allocation2 + $0xa1] sm:$0xff] }
 0x290   : > { %v3214_v38 = vsel %vm8984_vm6, %v3182_v43, 0.0  ;;  %v3680_v43 = vld [vmem:[#allocation10] sm:$0xff]  ;;  %vm9049_vm6 = vnez %v8926_v12 }
 0x291   : > { %3797 = vmatpush.msrb.mxu2 %v3680_v43 }
 0x294   : > { %v7520_v15 = vpop.f32.mrf.mxu0 }
 0x297   : > { %5821 = vmatmul.msk.f32.gmra.mxu0 %vm473_vm0, %v3212_v23  ;;  %v3682_v23 = vld [vmem:[#allocation4 + $0x8] sm:$0xff] }
 0x298   : > { %5840 = vmatmul.msk.f32.vlgmr.msra.gmra.mxu1 %vm481_vm7, %v3682_v23 }
 0x29c   : > { %v7526_v29 = vpop.f32.mrf.mxu0 }
 0x29f   : > { %5822 = vmatmul.msk.f32.gmra.mxu0 %vm473_vm0, %v7268_v11 }
 0x2a4   : > { %v7530_v14 = vpop.f32.mrf.mxu0 }
 0x2a5   : > { %9029 = vst [vmem:[#allocation48_spill] sm:$0xff] %v7530_v14 }
 0x2a7   : > { %5823 = vmatmul.msk.f32.gmra.mxu0 %vm473_vm0, %v3214_v38  ;;  %v3648_v38 = vld [vmem:[#allocation4 + $0x7] sm:$0xff] }
 0x2ac   : > { %v3349_v37 = vpop.f32.mrf.mxu0 }
 0x2ad   : > { %v3445_v20 = vadd.f32 %v3349_v37, %v7312_v48  ;;  %v8827_v48 = vand.u32 7, %v9032_v28  ;;  %v7567_v37 = vpop.f32.mrf.mxu3 }
 0x2af   : > { %v3481_v11 = vadd.f32 %v7538_v55, %v3445_v20  ;;  %5824 = vmatmul.msk.f32.gmra.mxu0 %vm473_vm0, %v3183_v6  ;;  %vm7556_vm11 = vcmp.ne.s32.totalorder %v8827_v48, 0  ;;  %v3185_v20 = vld [vmem:[#allocation2 + $0xb9] sm:$0xff]  ;;  %v3188_v48 = vld [vmem:[#allocation2 + $0xd1] sm:$0xff] }
 0x2b0   : > { %v9034_v21 = vsel %vm7556_vm11, 4294967295, %v9033_v21  ;;  %v3220_v14 = vsel %vm9037_vm15, %v3188_v48, 0.0  ;;  %v9043_v48 = vmov 0 }
 0x2b1   : > { %3513 = vst.msk [vmem:[#allocation3] sm:$0xff] %vm481_vm7, %v3481_v11 }
 0x2b2   : > { %9035 = vst [vmem:[#allocation45_spill] sm:$0xff] %v9034_v21 }
 0x2b4   : > { %v3352_v49 = vpop.f32.mrf.mxu0 }
 0x2b5   : > { %v3446_v5 = vadd.f32 %v3352_v49, %v7325_v35  ;;  %v3672_v35 = vsel %vm7556_vm11, %v3648_v38, 0.0  ;;  %v3856_v49 = vld [vmem:[#allocation10 + $0x20] sm:$0xff]  ;;  %v7577_v23 = vpop.f32.mrf.mxu3 }
 0x2b6   : > { %5848 = vmatmul.msk.f32.vlgmr.msrb.gmra.mxu2 %vm481_vm7, %v3672_v35  ;;  %3897 = vmatpush.msrb.mxu3 %v3856_v49  ;;  %v7584_v35 = vpop.f32.mrf.mxu1 }
 0x2b7   : > { %v3482_v57 = vadd.f32 %v7538_v55, %v3446_v5  ;;  %5825 = vmatmul.msk.f32.gmra.mxu0 %vm473_vm0, %v3216_v54  ;;  %v7574_v5 = vpop.f32.mrf.mxu2 }
 0x2b9   : > { %3514 = vst.msk [vmem:[#allocation3 + $0x8] sm:$0xff] %vm481_vm7, %v3482_v57 }
 0x2bc   : > { %v3355_v6 = vpop.f32.mrf.mxu0 }
 0x2bd   : > { %v3447_v11 = vadd.f32 %v3355_v6, %v7332_v40  ;;  %v3218_v40 = vsel %vm9036_vm13, %v3186_v25, 0.0  ;;  %v7593_v58 = vpop.f32.mrf.mxu3 }
 0x2bf   : > { %v3483_v54 = vadd.f32 %v7538_v55, %v3447_v11  ;;  %5826 = vmatmul.msk.f32.gmra.mxu0 %vm473_vm0, %v3185_v20  ;;  %v7587_v6 = vpop.f32.mrf.mxu2  ;;  %v3187_v11 = vld [vmem:[#allocation2 + $0xc9] sm:$0xff] }
 0x2c1   : > { %3515 = vst.msk [vmem:[#allocation3 + $0x10] sm:$0xff] %vm481_vm7, %v3483_v54  ;;  %v3577_v54 = vld [vmem:[#allocation3 + $0x1] ss:$2 sm:$0xff] }
 0x2c4   : > { %v3358_v43 = vpop.f32.mrf.mxu0 }
 0x2c5   : > { %v3448_v38 = vadd.f32 %v3358_v43, %v7345_v53  ;;  %v3545_v53 = vld [vmem:[#allocation3] ss:$2 sm:$0xff] }
 0x2c7   : > { %v3484_v57 = vadd.f32 %v7538_v55, %v3448_v38  ;;  %5827 = vmatmul.msk.f32.gmra.mxu0 %vm473_vm0, %v3218_v40  ;;  %v3608_v38 = vmax.f32 %v3545_v53, %v3577_v54  ;;  %v7601_v36 = vpop.f32.mrf.mxu2  ;;  %v7614_v54 = vpop.f32.mrf.mxu3 }
 0x2c9   : > { %3516 = vst.msk [vmem:[#allocation3 + $0x18] sm:$0xff] %vm481_vm7, %v3484_v57 }
 0x2cc   : > { %v3361_v20 = vpop.f32.mrf.mxu0 }
 0x2cd   : > { %v3449_v49 = vadd.f32 %v3361_v20, %v7353_v60  ;;  %v7599_v60 = vpop.f32.mrf.mxu1 }
 0x2cf   : > { %v3485_v25 = vadd.f32 %v7538_v55, %v3449_v49  ;;  %5828 = vmatmul.msk.f32.gmra.mxu0 %vm473_vm0, %v3187_v11  ;;  %v9038_v11 = vld [vmem:[#allocation31_spill] sm:$0xff] }
 0x2d0   : > { %v3547_v43 = vld [vmem:[#allocation3 + $0x10] ss:$2 sm:$0xff]  ;;  %v3579_v40 = vld [vmem:[#allocation3 + $0x11] ss:$2 sm:$0xff]  ;;  %v8831_v22 = vand.u32 7, %v9038_v11 }
 0x2d1   : > { %v3609_v57 = vmax.f32 %v3547_v43, %v3579_v40  ;;  %3517 = vst.msk [vmem:[#allocation3 + $0x20] sm:$0xff] %vm481_vm7, %v3485_v25 }
 0x2d2   : > { %vm7619_vm14 = vcmp.ne.s32.totalorder %v8831_v22, 0  ;;  %v3190_v22 = vld [vmem:[#allocation2 + $0xe1] sm:$0xff] }
 0x2d3   : > { %v3624_v20 = vmax.f32 %v3608_v38, %v3609_v57  ;;  %v9040_v16 = vsel %vm7619_vm14, 4294967295, %v9039_v16 }
 0x2d4   : > { %v3364_v21 = vpop.f32.mrf.mxu0  ;;  %9041 = vst [vmem:[#allocation49_spill] sm:$0xff] %v9040_v16 }
 0x2d5   : > { %v3450_v49 = vadd.f32 %v3364_v21, %v7367_v51  ;;  %3640 = vst.msk [vmem:[#allocation4 + $0x10] sm:$0xff] %vm481_vm7, %v3624_v20  ;;  %v9042_v51 = vand.u32 7, %v9032_v28  ;;  %v3189_v21 = vld [vmem:[#allocation2 + $0xd9] sm:$0xff]  ;;  %v7629_v25 = vpop.f32.mrf.mxu1  ;;  %v7652_v28 = vpop.f32.mrf.mxu3 }
 0x2d6   : > { %3632 = vst.msk [vmem:[%s7608_s30] sm:$0xff] %vm481_vm7, %v3624_v20 }
 0x2d7   : > { %v3486_v53 = vadd.f32 %v7538_v55, %v3450_v49  ;;  %5829 = vmatmul.msk.f32.gmra.mxu0 %vm473_vm0, %v3220_v14  ;;  %vm7625_vm3 = vcmp.ne.s32.totalorder %v9042_v51, 7 }
 0x2d8   : > { %v9044_v48 = vsel %vm7625_vm3, 4294967295, %v9043_v48 }
 0x2d9   : > { %3518 = vst.msk [vmem:[#allocation3 + $0x28] sm:$0xff] %vm481_vm7, %v3486_v53  ;;  %v7643_v53 = vpop.f32.mrf.mxu2 }
 0x2da   : > { %9045 = vst [vmem:[#allocation52_spill] sm:$0xff] %v9044_v48 }
 0x2dc   : > { %v3367_v14 = vpop.f32.mrf.mxu0  ;;  %v7631_v43 = vld [vmem:[#allocation4 + $0x10] sm:$0xff] }
 0x2dd   : > { %9046 = vst [vmem:[#allocation61_spill] sm:$0xff] %v7631_v43  ;;  %v7633_v40 = vld [vmem:[#allocation4 + $0xf] sm:$0xff]  ;;  %v3451_v57 = vadd.f32 %v3367_v14, %v7376_v46  ;;  %5841 = vmatmul.msk.f32.gmra.mxu1 %vm481_vm7, %v7631_v43  ;;  %v9048_v46 = vld [vmem:[#allocation50_spill] sm:$0xff]  ;;  %v7658_v16 = vpop.f32.mrf.mxu1 }
 0x2de   : > { %9047 = vst [vmem:[#allocation64_spill] sm:$0xff] %v7633_v40  ;;  %v3823_v38 = vld [vmem:[#allocation4 + $0x9] sm:$0xff]  ;;  %v3673_v20 = vsel %vm7619_vm14, %v7633_v40, 0.0  ;;  %v2245_v14 = vadd.f32 %v7351_v4, %v9048_v46 }
 0x2df   : > { %v3847_v49 = vsel %vm7625_vm3, %v3823_v38, 0.0  ;;  %5849 = vmatmul.msk.f32.gmra.mxu2 %vm481_vm7, %v3673_v20  ;;  %v3487_v51 = vadd.f32 %v7538_v55, %v3451_v57  ;;  %5830 = vmatmul.msk.f32.gmra.mxu0 %vm473_vm0, %v3189_v21  ;;  %v3222_v38 = vsel %vm9049_vm6, %v3190_v22, 0.0  ;;  %v7669_v22 = vpop.f32.mrf.mxu3 }
 0x2e0   : > { %5856 = vmatmul.msk.f32.vlgmr.msrb.gmra.mxu3 %vm481_vm7, %v3847_v49  ;;  %v2555_v20 = vadd.f32 %v7546_v63, %v2245_v14  ;;  %v3191_v63 = vld [vmem:[#allocation2 + $0xe9] sm:$0xff] }
 0x2e1   : > { %3519 = vst.msk [vmem:[#allocation3 + $0x30] sm:$0xff] %vm481_vm7, %v3487_v51  ;;  %v7663_v4 = vpop.f32.mrf.mxu2  ;;  %v9050_v51 = vld [vmem:[#allocation53_spill] sm:$0xff] }
 0x2e2   : > { %v2865_v21 = vadd.f32 %v7552_v17, %v2555_v20  ;;  %v2246_v46 = vadd.f32 %v7360_v47, %v9050_v51  ;;  %v3549_v14 = vld [vmem:[#allocation3 + $0x20] ss:$2 sm:$0xff]  ;;  %v3581_v20 = vld [vmem:[#allocation3 + $0x21] ss:$2 sm:$0xff] }
 0x2e3   : > { %v3610_v43 = vmax.f32 %v3549_v14, %v3581_v20  ;;  %v9052_v14 = vld [vmem:[#allocation30_spill] sm:$0xff] }
 0x2e4   : > { %v3370_v48 = vpop.f32.mrf.mxu0  ;;  %v3143_v12 = vadd.f32 %v7567_v37, %v2865_v21  ;;  %v9051_v37 = vld [vmem:[#allocation57_spill] sm:$0xff]  ;;  %v624_v20 = vand.u32 7, %v9052_v14 }
 0x2e5   : > { %v3452_v49 = vadd.f32 %v3370_v48, %v7391_v24  ;;  %v2556_v48 = vadd.f32 %v7570_v10, %v2246_v46  ;;  %v7675_v47 = vpop.f32.mrf.mxu1  ;;  %v2247_v21 = vadd.f32 %v7374_v52, %v9051_v37  ;;  %v3192_v10 = vld [vmem:[#allocation2 + $0xf1] sm:$0xff] }
 0x2e6   : > { %vm7702_vm10 = vcmp.ne.s32.totalorder %v624_v20, 0 }
 0x2e7   : > { %v3488_v57 = vadd.f32 %v7538_v55, %v3452_v49  ;;  %5831 = vmatmul.msk.f32.gmra.mxu0 %vm473_vm0, %v3222_v38  ;;  %v2866_v38 = vadd.f32 %v7574_v5, %v2556_v48  ;;  %v2557_v48 = vadd.f32 %v7584_v35, %v2247_v21  ;;  %v7687_v52 = vpop.f32.mrf.mxu3 }
 0x2e9   : > { %3520 = vst.msk [vmem:[#allocation3 + $0x38] sm:$0xff] %vm481_vm7, %v3488_v57  ;;  %v7680_v46 = vpop.f32.mrf.mxu2  ;;  %v3144_v5 = vadd.f32 %v7577_v23, %v2866_v38  ;;  %v9056_v38 = vand.u32 7, %v9038_v11 }
 0x2ec   : > { %v3373_v24 = vpop.f32.mrf.mxu0 }
 0x2ed   : > { %v3453_v17 = vadd.f32 %v3373_v24, %v3143_v12  ;;  %v7698_v35 = vpop.f32.mrf.mxu1 }
 0x2ef   : > { %v3489_v49 = vadd.f32 %v7538_v55, %v3453_v17  ;;  %5832 = vmatmul.msk.f32.gmra.mxu0 %vm473_vm0, %v3191_v63  ;;  %v3224_v63 = vsel %vm8997_vm4, %v3192_v10, 0.0  ;;  %vm7708_vm4 = vcmp.ne.s32.totalorder %v9056_v38, 7 }
 0x2f0   : > { %v3551_v57 = vld [vmem:[#allocation3 + $0x30] ss:$2 sm:$0xff]  ;;  %v3583_v51 = vld [vmem:[#allocation3 + $0x31] ss:$2 sm:$0xff] }
 0x2f1   : > { %v3611_v40 = vmax.f32 %v3551_v57, %v3583_v51  ;;  %3521 = vst.msk [vmem:[#allocation3 + $0x40] sm:$0xff] %vm481_vm7, %v3489_v49  ;;  %v2867_v49 = vadd.f32 %v7587_v6, %v2557_v48  ;;  %v3193_v51 = vld [vmem:[#allocation2 + $0xf9] sm:$0xff] }
 0x2f3   : > { %v3625_v12 = vmax.f32 %v3610_v43, %v3611_v40  ;;  %v9053_v43 = vld [vmem:[#allocation62_spill] sm:$0xff]  ;;  %v3145_v57 = vadd.f32 %v7593_v58, %v2867_v49  ;;  %v9059_v49 = vld [vmem:[#allocation65_spill] sm:$0xff] }
 0x2f4   : > { %v3376_v24 = vpop.f32.mrf.mxu0  ;;  %v2248_v61 = vadd.f32 %v7384_v39, %v9053_v43  ;;  %v7713_v39 = vpop.f32.mrf.mxu2  ;;  %v3194_v43 = vld [vmem:[#allocation2 + $0x101] sm:$0xff] }
 0x2f5   : > { %v3454_v17 = vadd.f32 %v3376_v24, %v3144_v5  ;;  %3641 = vst.msk [vmem:[#allocation4 + $0x18] sm:$0xff] %vm481_vm7, %v3625_v12  ;;  %v7741_v38 = vpop.f32.mrf.mxu1 }
 0x2f6   : > { %3633 = vst.msk [vmem:[%s7608_s30 + $0x8] sm:$0xff] %vm481_vm7, %v3625_v12  ;;  %v2558_v12 = vadd.f32 %v7599_v60, %v2248_v61 }
 0x2f7   : > { %v3490_v23 = vadd.f32 %v7538_v55, %v3454_v17  ;;  %5833 = vmatmul.msk.f32.gmra.mxu0 %vm473_vm0, %v3224_v63  ;;  %v7735_v17 = vpop.f32.mrf.mxu3 }
 0x2f8   : > { %v2868_v48 = vadd.f32 %v7601_v36, %v2558_v12  ;;  %v3226_v36 = vsel %vm7016_vm12, %v3194_v43, 0.0  ;;  %vm7794_vm12 = vcmp.ne.s32.totalorder %v624_v20, 7 }
 0x2f9   : > { %3522 = vst.msk [vmem:[#allocation3 + $0x48] sm:$0xff] %vm481_vm7, %v3490_v23  ;;  %v2249_v23 = vadd.f32 %v7398_v33, %v9059_v49 }
 0x2fa   : > { %v3146_v61 = vadd.f32 %v7614_v54, %v2868_v48 }
 0x2fc   : > { %v3379_v37 = vpop.f32.mrf.mxu0  ;;  %v7715_v21 = vld [vmem:[#allocation4 + $0x18] sm:$0xff] }
 0x2fd   : > { %v7717_v10 = vld [vmem:[#allocation4 + $0x17] sm:$0xff]  ;;  %v3455_v24 = vadd.f32 %v3379_v37, %v3145_v57  ;;  %5842 = vmatmul.msk.f32.gmra.mxu1 %vm481_vm7, %v7715_v21  ;;  %v2559_v37 = vadd.f32 %v7629_v25, %v2249_v23  ;;  %v7758_v49 = vpop.f32.mrf.mxu1 }
 0x2fe   : > { %v7719_v5 = vld [vmem:[#allocation4 + $0x11] sm:$0xff]  ;;  %v3674_v58 = vsel %vm7702_vm10, %v7717_v10, 0.0 }
 0x2ff   : > { %v3848_v63 = vsel %vm7708_vm4, %v7719_v5, 0.0  ;;  %5850 = vmatmul.msk.f32.gmra.mxu2 %vm481_vm7, %v3674_v58  ;;  %v3491_v60 = vadd.f32 %v7538_v55, %v3455_v24  ;;  %5834 = vmatmul.msk.f32.gmra.mxu0 %vm473_vm0, %v3193_v51  ;;  %v7746_v51 = vpop.f32.mrf.mxu2  ;;  %v2869_v24 = vadd.f32 %v7643_v53, %v2559_v37  ;;  %v9060_v58 = vld [vmem:[#allocation67_spill] sm:$0xff] }
 0x300   : > { %5857 = vmatmul.msk.f32.gmra.mxu3 %vm481_vm7, %v3848_v63  ;;  %v2250_v54 = vadd.f32 %v7407_v18, %v9060_v58  ;;  %v7754_v63 = vpop.f32.mrf.mxu3  ;;  %v3553_v53 = vld [vmem:[#allocation3 + $0x40] ss:$2 sm:$0xff]  ;;  %v3585_v23 = vld [vmem:[#allocation3 + $0x41] ss:$2 sm:$0xff] }
 0x301   : > { %3523 = vst.msk [vmem:[#allocation3 + $0x50] sm:$0xff] %vm481_vm7, %v3491_v60  ;;  %v3147_v44 = vadd.f32 %v7652_v28, %v2869_v24  ;;  %v3612_v37 = vmax.f32 %v3553_v53, %v3585_v23  ;;  %v9063_v53 = vld [vmem:[#allocation72_spill] sm:$0xff] }
 0x302   : > { %v2560_v25 = vadd.f32 %v7658_v16, %v2250_v54  ;;  %v2252_v45 = vadd.f32 %v7431_v0, %v9063_v53 }
 0x304   : > { %v3382_v57 = vpop.f32.mrf.mxu0  ;;  %v2870_v43 = vadd.f32 %v7663_v4, %v2560_v25 }
 0x305   : > { %v3456_v12 = vadd.f32 %v3382_v57, %v3146_v61 }
 0x306   : > { %v3148_v24 = vadd.f32 %v7669_v22, %v2870_v43  ;;  %v3197_v43 = vld [vmem:[#allocation2 + $0x119] sm:$0xff] }
 0x307   : > { %v3492_v33 = vadd.f32 %v7538_v55, %v3456_v12  ;;  %5835 = vmatmul.msk.f32.gmra.mxu0 %vm473_vm0, %v3226_v36  ;;  %v7764_v18 = vpop.f32.mrf.mxu2  ;;  %v9061_v36 = vld [vmem:[#allocation69_spill] sm:$0xff] }
 0x308   : > { %v2251_v16 = vadd.f32 %v7419_v8, %v9061_v36  ;;  %v9062_v8 = vld [vmem:[#allocation34_spill] sm:$0xff]  ;;  %v2562_v36 = vadd.f32 %v7698_v35, %v2252_v45 }
 0x309   : > { %3524 = vst.msk [vmem:[#allocation3 + $0x58] sm:$0xff] %vm481_vm7, %v3492_v33  ;;  %v7770_v33 = vpop.f32.mrf.mxu3 }
 0x30a   : > { %v2561_v54 = vadd.f32 %v7675_v47, %v2251_v16 }
 0x30c   : > { %v3385_v48 = vpop.f32.mrf.mxu0  ;;  %v2871_v25 = vadd.f32 %v7680_v46, %v2561_v54 }
 0x30d   : > { %v3457_v60 = vadd.f32 %v3385_v48, %v3147_v44  ;;  %v625_v48 = vand.u32 7, %v9062_v8 }
 0x30e   : > { %v3149_v23 = vadd.f32 %v7687_v52, %v2871_v25 }
 0x30f   : > { %v3493_v61 = vadd.f32 %v7538_v55, %v3457_v60  ;;  %5836 = vmatmul.msk.f32.gmra.mxu0 %vm473_vm0, %v7421_v41  ;;  %v3228_v41 = vsel %vm7064_vm1, %v7429_v9, 0.0  ;;  %v2505_v60 = vpop.f32.mrf.mxu1  ;;  %v2815_v9 = vpop.f32.mrf.mxu2  ;;  %vm7788_vm1 = vcmp.ne.s32.totalorder %v625_v48, 0 }
 0x310   : > { %v3555_v57 = vld [vmem:[#allocation3 + $0x50] ss:$2 sm:$0xff]  ;;  %v3587_v28 = vld [vmem:[#allocation3 + $0x51] ss:$2 sm:$0xff] }
 0x311   : > { %v3613_v12 = vmax.f32 %v3555_v57, %v3587_v28  ;;  %3525 = vst.msk [vmem:[#allocation3 + $0x60] sm:$0xff] %vm481_vm7, %v3493_v61  ;;  %v3093_v20 = vpop.f32.mrf.mxu3 }
 0x313   : > { %v3626_v4 = vmax.f32 %v3612_v37, %v3613_v12  ;;  %v2872_v37 = vadd.f32 %v7713_v39, %v2562_v36  ;;  %v9068_v12 = vld [vmem:[#allocation73_spill] sm:$0xff] }
 0x314   : > { %v3388_v58 = vpop.f32.mrf.mxu0 }
 0x315   : > { %v3458_v44 = vadd.f32 %v3388_v58, %v3148_v24  ;;  %3642 = vst.msk [vmem:[#allocation4 + $0x20] sm:$0xff] %vm481_vm7, %v3626_v4  ;;  %v2253_v24 = vadd.f32 %v7443_v30, %v9068_v12 }
 0x316   : > { %3634 = vst.msk [vmem:[%s7608_s30 + $0x10] sm:$0xff] %vm481_vm7, %v3626_v4  ;;  %v3198_v4 = vld [vmem:[#allocation2 + $0x121] sm:$0xff] }
 0x317   : > { %v3494_v22 = vadd.f32 %v7538_v55, %v3458_v44  ;;  %5837 = vmatmul.msk.f32.gmra.mxu0 %vm473_vm0, %v3228_v41  ;;  %v2508_v58 = vpop.f32.mrf.mxu1  ;;  %v3150_v41 = vadd.f32 %v7735_v17, %v2872_v37  ;;  %v2818_v54 = vpop.f32.mrf.mxu2  ;;  %v3230_v25 = vsel %vm7100_vm5, %v3198_v4, 0.0  ;;  %v2563_v39 = vadd.f32 %v7741_v38, %v2253_v24 }
 0x318   : > { %vm7856_vm5 = vcmp.ne.s32.totalorder %v625_v48, 7 }
 0x319   : > { %3526 = vst.msk [vmem:[#allocation3 + $0x68] sm:$0xff] %vm481_vm7, %v3494_v22  ;;  %v2873_v53 = vadd.f32 %v7746_v51, %v2563_v39  ;;  %v3096_v30 = vpop.f32.mrf.mxu3 }
 0x31b   : > { %v3151_v17 = vadd.f32 %v7754_v63, %v2873_v53  ;;  %v9071_v53 = vld [vmem:[#allocation32_spill] sm:$0xff] }
 0x31c   : > { %v3391_v61 = vpop.f32.mrf.mxu0  ;;  %v7799_v0 = vld [vmem:[#allocation4 + $0x20] sm:$0xff] }
 0x31d   : > { %v7801_v57 = vld [vmem:[#allocation4 + $0x1f] sm:$0xff]  ;;  %v3459_v16 = vadd.f32 %v3391_v61, %v3149_v23  ;;  %5843 = vmatmul.msk.f32.gmra.mxu1 %vm481_vm7, %v7799_v0 }
 0x31e   : > { %v7803_v28 = vld [vmem:[#allocation4 + $0x19] sm:$0xff]  ;;  %v3675_v14 = vsel %vm7788_vm1, %v7801_v57, 0.0  ;;  %v9069_v23 = vld [vmem:[#allocation74_spill] sm:$0xff] }
 0x31f   : > { %v3849_v52 = vsel %vm7794_vm12, %v7803_v28, 0.0  ;;  %5851 = vmatmul.msk.f32.gmra.mxu2 %vm481_vm7, %v3675_v14  ;;  %v3495_v35 = vadd.f32 %v7538_v55, %v3459_v16  ;;  %5838 = vmatmul.msk.f32.gmra.mxu0 %vm473_vm0, %v3197_v43  ;;  %v2254_v43 = vadd.f32 %v7450_v34, %v9069_v23  ;;  %v2511_v61 = vpop.f32.mrf.mxu1  ;;  %v2821_v16 = vpop.f32.mrf.mxu2  ;;  %v9070_v34 = vld [vmem:[#allocation75_spill] sm:$0xff]  ;;  %v4383_v47 = vsel %vm7625_vm3, %v7803_v28, 0.0 }
 0x320   : > { %5858 = vmatmul.msk.f32.gmra.mxu3 %vm481_vm7, %v3849_v52  ;;  %v3557_v14 = vld [vmem:[#allocation3 + $0x60] ss:$2 sm:$0xff]  ;;  %v3589_v51 = vld [vmem:[#allocation3 + $0x61] ss:$2 sm:$0xff]  ;;  %v2255_v24 = vadd.f32 %v7460_v42, %v9070_v34 }
 0x321   : > { %3527 = vst.msk [vmem:[#allocation3 + $0x70] sm:$0xff] %vm481_vm7, %v3495_v35  ;;  %v2564_v36 = vadd.f32 %v7758_v49, %v2254_v43  ;;  %v3614_v4 = vmax.f32 %v3557_v14, %v3589_v51 }
 0x322   : > { %v2565_v39 = vadd.f32 %v2505_v60, %v2255_v24 }
 0x323   : > { %v2874_v52 = vadd.f32 %v7764_v18, %v2564_v36 }
 0x324   : > { %v3394_v44 = vpop.f32.mrf.mxu0  ;;  %v2875_v23 = vadd.f32 %v2815_v9, %v2565_v39 }
 0x325   : > { %v3460_v22 = vadd.f32 %v3394_v44, %v3150_v41  ;;  %v3099_v41 = vpop.f32.mrf.mxu3  ;;  %v3152_v49 = vadd.f32 %v7770_v33, %v2874_v52 }
 0x326   : > { %v3153_v9 = vadd.f32 %v3093_v20, %v2875_v23  ;;  %v9078_v23 = vld [vmem:[#allocation78_spill] sm:$0xff] }
 0x327   : > { %v3496_v45 = vadd.f32 %v7538_v55, %v3460_v22  ;;  %5839 = vmatmul.msk.f32.gmra.mxu0 %vm473_vm0, %v3230_v25  ;;  %v2514_v18 = vpop.f32.mrf.mxu1  ;;  %v2824_v43 = vpop.f32.mrf.mxu2 }
 0x329   : > { %3528 = vst.msk [vmem:[#allocation3 + $0x78] sm:$0xff] %vm481_vm7, %v3496_v45  ;;  %v626_v45 = vand.u32 7, %v9071_v53 }
 0x32b   : > { %vm7850_vm0 = vcmp.ne.s32.totalorder %v626_v45, 0  ;;  %vm7904_vm2 = vcmp.ne.s32.totalorder %v626_v45, 7 }
 0x32c   : > { %v3397_v59 = vpop.f32.mrf.mxu0 }
 0x32d   : > { %v3461_v38 = vadd.f32 %v3397_v59, %v3151_v17  ;;  %v9072_v17 = vld [vmem:[#allocation76_spill] sm:$0xff]  ;;  %v3102_v36 = vpop.f32.mrf.mxu3 }
 0x32e   : > { %v2256_v59 = vadd.f32 %v7466_v26, %v9072_v17 }
 0x32f   : > { %v3497_v37 = vadd.f32 %v7538_v55, %v3461_v38  ;;  %v2827_v24 = vpop.f32.mrf.mxu2 }
 0x330   : > { %v3559_v35 = vld [vmem:[#allocation3 + $0x70] ss:$2 sm:$0xff]  ;;  %v3591_v12 = vld [vmem:[#allocation3 + $0x71] ss:$2 sm:$0xff]  ;;  %v2566_v52 = vadd.f32 %v2508_v58, %v2256_v59  ;;  %v2517_v58 = vpop.f32.mrf.mxu1 }
 0x331   : > { %v3615_v63 = vmax.f32 %v3559_v35, %v3591_v12  ;;  %3529 = vst.msk [vmem:[#allocation3 + $0x80] sm:$0xff] %vm481_vm7, %v3497_v37  ;;  %v9077_v12 = vld [vmem:[#allocation77_spill] sm:$0xff] }
 0x332   : > { %v2876_v20 = vadd.f32 %v2818_v54, %v2566_v52  ;;  %v2257_v34 = vadd.f32 %v7472_v62, %v9077_v12  ;;  %v2258_v54 = vadd.f32 %v7476_v19, %v9078_v23  ;;  %v9081_v23 = vld [vmem:[#allocation80_spill] sm:$0xff] }
 0x333   : > { %v3627_v44 = vmax.f32 %v3614_v4, %v3615_v63 }
 0x334   : > { %v3400_v25 = vpop.f32.mrf.mxu0  ;;  %v3154_v4 = vadd.f32 %v3096_v30, %v2876_v20  ;;  %v9079_v20 = vld [vmem:[#allocation79_spill] sm:$0xff] }
 0x335   : > { %v3462_v22 = vadd.f32 %v3400_v25, %v3152_v49  ;;  %3643 = vst.msk [vmem:[#allocation4 + $0x28] sm:$0xff] %vm481_vm7, %v3627_v44  ;;  %v2567_v49 = vadd.f32 %v2511_v61, %v2257_v34  ;;  %v3105_v25 = vpop.f32.mrf.mxu3  ;;  %v2259_v19 = vadd.f32 %v7482_v50, %v9079_v20 }
 0x336   : > { %3635 = vst.msk [vmem:[%s7608_s30 + $0x18] sm:$0xff] %vm481_vm7, %v3627_v44 }
 0x337   : > { %v3498_v42 = vadd.f32 %v7538_v55, %v3462_v22  ;;  %v2877_v39 = vadd.f32 %v2821_v16, %v2567_v49  ;;  %v2830_v59 = vpop.f32.mrf.mxu2 }
 0x339   : > { %3530 = vst.msk [vmem:[#allocation3 + $0x88] sm:$0xff] %vm481_vm7, %v3498_v42  ;;  %v2520_v42 = vpop.f32.mrf.mxu1  ;;  %v3155_v17 = vadd.f32 %v3099_v41, %v2877_v39 }
 0x33c   : > { %v3403_v38 = vpop.f32.mrf.mxu0  ;;  %v7860_v14 = vld [vmem:[#allocation4 + $0x28] sm:$0xff] }
 0x33d   : > { %v7862_v26 = vld [vmem:[#allocation4 + $0x27] sm:$0xff]  ;;  %v3463_v37 = vadd.f32 %v3403_v38, %v3153_v9  ;;  %5844 = vmatmul.msk.f32.gmra.mxu1 %vm481_vm7, %v7860_v14  ;;  %v2568_v9 = vadd.f32 %v2514_v18, %v2258_v54  ;;  %v2260_v54 = vadd.f32 %v7486_v2, %v9081_v23 }
 0x33e   : > { %v7864_v51 = vld [vmem:[#allocation4 + $0x21] sm:$0xff]  ;;  %v3676_v8 = vsel %vm7850_vm0, %v7862_v26, 0.0 }
 0x33f   : > { %v3850_v48 = vsel %vm7856_vm5, %v7864_v51, 0.0  ;;  %5852 = vmatmul.msk.f32.gmra.mxu2 %vm481_vm7, %v3676_v8  ;;  %v3499_v35 = vadd.f32 %v7538_v55, %v3463_v37  ;;  %v2878_v37 = vadd.f32 %v2824_v43, %v2568_v9  ;;  %v3108_v8 = vpop.f32.mrf.mxu3  ;;  %v2833_v43 = vpop.f32.mrf.mxu2 }
 0x340   : > { %5859 = vmatmul.msk.f32.gmra.mxu3 %vm481_vm7, %v3850_v48  ;;  %v3561_v52 = vld [vmem:[#allocation3 + $0x80] ss:$2 sm:$0xff]  ;;  %v3593_v30 = vld [vmem:[#allocation3 + $0x81] ss:$2 sm:$0xff] }
 0x341   : > { %3531 = vst.msk [vmem:[#allocation3 + $0x90] sm:$0xff] %vm481_vm7, %v3499_v35  ;;  %v3616_v35 = vmax.f32 %v3561_v52, %v3593_v30  ;;  %v3156_v41 = vadd.f32 %v3102_v36, %v2878_v37  ;;  %v2523_v18 = vpop.f32.mrf.mxu1  ;;  %v2570_v52 = vadd.f32 %v2520_v42, %v2260_v54 }
 0x343   : > { %v2880_v37 = vadd.f32 %v2830_v59, %v2570_v52 }
 0x344   : > { %v3406_v63 = vpop.f32.mrf.mxu0 }
 0x345   : > { %v3464_v44 = vadd.f32 %v3406_v63, %v3154_v4  ;;  %v2569_v63 = vadd.f32 %v2517_v58, %v2259_v19  ;;  %v3158_v20 = vadd.f32 %v3108_v8, %v2880_v37 }
 0x347   : > { %v3500_v22 = vadd.f32 %v7538_v55, %v3464_v44  ;;  %v9080_v44 = vld [vmem:[#allocation37_spill] sm:$0xff]  ;;  %v3111_v36 = vpop.f32.mrf.mxu3 }
 0x348   : > { %v627_v39 = vand.u32 7, %v9080_v44 }
 0x349   : > { %3532 = vst.msk [vmem:[#allocation3 + $0x98] sm:$0xff] %vm481_vm7, %v3500_v22  ;;  %v2879_v22 = vadd.f32 %v2827_v24, %v2569_v63 }
 0x34a   : > { %vm7898_vm8 = vcmp.ne.s32.totalorder %v627_v39, 0  ;;  %vm7952_vm13 = vcmp.ne.s32.totalorder %v627_v39, 7 }
 0x34b   : > { %v3157_v24 = vadd.f32 %v3105_v25, %v2879_v22  ;;  %v2526_v25 = vpop.f32.mrf.mxu1 }
 0x34c   : > { %v3409_v62 = vpop.f32.mrf.mxu0 }
 0x34d   : > { %v3465_v38 = vadd.f32 %v3409_v62, %v3155_v17  ;;  %v4382_v17 = vld [vmem:[#allocation4 + $0x51] sm:$0xff] }
 0x34f   : > { %v3501_v61 = vadd.f32 %v7538_v55, %v3465_v38  ;;  %v3114_v19 = vpop.f32.mrf.mxu3 }
 0x350   : > { %v3563_v16 = vld [vmem:[#allocation3 + $0x90] ss:$2 sm:$0xff]  ;;  %v3595_v48 = vld [vmem:[#allocation3 + $0x91] ss:$2 sm:$0xff] }
 0x351   : > { %v3617_v12 = vmax.f32 %v3563_v16, %v3595_v48  ;;  %3533 = vst.msk [vmem:[#allocation3 + $0xa0] sm:$0xff] %vm481_vm7, %v3501_v61  ;;  %v2836_v61 = vpop.f32.mrf.mxu2  ;;  %v9086_v16 = vld [vmem:[#allocation81_spill] sm:$0xff] }
 0x352   : > { %v2261_v48 = vadd.f32 %v7492_v31, %v9086_v16 }
 0x353   : > { %v3628_v34 = vmax.f32 %v3616_v35, %v3617_v12  ;;  %v2529_v63 = vpop.f32.mrf.mxu1 }
 0x354   : > { %v3412_v4 = vpop.f32.mrf.mxu0  ;;  %v2571_v12 = vadd.f32 %v2523_v18, %v2261_v48 }
 0x355   : > { %v3466_v49 = vadd.f32 %v3412_v4, %v3156_v41  ;;  %3644 = vst.msk [vmem:[#allocation4 + $0x30] sm:$0xff] %vm481_vm7, %v3628_v34 }
 0x356   : > { %3636 = vst.msk [vmem:[%s7608_s30 + $0x20] sm:$0xff] %vm481_vm7, %v3628_v34  ;;  %v2881_v34 = vadd.f32 %v2833_v43, %v2571_v12 }
 0x357   : > { %v3502_v50 = vadd.f32 %v7538_v55, %v3466_v49  ;;  %v9087_v49 = vld [vmem:[#allocation82_spill] sm:$0xff] }
 0x358   : > { %v2262_v59 = vadd.f32 %v7496_v32, %v9087_v49 }
 0x359   : > { %3534 = vst.msk [vmem:[#allocation3 + $0xa8] sm:$0xff] %vm481_vm7, %v3502_v50  ;;  %v2839_v22 = vpop.f32.mrf.mxu2  ;;  %v3159_v50 = vadd.f32 %v3111_v36, %v2881_v34  ;;  %v4033_v36 = vld [vmem:[#allocation10 + $0x48] sm:$0xff] }
 0x35a   : > { %v2572_v31 = vadd.f32 %v2526_v25, %v2262_v59  ;;  %v3949_v25 = vld [vmem:[#allocation10 + $0x38] sm:$0xff]  ;;  %4072 = vmatpush.msra.mxu2 %v4033_v36 }
 0x35b   : > { %v2532_v16 = vpop.f32.mrf.mxu1  ;;  %3988 = vmatpush.msrb.mxu1 %v3949_v25  ;;  %v3948_v25 = vld [vmem:[#allocation10 + $0x30] sm:$0xff] }
 0x35c   : > { %v3415_v62 = vpop.f32.mrf.mxu0  ;;  %v7908_v9 = vld [vmem:[#allocation4 + $0x30] sm:$0xff]  ;;  %v2882_v52 = vadd.f32 %v2836_v61, %v2572_v31 }
 0x35d   : > { %v7910_v2 = vld [vmem:[#allocation4 + $0x2f] sm:$0xff]  ;;  %v3467_v30 = vadd.f32 %v3415_v62, %v3157_v24  ;;  %5845 = vmatmul.msk.f32.gmra.mxu1 %vm481_vm7, %v7908_v9  ;;  %v3117_v24 = vpop.f32.mrf.mxu3 }
 0x35e   : > { %v7912_v38 = vld [vmem:[#allocation4 + $0x29] sm:$0xff]  ;;  %v3677_v53 = vsel %vm7898_vm8, %v7910_v2, 0.0  ;;  %v3160_v48 = vadd.f32 %v3114_v19, %v2882_v52  ;;  %3989 = vmatpush.msrb.mxu1 %v3948_v25  ;;  %v9097_v25 = vld [vmem:[#allocation48_spill] sm:$0xff]  ;;  %v4210_v40 = vsel %vm7788_vm1, %v7910_v2, 0.0 }
 0x35f   : > { %v3851_v45 = vsel %vm7904_vm2, %v7912_v38, 0.0  ;;  %5853 = vmatmul.msk.f32.gmra.mxu2 %vm481_vm7, %v3677_v53  ;;  %v3503_v42 = vadd.f32 %v7538_v55, %v3467_v30  ;;  %v9088_v53 = vld [vmem:[#allocation83_spill] sm:$0xff]  ;;  %v4385_v6 = vsel %vm7794_vm12, %v7912_v38, 0.0 }
 0x360   : > { %5860 = vmatmul.msk.f32.gmra.mxu3 %vm481_vm7, %v3851_v45  ;;  %v3565_v8 = vld [vmem:[#allocation3 + $0xa0] ss:$2 sm:$0xff]  ;;  %v3597_v62 = vld [vmem:[#allocation3 + $0xa1] ss:$2 sm:$0xff]  ;;  %v2263_v45 = vadd.f32 %v7502_v13, %v9088_v53  ;;  %v2265_v53 = vadd.f32 %v7512_v56, %v7271_v7 }
 0x361   : > { %3535 = vst.msk [vmem:[#allocation3 + $0xb0] sm:$0xff] %vm481_vm7, %v3503_v42  ;;  %v3618_v37 = vmax.f32 %v3565_v8, %v3597_v62  ;;  %v4125_v42 = vld [vmem:[#allocation10 + $0x58] sm:$0xff]  ;;  %v9089_v13 = vld [vmem:[#allocation35_spill] sm:$0xff] }
 0x362   : > { %4164 = vmatpush.msra.mxu3 %v4125_v42  ;;  %v2573_v12 = vadd.f32 %v2529_v63, %v2263_v45  ;;  %v628_v34 = vand.u32 7, %v9089_v13 }
 0x363   : > { %v2535_v31 = vpop.f32.mrf.mxu1 }
 0x364   : > { %v3418_v35 = vpop.f32.mrf.mxu0  ;;  %vm7946_vm9 = vcmp.ne.s32.totalorder %v628_v34, 0  ;;  %v2575_v36 = vadd.f32 %v2535_v31, %v2265_v53  ;;  %vm7998_vm6 = vcmp.ne.s32.totalorder %v628_v34, 7 }
 0x365   : > { %v3468_v41 = vadd.f32 %v3418_v35, %v3158_v20  ;;  %v2842_v20 = vpop.f32.mrf.mxu2  ;;  %v3120_v59 = vpop.f32.mrf.mxu3 }
 0x367   : > { %v3504_v4 = vadd.f32 %v7538_v55, %v3468_v41 }
 0x369   : > { %3536 = vst.msk [vmem:[#allocation3 + $0xb8] sm:$0xff] %vm481_vm7, %v3504_v4  ;;  %v2883_v4 = vadd.f32 %v2839_v22, %v2573_v12  ;;  %v2266_v12 = vadd.f32 %v7520_v15, %v7284_v3 }
 0x36b   : > { %v3161_v22 = vadd.f32 %v3117_v24, %v2883_v4 }
 0x36c   : > { %v3421_v23 = vpop.f32.mrf.mxu0 }
 0x36d   : > { %v3469_v54 = vadd.f32 %v3421_v23, %v3159_v50  ;;  %v9090_v50 = vld [vmem:[#allocation84_spill] sm:$0xff]  ;;  %v2845_v24 = vpop.f32.mrf.mxu2  ;;  %v3123_v45 = vpop.f32.mrf.mxu3 }
 0x36e   : > { %v2264_v23 = vadd.f32 %v7506_v27, %v9090_v50 }
 0x36f   : > { %v3505_v18 = vadd.f32 %v7538_v55, %v3469_v54 }
 0x370   : > { %v3567_v43 = vld [vmem:[#allocation3 + $0xb0] ss:$2 sm:$0xff]  ;;  %v3599_v30 = vld [vmem:[#allocation3 + $0xb1] ss:$2 sm:$0xff]  ;;  %v2574_v52 = vadd.f32 %v2532_v16, %v2264_v23  ;;  %v2538_v16 = vpop.f32.mrf.mxu1 }
 0x371   : > { %v3619_v32 = vmax.f32 %v3567_v43, %v3599_v30  ;;  %3537 = vst.msk [vmem:[#allocation3 + $0xc0] sm:$0xff] %vm481_vm7, %v3505_v18  ;;  %v2576_v4 = vadd.f32 %v2538_v16, %v2266_v12 }
 0x372   : > { %v2884_v43 = vadd.f32 %v2842_v20, %v2574_v52 }
 0x373   : > { %v3629_v61 = vmax.f32 %v3618_v37, %v3619_v32 }
 0x374   : > { %v3424_v35 = vpop.f32.mrf.mxu0  ;;  %v3162_v37 = vadd.f32 %v3120_v59, %v2884_v43 }
 0x375   : > { %v3470_v41 = vadd.f32 %v3424_v35, %v3160_v48  ;;  %3645 = vst.msk [vmem:[#allocation4 + $0x38] sm:$0xff] %vm481_vm7, %v3629_v61  ;;  %v4032_v48 = vld [vmem:[#allocation10 + $0x40] sm:$0xff]  ;;  %v2848_v20 = vpop.f32.mrf.mxu2  ;;  %v3126_v56 = vpop.f32.mrf.mxu3 }
 0x376   : > { %3637 = vst.msk [vmem:[%s7608_s30 + $0x28] sm:$0xff] %vm481_vm7, %v3629_v61  ;;  %v2885_v61 = vadd.f32 %v2845_v24, %v2575_v36  ;;  %4073 = vmatpush.msra.mxu2 %v4032_v48  ;;  %v2886_v23 = vadd.f32 %v2848_v20, %v2576_v4 }
 0x377   : > { %v3506_v49 = vadd.f32 %v7538_v55, %v3470_v41 }
 0x378   : > { %v3163_v7 = vadd.f32 %v3123_v45, %v2885_v61  ;;  %v2541_v31 = vpop.f32.mrf.mxu1  ;;  %v3164_v24 = vadd.f32 %v3126_v56, %v2886_v23 }
 0x379   : > { %3538 = vst.msk [vmem:[#allocation3 + $0xc8] sm:$0xff] %vm481_vm7, %v3506_v49 }
 0x37c   : > { %v3427_v54 = vpop.f32.mrf.mxu0  ;;  %v7956_v8 = vld [vmem:[#allocation4 + $0x38] sm:$0xff] }
 0x37d   : > { %v7958_v27 = vld [vmem:[#allocation4 + $0x37] sm:$0xff]  ;;  %v3471_v18 = vadd.f32 %v3427_v54, %v3161_v22  ;;  %5846 = vmatmul.msk.f32.gmra.mxu1 %vm481_vm7, %v7956_v8 }
 0x37e   : > { %v7960_v62 = vld [vmem:[#allocation4 + $0x31] sm:$0xff]  ;;  %v3678_v44 = vsel %vm7946_vm9, %v7958_v27, 0.0 }
 0x37f   : > { %v3852_v39 = vsel %vm7952_vm13, %v7960_v62, 0.0  ;;  %5854 = vmatmul.msk.f32.gmra.mxu2 %vm481_vm7, %v3678_v44  ;;  %v3507_v30 = vadd.f32 %v7538_v55, %v3471_v18  ;;  %v2267_v18 = vadd.f32 %v7526_v29, %v7291_v1  ;;  %v4124_v44 = vld [vmem:[#allocation10 + $0x50] sm:$0xff]  ;;  %v4386_v46 = vsel %vm7856_vm5, %v7960_v62, 0.0 }
 0x380   : > { %5861 = vmatmul.msk.f32.gmra.mxu3 %vm481_vm7, %v3852_v39  ;;  %v3569_v59 = vld [vmem:[#allocation3 + $0xc0] ss:$2 sm:$0xff]  ;;  %v3601_v50 = vld [vmem:[#allocation3 + $0xc1] ss:$2 sm:$0xff]  ;;  %v2851_v39 = vpop.f32.mrf.mxu2  ;;  %v2544_v48 = vpop.f32.mrf.mxu1 }
 0x381   : > { %3539 = vst.msk [vmem:[#allocation3 + $0xd0] sm:$0xff] %vm481_vm7, %v3507_v30  ;;  %v3620_v3 = vmax.f32 %v3569_v59, %v3601_v50  ;;  %4165 = vmatpush.msra.mxu3 %v4124_v44  ;;  %v2577_v53 = vadd.f32 %v2541_v31, %v2267_v18  ;;  %v4301_v31 = vld [vmem:[#allocation10 + $0x78] sm:$0xff] }
 0x382   : > { %4340 = vmatpush.msrb.mxu2 %v4301_v31  ;;  %v9102_v18 = vld [vmem:[#allocation64_spill] sm:$0xff]  ;;  %v4117_v31 = vsel %vm7794_vm12, %v7864_v51, 0.0  ;;  %vm490_vm12 = vcmask 518144  }
 0x383   : > { %v2887_v1 = vadd.f32 %v2851_v39, %v2577_v53  ;;  %v9104_v39 = vld [vmem:[#allocation61_spill] sm:$0xff]  ;;  %v4209_v53 = vsel %vm7702_vm10, %v7862_v26, 0.0 }
 0x384   : > { %v3430_v32 = vpop.f32.mrf.mxu0 }
 0x385   : > { %v3472_v42 = vadd.f32 %v3430_v32, %v3162_v37  ;;  %v3129_v37 = vpop.f32.mrf.mxu3  ;;  %v9095_v32 = vld [vmem:[#allocation39_spill] sm:$0xff] }
 0x386   : > { %v629_v36 = vand.u32 7, %v9095_v32  ;;  %v3165_v20 = vadd.f32 %v3129_v37, %v2887_v1 }
 0x387   : > { %v3508_v35 = vadd.f32 %v7538_v55, %v3472_v42  ;;  %v9096_v42 = vld [vmem:[#allocation85_spill] sm:$0xff] }
 0x388   : > { %v2268_v16 = vadd.f32 %v9097_v25, %v9096_v42  ;;  %vm7992_vm15 = vcmp.ne.s32.totalorder %v629_v36, 0  ;;  %v2854_v12 = vpop.f32.mrf.mxu2 }
 0x389   : > { %3540 = vst.msk [vmem:[#allocation3 + $0xd8] sm:$0xff] %vm481_vm7, %v3508_v35  ;;  %v9100_v35 = vmov 0 }
 0x38a   : > { %v9101_v35 = vsel %vm7998_vm6, 4294967295, %v9100_v35 }
 0x38c   : > { %v3433_v41 = vpop.f32.mrf.mxu0 }
 0x38d   : > { %v3473_v49 = vadd.f32 %v3433_v41, %v3163_v7 }
 0x38f   : > { %v3509_v22 = vadd.f32 %v7538_v55, %v3473_v49  ;;  %v2578_v49 = vadd.f32 %v2544_v48, %v2268_v16  ;;  %v3941_v16 = vsel %vm7702_vm10, %v7801_v57, 0.0 }
 0x390   : > { %v3571_v54 = vld [vmem:[#allocation3 + $0xd0] ss:$2 sm:$0xff]  ;;  %v3603_v52 = vld [vmem:[#allocation3 + $0xd1] ss:$2 sm:$0xff] }
 0x391   : > { %v3621_v15 = vmax.f32 %v3571_v54, %v3603_v52  ;;  %3541 = vst.msk [vmem:[#allocation3 + $0xe0] sm:$0xff] %vm481_vm7, %v3509_v22  ;;  %v2888_v50 = vadd.f32 %v2854_v12, %v2578_v49  ;;  %v3132_v22 = vpop.f32.mrf.mxu3  ;;  %v4300_v49 = vld [vmem:[#allocation10 + $0x70] sm:$0xff] }
 0x392   : > { %4341 = vmatpush.msrb.mxu2 %v4300_v49 }
 0x393   : > { %v3630_v43 = vmax.f32 %v3620_v3, %v3621_v15  ;;  %v3166_v54 = vadd.f32 %v3132_v22, %v2888_v50  ;;  %v3939_v15 = vsel %vm7556_vm11, %v9102_v18, 0.0  ;;  %v4392_v50 = vld [vmem:[#allocation10 + $0x80] sm:$0xff]  ;;  %v4116_v22 = vsel %vm7708_vm4, %v7803_v28, 0.0 }
 0x394   : > { %v3436_v30 = vpop.f32.mrf.mxu0  ;;  %v4208_v3 = vsel %vm7619_vm14, %v7801_v57, 0.0  ;;  %v4384_v28 = vsel %vm7708_vm4, %v7864_v51, 0.0 }
 0x395   : > { %v3474_v45 = vadd.f32 %v3436_v30, %v3164_v24  ;;  %3646 = vst.msk [vmem:[#allocation4 + $0x40] sm:$0xff] %vm481_vm7, %v3630_v43  ;;  %v4393_v24 = vld [vmem:[#allocation10 + $0x88] sm:$0xff] }
 0x396   : > { %3638 = vst.msk [vmem:[%s7608_s30 + $0x30] sm:$0xff] %vm481_vm7, %v3630_v43  ;;  %v4217_v43 = vld [vmem:[#allocation10 + $0x68] sm:$0xff]  ;;  %4432 = vmatpush.msrb.mxu3 %v4393_v24  ;;  %v4119_v24 = vsel %vm7904_vm2, %v7960_v62, 0.0 }
 0x397   : > { %v3510_v29 = vadd.f32 %v7538_v55, %v3474_v45  ;;  %4256 = vmatpush.msra.mxu1 %v4217_v43  ;;  %v3940_v45 = vsel %vm7619_vm14, %v7717_v10, 0.0  ;;  %v8109_v43 = vpop.f32.mrf.mxu2  ;;  %vm487_vm14 = vcmask 258048  }
 0x398   : > { %4433 = vmatpush.msrb.mxu3 %v4392_v50 }
 0x399   : > { %3542 = vst.msk [vmem:[#allocation3 + $0xe8] sm:$0xff] %vm481_vm7, %v3510_v29 }
 0x39c   : > { %v3439_v7 = vpop.f32.mrf.mxu0  ;;  %v8002_v56 = vld [vmem:[#allocation4 + $0x40] sm:$0xff] }
 0x39d   : > { %v8004_v41 = vld [vmem:[#allocation4 + $0x3f] sm:$0xff]  ;;  %v3475_v59 = vadd.f32 %v3439_v7, %v3165_v20  ;;  %5847 = vmatmul.msk.f32.gmra.mxu1 %vm481_vm7, %v8002_v56  ;;  %v3942_v20 = vsel %vm7788_vm1, %v7862_v26, 0.0 }
 0x39e   : > { %v8006_v4 = vld [vmem:[#allocation4 + $0x39] sm:$0xff]  ;;  %v3679_v13 = vsel %vm7992_vm15, %v8004_v41, 0.0  ;;  %v4212_v33 = vsel %vm7898_vm8, %v8004_v41, 0.0 }
 0x39f   : > { %v3853_v34 = vsel %vm7998_vm6, %v8006_v4, 0.0  ;;  %5855 = vmatmul.msk.f32.gmra.mxu2 %vm481_vm7, %v3679_v13  ;;  %v3511_v23 = vadd.f32 %v7538_v55, %v3475_v59  ;;  %vm8043_vm6 = vcmp.ne.s32.totalorder %v629_v36, 7  ;;  %v4216_v36 = vld [vmem:[#allocation10 + $0x60] sm:$0xff]  ;;  %v3943_v59 = vsel %vm7850_vm0, %v7910_v2, 0.0 }
 0x3a0   : > { %5862 = vmatmul.msk.f32.gmra.mxu3 %vm481_vm7, %v3853_v34  ;;  %v3573_v37 = vld [vmem:[#allocation3 + $0xe0] ss:$2 sm:$0xff]  ;;  %v3605_v32 = vld [vmem:[#allocation3 + $0xe1] ss:$2 sm:$0xff]  ;;  %4257 = vmatpush.msra.mxu1 %v4216_v36  ;;  %v4115_v34 = vsel %vm7625_vm3, %v7719_v5, 0.0  ;;  %v3945_v5 = vsel %vm7946_vm9, %v8004_v41, 0.0 }
 0x3a1   : > { %3543 = vst.msk [vmem:[#allocation3 + $0xf0] sm:$0xff] %vm481_vm7, %v3511_v23  ;;  %v3622_v42 = vmax.f32 %v3573_v37, %v3605_v32  ;;  %v3944_v23 = vsel %vm7898_vm8, %v7958_v27, 0.0  ;;  %v4387_v61 = vsel %vm7904_vm2, %v8006_v4, 0.0  ;;  %v4390_v63 = vsel %vm8043_vm6, %v4382_v17, 0.0 }
 0x3a4   : > { %v3442_v52 = vpop.f32.mrf.mxu0 }
 0x3a5   : > { %v3476_v44 = vadd.f32 %v3442_v52, %v3166_v54  ;;  %5864 = vmatmul.msk.f32.vlgmr.msrb.gmra.mxu1 %vm481_vm7, %v3939_v15  ;;  %v4118_v15 = vsel %vm7856_vm5, %v7912_v38, 0.0  ;;  %vm4939_vm5 = vcmask 519168  }
 0x3a7   : > { %5872 = vmatmul.msk.f32.vlgmr.msra.gmra.mxu2 %vm481_vm7, %v9104_v39  ;;  %v3512_v30 = vadd.f32 %v7538_v55, %v3476_v44  ;;  %v8097_v44 = vpop.f32.mrf.mxu1  ;;  %v4207_v39 = vsel %vm7556_vm11, %v7717_v10, 0.0  ;;  %v4120_v10 = vsel %vm7952_vm13, %v8006_v4, 0.0  ;;  %vm9109_vm11 = vnez %v9101_v35 }
 0x3a9   : > { %3544 = vst.msk [vmem:[#allocation3 + $0xf8] sm:$0xff] %vm481_vm7, %v3512_v30 }
 0x3ad   : > { %5865 = vmatmul.msk.f32.gmra.mxu1 %vm481_vm7, %v3940_v45 }
 0x3af   : > { %5873 = vmatmul.msk.f32.gmra.mxu2 %vm481_vm7, %v7715_v21  ;;  %v8111_v30 = vpop.f32.mrf.mxu1 }
 0x3b0   : > { %v3575_v1 = vld [vmem:[#allocation3 + $0xf0] ss:$2 sm:$0xff]  ;;  %v3607_v29 = vld [vmem:[#allocation3 + $0xf1] ss:$2 sm:$0xff] }
 0x3b1   : > { %v3623_v55 = vmax.f32 %v3575_v1, %v3607_v29  ;;  %v4211_v29 = vsel %vm7850_vm0, %v7958_v27, 0.0  ;;  %vm4916_vm0 = vcmask 523264  }
 0x3b3   : > { %v3631_v25 = vmax.f32 %v3622_v42, %v3623_v55 }
 0x3b5   : > { %5866 = vmatmul.msk.f32.gmra.mxu1 %vm481_vm7, %v3941_v16  ;;  %3647 = vst.msk [vmem:[#allocation4 + $0x48] sm:$0xff] %vm481_vm7, %v3631_v25  ;;  %v4298_v16 = vld [vmem:[#allocation4 + $0x50] sm:$0xff] }
 0x3b6   : > { %3639 = vst.msk [vmem:[%s7608_s30 + $0x38] sm:$0xff] %vm481_vm7, %v3631_v25 }
 0x3b7   : > { %5874 = vmatmul.msk.f32.gmra.mxu2 %vm481_vm7, %v7799_v0  ;;  %v8125_v45 = vpop.f32.mrf.mxu1 }
 0x3bc   : > { %v8050_v12 = vld [vmem:[#allocation4 + $0x41] sm:$0xff]  ;;  %v4114_v37 = vld [vmem:[#allocation4 + $0x49] sm:$0xff] }
 0x3bd   : > { %5867 = vmatmul.msk.f32.gmra.mxu1 %vm481_vm7, %v3942_v20  ;;  %v3854_v7 = vsel %vm8043_vm6, %v8050_v12, 0.0  ;;  %v3938_v54 = vld [vmem:[#allocation4 + $0x47] sm:$0xff]  ;;  %v4121_v57 = vsel %vm9109_vm11, %v8050_v12, 0.0  ;;  %v4122_v26 = vsel %vm8043_vm6, %v4114_v37, 0.0  ;;  %v4206_v41 = vld [vmem:[#allocation4 + $0x4f] sm:$0xff]  ;;  %v4388_v60 = vsel %vm7952_vm13, %v8050_v12, 0.0 }
 0x3be   : > { %5863 = vmatmul.msk.f32.gmra.mxu3 %vm481_vm7, %v3854_v7  ;;  %v3946_v52 = vsel %vm7992_vm15, %v3938_v54, 0.0  ;;  %v4030_v18 = vld [vmem:[#allocation4 + $0x48] sm:$0xff]  ;;  %v4213_v58 = vsel %vm7946_vm9, %v3938_v54, 0.0  ;;  %v4214_v19 = vsel %vm7992_vm15, %v4206_v41, 0.0 }
 0x3bf   : > { %5875 = vmatmul.msk.f32.gmra.mxu2 %vm481_vm7, %v7860_v14  ;;  %v8139_v32 = vpop.f32.mrf.mxu1 }
 0x3c5   : > { %5868 = vmatmul.msk.f32.gmra.mxu1 %vm481_vm7, %v3943_v59 }
 0x3c6   : > { %5880 = vmatmul.msk.f32.vlgmr.msra.gmra.mxu3 %vm481_vm7, %v4115_v34  ;;  %v4389_v34 = vsel %vm9109_vm11, %v4114_v37, 0.0 }
 0x3c7   : > { %5876 = vmatmul.msk.f32.gmra.mxu2 %vm481_vm7, %v7908_v9  ;;  %v8152_v1 = vpop.f32.mrf.mxu1 }
 0x3cd   : > { %5869 = vmatmul.msk.f32.gmra.mxu1 %vm481_vm7, %v3944_v23 }
 0x3ce   : > { %5881 = vmatmul.msk.f32.gmra.mxu3 %vm481_vm7, %v4116_v22 }
 0x3cf   : > { %5877 = vmatmul.msk.f32.gmra.mxu2 %vm481_vm7, %v7956_v8 }
 0x3d5   : > { %5870 = vmatmul.msk.f32.gmra.mxu1 %vm481_vm7, %v3945_v5 }
 0x3d6   : > { %5882 = vmatmul.msk.f32.gmra.mxu3 %vm481_vm7, %v4117_v31 }
 0x3d7   : > { %5878 = vmatmul.msk.f32.gmra.mxu2 %vm481_vm7, %v8002_v56 }
 0x3da   : > { %v8168_v42 = vpop.f32.mrf.mxu1 }
 0x3dd   : > { %5871 = vmatmul.msk.f32.gmra.mxu1 %vm481_vm7, %v3946_v52 }
 0x3de   : > { %5883 = vmatmul.msk.f32.gmra.mxu3 %vm481_vm7, %v4118_v15 }
 0x3df   : > { %5879 = vmatmul.msk.f32.gmra.mxu2 %vm481_vm7, %v4030_v18 }
 0x3e5   : > { %5888 = vmatmul.msk.f32.vlgmr.msra.gmra.mxu1 %vm481_vm7, %v4207_v39 }
 0x3e6   : > { %5884 = vmatmul.msk.f32.gmra.mxu3 %vm481_vm7, %v4119_v24 }
 0x3e7   : > { %5896 = vmatmul.msk.f32.vlgmr.msrb.gmra.mxu2 %vm481_vm7, %v7715_v21  ;;  %v8123_v21 = vpop.f32.mrf.mxu2 }
 0x3ed   : > { %5889 = vmatmul.msk.f32.gmra.mxu1 %vm481_vm7, %v4208_v3 }
 0x3ee   : > { %5885 = vmatmul.msk.f32.gmra.mxu3 %vm481_vm7, %v4120_v10 }
 0x3ef   : > { %5897 = vmatmul.msk.f32.gmra.mxu2 %vm481_vm7, %v7799_v0  ;;  %v8137_v0 = vpop.f32.mrf.mxu2 }
 0x3f5   : > { %5890 = vmatmul.msk.f32.gmra.mxu1 %vm481_vm7, %v4209_v53 }
 0x3f6   : > { %5886 = vmatmul.msk.f32.gmra.mxu3 %vm481_vm7, %v4121_v57 }
 0x3f7   : > { %5898 = vmatmul.msk.f32.gmra.mxu2 %vm481_vm7, %v7860_v14  ;;  %v8150_v14 = vpop.f32.mrf.mxu2 }
 0x3fa   : > { %v8184_v55 = vpop.f32.mrf.mxu1 }
 0x3fd   : > { %5891 = vmatmul.msk.f32.gmra.mxu1 %vm481_vm7, %v4210_v40 }
 0x3fe   : > { %5887 = vmatmul.msk.f32.gmra.mxu3 %vm481_vm7, %v4122_v26 }
 0x3ff   : > { %5899 = vmatmul.msk.f32.gmra.mxu2 %vm481_vm7, %v7908_v9  ;;  %v8164_v9 = vpop.f32.mrf.mxu3  ;;  %v8166_v2 = vpop.f32.mrf.mxu2 }
 0x405   : > { %5892 = vmatmul.msk.f32.gmra.mxu1 %vm481_vm7, %v4211_v29 }
 0x406   : > { %5904 = vmatmul.msk.f32.vlgmr.msrb.gmra.mxu3 %vm481_vm7, %v4383_v47  ;;  %v3800_v47 = vadd.f32 %v8109_v43, %v8097_v44  ;;  %v8267_v44 = vld [vmem:[%s9110_s4] ss:$0 sm:$0xff] }
 0x407   : > { %5900 = vmatmul.msk.f32.gmra.mxu2 %vm481_vm7, %v7956_v8  ;;  %v8180_v8 = vpop.f32.mrf.mxu3  ;;  %v8182_v27 = vpop.f32.mrf.mxu2 }
 0x40d   : > { %5893 = vmatmul.msk.f32.gmra.mxu1 %vm481_vm7, %v4212_v33  ;;  %v3923_v33 = vadd.f32 %v8164_v9, %v3800_v47 }
 0x40e   : > { %5905 = vmatmul.msk.f32.gmra.mxu3 %vm481_vm7, %v4384_v28 }
 0x40f   : > { %5901 = vmatmul.msk.f32.gmra.mxu2 %vm481_vm7, %v8002_v56  ;;  %v8194_v51 = vpop.f32.mrf.mxu3  ;;  %v8196_v56 = vpop.f32.mrf.mxu2 }
 0x415   : > { %5894 = vmatmul.msk.f32.gmra.mxu1 %vm481_vm7, %v4213_v58 }
 0x416   : > { %5906 = vmatmul.msk.f32.gmra.mxu3 %vm481_vm7, %v4385_v6 }
 0x417   : > { %5902 = vmatmul.msk.f32.gmra.mxu2 %vm481_vm7, %v4030_v18  ;;  %v8208_v38 = vpop.f32.mrf.mxu3 }
 0x41a   : > { %v8198_v25 = vpop.f32.mrf.mxu1 }
 0x41d   : > { %5895 = vmatmul.msk.f32.gmra.mxu1 %vm481_vm7, %v4214_v19  ;;  %v3803_v19 = vadd.f32 %v8123_v21, %v8111_v30  ;;  %v3806_v30 = vadd.f32 %v8137_v0, %v8125_v45 }
 0x41e   : > { %5907 = vmatmul.msk.f32.gmra.mxu3 %vm481_vm7, %v4386_v46 }
 0x41f   : > { %5903 = vmatmul.msk.f32.gmra.mxu2 %vm481_vm7, %v4298_v16  ;;  %v8216_v36 = vpop.f32.mrf.mxu3 }
 0x422   : > { %v8210_v20 = vpop.f32.mrf.mxu2  ;;  %v3991_v7 = vpop.f32.mrf.mxu1 }
 0x423   : > { %v4015_v58 = vadd.f32 %v3991_v7, %v3923_v33 }
 0x426   : > { %5908 = vmatmul.msk.f32.gmra.mxu3 %vm481_vm7, %v4387_v61  ;;  %v3924_v61 = vadd.f32 %v8180_v8, %v3803_v19 }
 0x427   : > { %v8222_v59 = vpop.f32.mrf.mxu3 }
 0x42a   : > { %v4075_v49 = vpop.f32.mrf.mxu2  ;;  %v3994_v62 = vpop.f32.mrf.mxu1 }
 0x42b   : > { %v4099_v16 = vadd.f32 %v4075_v49, %v4015_v58  ;;  %v3925_v49 = vadd.f32 %v8194_v51, %v3806_v30 }
 0x42e   : > { %5909 = vmatmul.msk.f32.gmra.mxu3 %vm481_vm7, %v4388_v60 }
 0x42f   : > { %v8227_v4 = vpop.f32.mrf.mxu3 }
 0x432   : > { %v4078_v13 = vpop.f32.mrf.mxu2  ;;  %v3997_v50 = vpop.f32.mrf.mxu1 }
 0x436   : > { %5910 = vmatmul.msk.f32.gmra.mxu3 %vm481_vm7, %v4389_v34  ;;  %v4016_v34 = vadd.f32 %v3994_v62, %v3924_v61 }
 0x438   : > { %v4100_v7 = vadd.f32 %v4078_v13, %v4016_v34 }
 0x43a   : > { %v4081_v23 = vpop.f32.mrf.mxu2  ;;  %v4000_v22 = vpop.f32.mrf.mxu1 }
 0x43e   : > { %5911 = vmatmul.msk.f32.gmra.mxu3 %vm481_vm7, %v4390_v63  ;;  %vm4479_vm7 = vcmask 261120  }
 0x441   : > { %v8232_v12 = vpop.f32.mrf.mxu3 }
 0x442   : > { %v4084_v5 = vpop.f32.mrf.mxu2  ;;  %v8234_v54 = vpop.f32.mrf.mxu1 }
 0x449   : > { %v4167_v31 = vpop.f32.mrf.mxu3 }
 0x44a   : > { %v8236_v35 = vpop.f32.mrf.mxu2  ;;  %v8238_v18 = vpop.f32.mrf.mxu1  ;;  %v4191_v46 = vadd.f32 %v4167_v31, %v4099_v16  ;;  %v4017_v31 = vadd.f32 %v3997_v50, %v3925_v49  ;;  %v3809_v16 = vadd.f32 %v8150_v14, %v8139_v32 }
 0x44c   : > { %v4101_v33 = vadd.f32 %v4081_v23, %v4017_v31  ;;  %v3812_v23 = vadd.f32 %v8166_v2, %v8152_v1  ;;  %v4641_v31 = vld [vmem:[#allocation13 + $0x50] sm:$0xff] }
 0x451   : > { %v4170_v52 = vpop.f32.mrf.mxu3 }
 0x452   : > { %v8240_v15 = vpop.f32.mrf.mxu2  ;;  %v8242_v24 = vpop.f32.mrf.mxu1  ;;  %v4192_v21 = vadd.f32 %v4170_v52, %v4100_v7  ;;  %v3926_v52 = vadd.f32 %v8208_v38, %v3809_v16  ;;  %v3927_v38 = vadd.f32 %v8216_v36, %v3812_v23  ;;  %v4639_v23 = vld [vmem:[#allocation13 + $0x40] sm:$0xff] }
 0x454   : > { %v4018_v51 = vadd.f32 %v4000_v22, %v3926_v52  ;;  %v4642_v22 = vld [vmem:[#allocation13 + $0x58] sm:$0xff]  ;;  %v4019_v1 = vadd.f32 %v8234_v54, %v3927_v38  ;;  %v4570_v54 = vld [vmem:[#allocation13 + $0x30] sm:$0xff] }
 0x455   : > { %4661 = vmatpush.msra.mxu3 %v4642_v22 }
 0x457   : > { %4662 = vmatpush.msra.mxu3 %v4641_v31  ;;  %v4759_v31 = vld [vmem:[#allocation13 + $0xb0] sm:$0xff] }
 0x459   : > { %v4173_v39 = vpop.f32.mrf.mxu3 }
 0x45a   : > { %v8244_v3 = vpop.f32.mrf.mxu2  ;;  %v8248_v53 = vpop.f32.mrf.mxu1  ;;  %v4193_v19 = vadd.f32 %v4173_v39, %v4101_v33 }
 0x461   : > { %v4176_v48 = vpop.f32.mrf.mxu3 }
 0x462   : > { %v8250_v57 = vpop.f32.mrf.mxu2  ;;  %v4259_v40 = vpop.f32.mrf.mxu1 }
 0x463   : > { %v4283_v60 = vadd.f32 %v4259_v40, %v4191_v46 }
 0x469   : > { %v8246_v10 = vpop.f32.mrf.mxu3 }
 0x46a   : > { %v4343_v26 = vpop.f32.mrf.mxu2  ;;  %v4262_v28 = vpop.f32.mrf.mxu1 }
 0x46b   : > { %v4367_v17 = vadd.f32 %v4343_v26, %v4283_v60  ;;  %v4284_v62 = vadd.f32 %v4262_v28, %v4192_v21  ;;  %v3815_v21 = vadd.f32 %v8182_v27, %v8168_v42  ;;  %v9111_v42 = vmov 0.0  }
 0x46c   : > { %488 = vst.msk [vmem:[#allocation6 + $0x3] sm:$0x1f] %vm487_vm14, %v9111_v42 }
 0x46d   : > { %489 = vst.msk [vmem:[#allocation6 + $0x18] sm:$0x1f] %vm487_vm14, %v9111_v42 }
 0x46e   : > { %491 = vst.msk [vmem:[#allocation8 + $0x5] sm:$0x7] %vm490_vm12, %v9111_v42 }
 0x46f   : > { %492 = vst.msk [vmem:[#allocation8 + $0xc] sm:$0x7] %vm490_vm12, %v9111_v42  ;;  %v5945_v42 = vld [vmem:[%s9112_s7 + $0xa8] sm:$0xff] }
 0x471   : > { %v8252_v37 = vpop.f32.mrf.mxu3 }
 0x472   : > { %v4346_v6 = vpop.f32.mrf.mxu2  ;;  %v4265_v43 = vpop.f32.mrf.mxu1 }
 0x473   : > { %v4368_v40 = vadd.f32 %v4346_v6, %v4284_v62  ;;  %v4285_v46 = vadd.f32 %v4265_v43, %v4193_v19  ;;  %v4102_v6 = vadd.f32 %v4084_v5, %v4018_v51  ;;  %v4571_v5 = vld [vmem:[#allocation13 + $0x38] sm:$0xff]  ;;  %v4563_v62 = vld [vmem:[#allocation13 + $0x10] sm:$0xff]  ;;  %v4569_v19 = vld [vmem:[#allocation13 + $0x28] sm:$0xff] }
 0x474   : > { %4590 = vmatpush.msrb.mxu1 %v4571_v5 }
 0x475   : > { %v4194_v60 = vadd.f32 %v4176_v48, %v4102_v6 }
 0x476   : > { %4591 = vmatpush.msrb.mxu1 %v4570_v54 }
 0x478   : > { %4592 = vmatpush.msrb.mxu1 %v4569_v19 }
 0x479   : > { %v8254_v29 = vpop.f32.mrf.mxu3 }
 0x47a   : > { %v4349_v47 = vpop.f32.mrf.mxu2  ;;  %v4268_v13 = vpop.f32.mrf.mxu1 }
 0x47b   : > { %v4369_v28 = vadd.f32 %v4349_v47, %v4285_v46  ;;  %v4286_v43 = vadd.f32 %v4268_v13, %v4194_v60  ;;  %v4103_v47 = vadd.f32 %v8236_v35, %v4019_v1  ;;  %v3928_v35 = vadd.f32 %v8222_v59, %v3815_v21  ;;  %v4640_v59 = vld [vmem:[#allocation13 + $0x48] sm:$0xff]  ;;  %v4760_v21 = vld [vmem:[#allocation13 + $0xb8] sm:$0xff] }
 0x47c   : > { %4663 = vmatpush.msra.mxu3 %v4640_v59 }
 0x47d   : > { %v4020_v27 = vadd.f32 %v8238_v18, %v3928_v35  ;;  %v4568_v18 = vld [vmem:[#allocation13 + $0x20] sm:$0xff] }
 0x47e   : > { %4593 = vmatpush.msrb.mxu1 %v4568_v18  ;;  %4664 = vmatpush.msra.mxu3 %v4639_v23  ;;  %v4681_v18 = vld [vmem:[#allocation13 + $0x70] sm:$0xff]  ;;  %v4757_v23 = vld [vmem:[#allocation13 + $0xa0] sm:$0xff] }
 0x47f   : > { %v4104_v13 = vadd.f32 %v8240_v15, %v4020_v27 }
 0x480   : > { %4779 = vmatpush.msrb.mxu3 %v4760_v21 }
 0x481   : > { %v8259_v41 = vpop.f32.mrf.mxu3  ;;  %v4196_v52 = vadd.f32 %v8252_v37, %v4104_v13 }
 0x482   : > { %v4352_v0 = vpop.f32.mrf.mxu2  ;;  %v4271_v14 = vpop.f32.mrf.mxu1  ;;  %4780 = vmatpush.msrb.mxu3 %v4759_v31 }
 0x483   : > { %v4370_v2 = vadd.f32 %v4352_v0, %v4286_v43  ;;  %v3818_v0 = vadd.f32 %v8196_v56, %v8184_v55 }
 0x485   : > { %v3929_v15 = vadd.f32 %v8227_v4, %v3818_v0  ;;  %v3821_v4 = vadd.f32 %v8210_v20, %v8198_v25 }
 0x487   : > { %v4021_v55 = vadd.f32 %v8242_v24, %v3929_v15  ;;  %v3930_v24 = vadd.f32 %v8232_v12, %v3821_v4  ;;  %v4717_v15 = vld [vmem:[#allocation13 + $0x80] sm:$0xff]  ;;  %v4876_v4 = vld [vmem:[#allocation13 + $0x108] sm:$0xff] }
 0x489   : > { %v4435_v9 = vpop.f32.mrf.mxu3  ;;  %v4022_v22 = vadd.f32 %v8248_v53, %v3930_v24  ;;  %v4797_v24 = vld [vmem:[#allocation13 + $0xc0] sm:$0xff] }
 0x48a   : > { %v4459_v63 = vadd.f32 %v4435_v9, %v4367_v17  ;;  %v4564_v17 = vld [vmem:[#allocation13 + $0x18] sm:$0xff]  ;;  %v4355_v7 = vpop.f32.mrf.mxu2 }
 0x48b   : > { %4619 = vmatpush.msra.mxu2 %v4564_v17 }
 0x48c   : > { %v4471_v8 = vadd.f32 %v8267_v44, %v4459_v63 }
 0x48d   : > { %4620 = vmatpush.msra.mxu2 %v4563_v62 }
 0x48e   : > { %4480 = vst.msk [vmem:[#allocation5] sm:$0xff] %vm4479_vm7, %v4471_v8  ;;  %v4195_v8 = vadd.f32 %v8246_v10, %v4103_v47 }
 0x491   : > { %v4438_v26 = vpop.f32.mrf.mxu3 }
 0x492   : > { %v4460_v58 = vadd.f32 %v4438_v26, %v4368_v40  ;;  %v4287_v40 = vadd.f32 %v4271_v14, %v4195_v8  ;;  %v4274_v26 = vpop.f32.mrf.mxu1  ;;  %v4358_v33 = vpop.f32.mrf.mxu2  ;;  %v4105_v14 = vadd.f32 %v8244_v3, %v4021_v55  ;;  %v4719_v8 = vld [vmem:[#allocation13 + $0x90] sm:$0xff] }
 0x493   : > { %v4288_v6 = vadd.f32 %v4274_v26, %v4196_v52 }
 0x494   : > { %v4472_v45 = vadd.f32 %v8267_v44, %v4460_v58  ;;  %v4371_v10 = vadd.f32 %v4355_v7, %v4287_v40  ;;  %v4197_v38 = vadd.f32 %v8254_v29, %v4105_v14  ;;  %v4106_v7 = vadd.f32 %v8250_v57, %v4022_v22  ;;  %v5956_v57 = vld [vmem:[%s9112_s7 + $0xf8] sm:$0xff] }
 0x495   : > { %v4372_v56 = vadd.f32 %v4358_v33, %v4288_v6  ;;  %5073 = vmatpush.msrb.mxu0 %v5956_v57  ;;  %v4877_v14 = vld [vmem:[#allocation13 + $0x110] sm:$0xff] }
 0x496   : > { %4481 = vst.msk [vmem:[#allocation5 + $0x8] sm:$0xff] %vm4479_vm7, %v4472_v45  ;;  %v4562_v45 = vld [vmem:[#allocation13 + $0x8] sm:$0xff]  ;;  %v4198_v20 = vadd.f32 %v8259_v41, %v4106_v7 }
 0x497   : > { %4621 = vmatpush.msra.mxu2 %v4562_v45  ;;  %v5955_v41 = vld [vmem:[%s9112_s7 + $0xf0] sm:$0xff] }
 0x498   : > { %5074 = vmatpush.msrb.mxu0 %v5955_v41 }
 0x499   : > { %v4441_v50 = vpop.f32.mrf.mxu3 }
 0x49a   : > { %v4461_v61 = vadd.f32 %v4441_v50, %v4369_v28  ;;  %v4561_v50 = vld [vmem:[#allocation13] sm:$0xff]  ;;  %v4277_v60 = vpop.f32.mrf.mxu1  ;;  %v4361_v17 = vpop.f32.mrf.mxu2 }
 0x49b   : > { %4622 = vmatpush.msra.mxu2 %v4561_v50  ;;  %v4680_v50 = vld [vmem:[#allocation13 + $0x68] sm:$0xff] }
 0x49c   : > { %v4473_v32 = vadd.f32 %v8267_v44, %v4461_v61 }
 0x49d   : > { %v4488_v39 = vld [vmem:[#allocation5] ss:$2 sm:$0xff]  ;;  %v4496_v34 = vld [vmem:[#allocation5 + $0x1] ss:$2 sm:$0xff] }
 0x49e   : > { %v4503_v9 = vmax.f32 %v4488_v39, %v4496_v34  ;;  %4482 = vst.msk [vmem:[#allocation5 + $0x10] sm:$0xff] %vm4479_vm7, %v4473_v32 }
 0x4a0   : > { %v4511_v48 = vrot.slane %v4503_v9, 4 }
 0x4a1   : > { %v4444_v63 = vpop.f32.mrf.mxu3 }
 0x4a2   : > { %v8286_v30 = vmax.f32 %v4503_v9, %v4511_v48  ;;  %v4462_v36 = vadd.f32 %v4444_v63, %v4370_v2  ;;  %v4289_v9 = vadd.f32 %v4277_v60, %v4197_v38  ;;  %v4280_v2 = vpop.f32.mrf.mxu1  ;;  %v4364_v12 = vpop.f32.mrf.mxu2  ;;  %v4800_v60 = vld [vmem:[#allocation13 + $0xd8] sm:$0xff]  ;;  %v4798_v38 = vld [vmem:[#allocation13 + $0xc8] sm:$0xff] }
 0x4a3   : > { %v4290_v47 = vadd.f32 %v4280_v2, %v4198_v20 }
 0x4a4   : > { %4527 = vst [vmem:[#allocation1] ss:$2 sm:$0xff] %v8286_v30  ;;  %v4474_v49 = vadd.f32 %v8267_v44, %v4462_v36  ;;  %v4373_v5 = vadd.f32 %v4361_v17, %v4289_v9  ;;  %v4720_v36 = vld [vmem:[#allocation13 + $0x98] sm:$0xff]  ;;  %v4836_v17 = vld [vmem:[#allocation13 + $0xe8] sm:$0xff]  ;;  %v4875_v9 = vld [vmem:[#allocation13 + $0x100] sm:$0xff] }
 0x4a5   : > { %4739 = vmatpush.msrb.mxu2 %v4720_v36 }
 0x4a6   : > { %4483 = vst.msk [vmem:[#allocation5 + $0x18] sm:$0xff] %vm4479_vm7, %v4474_v49  ;;  %v4374_v49 = vadd.f32 %v4364_v12, %v4290_v47  ;;  %v5953_v12 = vld [vmem:[%s9112_s7 + $0xe0] sm:$0xff] }
 0x4a7   : > { %4740 = vmatpush.msrb.mxu2 %v4719_v8 }
 0x4a9   : > { %v4447_v58 = vpop.f32.mrf.mxu3 }
 0x4aa   : > { %v4463_v16 = vadd.f32 %v4447_v58, %v4371_v10  ;;  %v9113_v10 = vld [vmem:[#allocation29_spill] sm:$0xff] }
 0x4ab   : > { %v646_v33 = vand.u32 3, %v9113_v10 }
 0x4ac   : > { %v4475_v46 = vadd.f32 %v8267_v44, %v4463_v16 }
 0x4ad   : > { %v4490_v51 = vld [vmem:[#allocation5 + $0x10] ss:$2 sm:$0xff]  ;;  %v4498_v28 = vld [vmem:[#allocation5 + $0x11] ss:$2 sm:$0xff]  ;;  %vm8334_vm3 = vcmp.ne.s32.totalorder %v646_v33, 0  ;;  %vm8338_vm10 = vcmp.ne.s32.totalorder %v646_v33, 3 }
 0x4ae   : > { %v4504_v61 = vmax.f32 %v4490_v51, %v4498_v28  ;;  %4484 = vst.msk [vmem:[#allocation5 + $0x20] sm:$0xff] %vm4479_vm7, %v4475_v46  ;;  %v4718_v51 = vld [vmem:[#allocation13 + $0x88] sm:$0xff] }
 0x4af   : > { %v4758_v28 = vld [vmem:[#allocation13 + $0xa8] sm:$0xff]  ;;  %4741 = vmatpush.msrb.mxu2 %v4718_v51 }
 0x4b0   : > { %v4512_v37 = vrot.slane %v4504_v61, 4  ;;  %4781 = vmatpush.msrb.mxu3 %v4758_v28  ;;  %v5951_v33 = vld [vmem:[%s9112_s7 + $0xd0] sm:$0xff] }
 0x4b1   : > { %v4450_v32 = vpop.f32.mrf.mxu3  ;;  %4742 = vmatpush.msrb.mxu2 %v4717_v15 }
 0x4b2   : > { %v4520_v39 = vmax.f32 %v4504_v61, %v4512_v37  ;;  %v4464_v34 = vadd.f32 %v4450_v32, %v4372_v56  ;;  %v4679_v61 = vld [vmem:[#allocation13 + $0x60] sm:$0xff]  ;;  %4782 = vmatpush.msrb.mxu3 %v4757_v23  ;;  %v4838_v56 = vld [vmem:[#allocation13 + $0xf8] sm:$0xff]  ;;  %v4837_v32 = vld [vmem:[#allocation13 + $0xf0] sm:$0xff] }
 0x4b3   : > { %v4878_v37 = vld [vmem:[#allocation13 + $0x118] sm:$0xff] }
 0x4b4   : > { %4529 = vst [vmem:[#allocation1 + $0x1] ss:$2 sm:$0xff] %v4520_v39  ;;  %v4476_v43 = vadd.f32 %v8267_v44, %v4464_v34  ;;  %v4799_v34 = vld [vmem:[#allocation13 + $0xd0] sm:$0xff] }
 0x4b6   : > { %4485 = vst.msk [vmem:[#allocation5 + $0x28] sm:$0xff] %vm4479_vm7, %v4476_v43  ;;  %v4835_v43 = vld [vmem:[#allocation13 + $0xe0] sm:$0xff] }
 0x4b9   : > { %v4453_v3 = vpop.f32.mrf.mxu3 }
 0x4ba   : > { %v4465_v1 = vadd.f32 %v4453_v3, %v4373_v5  ;;  %v647_v5 = vand.u32 3, %v9038_v11  ;;  %v5954_v3 = vld [vmem:[%s9112_s7 + $0xe8] sm:$0xff] }
 0x4bb   : > { %v4534_v25 = vld.sshfl [vmem:[#allocation1] sm:$0xff pattern:$0x75316420]  ;;  %5075 = vmatpush.msrb.mxu0 %v5954_v3 }
 0x4bc   : > { %4540 = vst [vmem:[#allocation1] ss:$2 sm:$0xff] %v8286_v30  ;;  %v4477_v29 = vadd.f32 %v8267_v44, %v4465_v1  ;;  %v4682_v30 = vld [vmem:[#allocation13 + $0x78] sm:$0xff]  ;;  %vm8356_vm4 = vcmp.ne.s32.totalorder %v647_v5, 0  ;;  %vm8360_vm1 = vcmp.ne.s32.totalorder %v647_v5, 3  ;;  %v5946_v5 = vld [vmem:[%s9112_s7 + $0xb0] sm:$0xff] }
 0x4bd   : > { %4542 = vst [vmem:[#allocation1 + $0x1] ss:$2 sm:$0xff] %v4520_v39  ;;  %v4492_v48 = vld [vmem:[#allocation5 + $0x20] ss:$2 sm:$0xff]  ;;  %v4500_v63 = vld [vmem:[#allocation5 + $0x21] ss:$2 sm:$0xff]  ;;  %4701 = vmatpush.msra.mxu1 %v4682_v30  ;;  %5076 = vmatpush.msrb.mxu0 %v5953_v12 }
 0x4be   : > { %v4505_v53 = vmax.f32 %v4492_v48, %v4500_v63  ;;  %4486 = vst.msk [vmem:[#allocation5 + $0x30] sm:$0xff] %vm4479_vm7, %v4477_v29  ;;  %v5952_v48 = vld [vmem:[%s9112_s7 + $0xd8] sm:$0xff]  ;;  %v6100_v1 = vld [vmem:[%s9122_s6] ss:$0 sm:$0xff] }
 0x4bf   : > { %4538 = vst.msk [vmem:[%s8326_s15] sm:$0xff] %vm4479_vm7, %v4534_v25  ;;  %4702 = vmatpush.msra.mxu1 %v4681_v18  ;;  %5077 = vmatpush.msrb.mxu0 %v5952_v48  ;;  %v5944_v48 = vld [vmem:[%s9112_s7 + $0xa0] sm:$0xff] }
 0x4c0   : > { %v4513_v62 = vrot.slane %v4505_v53, 4 }
 0x4c1   : > { %v4456_v54 = vpop.f32.mrf.mxu3  ;;  %4703 = vmatpush.msra.mxu1 %v4680_v50  ;;  %5078 = vmatpush.msrb.mxu0 %v5951_v33  ;;  %v5941_v33 = vld [vmem:[%s9112_s7 + $0x88] sm:$0xff] }
 0x4c2   : > { %v4521_v35 = vmax.f32 %v4505_v53, %v4513_v62  ;;  %v4466_v40 = vadd.f32 %v4456_v54, %v4374_v49 }
 0x4c3   : > { %4704 = vmatpush.msra.mxu1 %v4679_v61 }
 0x4c4   : > { %4531 = vst [vmem:[#allocation1 + $0x10] ss:$2 sm:$0xff] %v4521_v35  ;;  %v4478_v26 = vadd.f32 %v8267_v44, %v4466_v40  ;;  %v4547_v27 = vld.sshfl [vmem:[#allocation1] sm:$0xff pattern:$0x75316420] }
 0x4c5   : > { %4551 = vst.msk [vmem:[#allocation6 + $0x8] sm:$0xff] %vm4479_vm7, %v4547_v27 }
 0x4c6   : > { %4487 = vst.msk [vmem:[#allocation5 + $0x38] sm:$0xff] %vm4479_vm7, %v4478_v26 }
 0x4cc   : > { %v4565_v16 = vld [vmem:[#allocation6 + $0x4] sm:$0xff] }
 0x4cd   : > { %v4553_v19 = vld [vmem:[#allocation6 + $0x3] sm:$0xff]  ;;  %v4494_v59 = vld [vmem:[#allocation5 + $0x30] ss:$2 sm:$0xff]  ;;  %v4502_v44 = vld [vmem:[#allocation5 + $0x31] ss:$2 sm:$0xff]  ;;  %5912 = vmatmul.msk.f32.vlgmr.msrb.gmra.mxu1 %vm4479_vm7, %v4565_v16 }
 0x4ce   : > { %v4630_v45 = vld [vmem:[#allocation6 + $0x5] sm:$0xff]  ;;  %v4559_v0 = vsel %vm8334_vm3, %v4553_v19, 0.0  ;;  %v4506_v46 = vmax.f32 %v4494_v59, %v4502_v44  ;;  %4819 = vmatpush.msrb.mxu1 %v4800_v60 }
 0x4cf   : > { %v4636_v52 = vsel %vm8338_vm10, %v4630_v45, 0.0  ;;  %5914 = vmatmul.msk.f32.vlgmr.msra.gmra.mxu2 %vm4479_vm7, %v4559_v0  ;;  %v4674_v63 = vld [vmem:[#allocation6 + $0x7] sm:$0xff]  ;;  %v5950_v45 = vld [vmem:[%s9112_s7 + $0xc8] sm:$0xff] }
 0x4d0   : > { %5916 = vmatmul.msk.f32.vlgmr.msra.gmra.mxu3 %vm4479_vm7, %v4636_v52  ;;  %v4514_v6 = vrot.slane %v4506_v46, 4  ;;  %4857 = vmatpush.msra.mxu2 %v4838_v56  ;;  %v4676_v53 = vsel %vm8334_vm3, %v4674_v63, 0.0  ;;  %v4714_v57 = vld [vmem:[#allocation6 + $0x8] sm:$0xff]  ;;  %v5937_v56 = vld [vmem:[%s9112_s7 + $0x78] sm:$0xff] }
 0x4d1   : > { %4897 = vmatpush.msra.mxu3 %v4878_v37  ;;  %4820 = vmatpush.msrb.mxu1 %v4799_v34 }
 0x4d2   : > { %v4522_v55 = vmax.f32 %v4506_v46, %v4514_v6  ;;  %4858 = vmatpush.msra.mxu2 %v4837_v32  ;;  %5079 = vmatpush.msrb.mxu0 %v5950_v45  ;;  %v5936_v32 = vld [vmem:[%s9112_s7 + $0x70] sm:$0xff]  ;;  %v5940_v45 = vld [vmem:[%s9112_s7 + $0x80] sm:$0xff] }
 0x4d3   : > { %4898 = vmatpush.msra.mxu3 %v4877_v14  ;;  %4821 = vmatpush.msrb.mxu1 %v4798_v38  ;;  %v5935_v14 = vld [vmem:[%s9112_s7 + $0x68] sm:$0xff]  ;;  %v5947_v38 = vld [vmem:[%s9112_s7 + $0xb8] sm:$0xff] }
 0x4d4   : > { %4533 = vst [vmem:[#allocation1 + $0x11] ss:$2 sm:$0xff] %v4522_v55  ;;  %4859 = vmatpush.msra.mxu2 %v4836_v17 }
 0x4d5   : > { %4899 = vmatpush.msra.mxu3 %v4876_v4  ;;  %4822 = vmatpush.msrb.mxu1 %v4797_v24  ;;  %v4958_v4 = vld [vmem:[%s9112_s7 + $0x38] sm:$0xff] }
 0x4d6   : > { %4860 = vmatpush.msra.mxu2 %v4835_v43  ;;  %v5949_v43 = vld [vmem:[%s9112_s7 + $0xc0] sm:$0xff] }
 0x4d7   : > { %4900 = vmatpush.msra.mxu3 %v4875_v9  ;;  %5080 = vmatpush.msrb.mxu0 %v5949_v43 }
 0x4db   : > { %v4535_v39 = vld.sshfl [vmem:[#allocation1 + $0x10] sm:$0xff pattern:$0x75316420] }
 0x4dc   : > { %4544 = vst [vmem:[#allocation1 + $0x10] ss:$2 sm:$0xff] %v4521_v35 }
 0x4dd   : > { %4546 = vst [vmem:[#allocation1 + $0x11] ss:$2 sm:$0xff] %v4522_v55 }
 0x4de   : > { %4539 = vst.msk [vmem:[%s8326_s15 + $0x8] sm:$0xff] %vm4479_vm7, %v4535_v39  ;;  %v5934_v39 = vld [vmem:[%s9112_s7 + $0x60] sm:$0xff] }
 0x4e4   : > { %v4548_v22 = vld.sshfl [vmem:[#allocation1 + $0x10] sm:$0xff pattern:$0x75316420] }
 0x4e5   : > { %4552 = vst.msk [vmem:[#allocation6 + $0x10] sm:$0xff] %vm4479_vm7, %v4548_v22  ;;  %v4957_v22 = vld [vmem:[%s9112_s7 + $0x30] sm:$0xff] }
 0x4ec   : > { %v4566_v2 = vld [vmem:[#allocation6 + $0xc] sm:$0xff]  ;;  %v4871_v35 = vld [vmem:[#allocation6 + $0x15] sm:$0xff] }
 0x4ed   : > { %v4554_v25 = vld [vmem:[#allocation6 + $0xb] sm:$0xff]  ;;  %5913 = vmatmul.msk.f32.gmra.mxu1 %vm4479_vm7, %v4566_v2  ;;  %v4793_v54 = vld [vmem:[#allocation6 + $0x13] sm:$0xff]  ;;  %v4873_v27 = vsel %vm8360_vm1, %v4871_v35, 0.0 }
 0x4ee   : > { %v4631_v20 = vld [vmem:[#allocation6 + $0xd] sm:$0xff]  ;;  %v4560_v11 = vsel %vm8356_vm4, %v4554_v25, 0.0  ;;  %v4794_v62 = vsel %vm8334_vm3, %v4554_v25, 0.0  ;;  %v4795_v40 = vsel %vm8356_vm4, %v4793_v54, 0.0 }
 0x4ef   : > { %v4637_v29 = vsel %vm8360_vm1, %v4631_v20, 0.0  ;;  %5915 = vmatmul.msk.f32.gmra.mxu2 %vm4479_vm7, %v4560_v11  ;;  %v4752_v47 = vld [vmem:[#allocation6 + $0x9] sm:$0xff]  ;;  %v4753_v41 = vld [vmem:[#allocation6 + $0x11] sm:$0xff]  ;;  %v4872_v31 = vsel %vm8338_vm10, %v4631_v20, 0.0 }
 0x4f0   : > { %5917 = vmatmul.msk.f32.gmra.mxu3 %vm4479_vm7, %v4637_v29  ;;  %v4754_v36 = vsel %vm8338_vm10, %v4752_v47, 0.0  ;;  %v4675_v21 = vld [vmem:[#allocation6 + $0xf] sm:$0xff]  ;;  %v4755_v49 = vsel %vm8360_vm1, %v4753_v41, 0.0  ;;  %v5932_v11 = vld [vmem:[%s9112_s7 + $0x50] sm:$0xff] }
 0x4f1   : > { %v4677_v30 = vsel %vm8356_vm4, %v4675_v21, 0.0  ;;  %v4715_v8 = vld [vmem:[#allocation6 + $0x10] sm:$0xff]  ;;  %v4955_v29 = vld [vmem:[%s9112_s7 + $0x20] sm:$0xff] }
 0x4f2   : > { %v4833_v26 = vld [vmem:[#allocation6 + $0x14] sm:$0xff]  ;;  %v5930_v41 = vld [vmem:[%s9112_s7 + $0x40] sm:$0xff] }
 0x4f3   : > { %v4956_v25 = vld [vmem:[%s9112_s7 + $0x28] sm:$0xff] }
 0x4f4   : > { %v4952_v35 = vld [vmem:[%s9112_s7 + $0x8] sm:$0xff] }
 0x4f5   : > { %5918 = vmatmul.msk.f32.vlgmr.msra.gmra.mxu1 %vm4479_vm7, %v4676_v53  ;;  %v5931_v53 = vld [vmem:[%s9112_s7 + $0x48] sm:$0xff] }
 0x4f6   : > { %4980 = vmatpush.msra.mxu1 %v5937_v56  ;;  %v5958_v56 = vld [vmem:[%s9112_s7 + $0x100] sm:$0xff] }
 0x4f7   : > { %5920 = vmatmul.msk.f32.vlgmr.msrb.gmra.mxu2 %vm4479_vm7, %v4714_v57  ;;  %v4954_v57 = vld [vmem:[%s9112_s7 + $0x18] sm:$0xff] }
 0x4f8   : > { %5922 = vmatmul.msk.f32.vlgmr.msrb.gmra.mxu3 %vm4479_vm7, %v4754_v36  ;;  %4981 = vmatpush.msra.mxu1 %v5936_v32  ;;  %v5943_v36 = vld [vmem:[%s9112_s7 + $0x98] sm:$0xff]  ;;  %v5989_v32 = vld [vmem:[%s9112_s7 + $0x1e0] sm:$0xff] }
 0x4f9   : > { %5003 = vmatpush.msrb.mxu2 %v4958_v4  ;;  %5039 = vmatpush.msrb.mxu3 %v5947_v38  ;;  %v5979_v4 = vld [vmem:[%s9112_s7 + $0x198] sm:$0xff] }
 0x4fa   : > { %4982 = vmatpush.msra.mxu1 %v5935_v14  ;;  %v5988_v38 = vld [vmem:[%s9112_s7 + $0x1d8] sm:$0xff] }
 0x4fb   : > { %5004 = vmatpush.msrb.mxu2 %v4957_v22  ;;  %5040 = vmatpush.msrb.mxu3 %v5946_v5  ;;  %v5978_v22 = vld [vmem:[%s9112_s7 + $0x190] sm:$0xff] }
 0x4fc   : > { %4983 = vmatpush.msra.mxu1 %v5934_v39  ;;  %v5987_v5 = vld [vmem:[%s9112_s7 + $0x1d0] sm:$0xff] }
 0x4fd   : > { %5919 = vmatmul.msk.f32.gmra.mxu1 %vm4479_vm7, %v4677_v30  ;;  %5005 = vmatpush.msrb.mxu2 %v4956_v25  ;;  %v4953_v30 = vld [vmem:[%s9112_s7 + $0x10] sm:$0xff]  ;;  %v5976_v25 = vld [vmem:[%s9112_s7 + $0x180] sm:$0xff] }
 0x4fe   : > { %5041 = vmatpush.msrb.mxu3 %v5945_v42  ;;  %v5985_v42 = vld [vmem:[%s9112_s7 + $0x1c0] sm:$0xff] }
 0x4ff   : > { %5921 = vmatmul.msk.f32.gmra.mxu2 %vm4479_vm7, %v4715_v8 }
 0x500   : > { %5923 = vmatmul.msk.f32.gmra.mxu3 %vm4479_vm7, %v4755_v49  ;;  %5006 = vmatpush.msrb.mxu2 %v4955_v29  ;;  %v5965_v49 = vld [vmem:[%s9112_s7 + $0x138] sm:$0xff]  ;;  %v652_v29 = vand.u32 1, %v9113_v10 }
 0x501   : > { %5042 = vmatpush.msrb.mxu3 %v5944_v48 }
 0x502   : > { %5007 = vmatpush.msrb.mxu2 %v4954_v57  ;;  %vm8594_vm8 = vcmp.ne.s32.totalorder %v652_v29, 0  ;;  %vm8598_vm2 = vcmp.ne.s32.totalorder %v652_v29, 1 }
 0x503   : > { %5043 = vmatpush.msrb.mxu3 %v5943_v36 }
 0x504   : > { %5008 = vmatpush.msrb.mxu2 %v4953_v30  ;;  %v5999_v30 = vld [vmem:[%s9112_s7 + $0x228] sm:$0xff] }
 0x505   : > { %5924 = vmatmul.msk.f32.vlgmr.msrb.gmra.mxu1 %vm4479_vm7, %v4794_v62  ;;  %v5942_v62 = vld [vmem:[%s9112_s7 + $0x90] sm:$0xff] }
 0x506   : > { %5044 = vmatpush.msrb.mxu3 %v5942_v62  ;;  %5009 = vmatpush.msrb.mxu2 %v4952_v35 }
 0x507   : > { %5926 = vmatmul.msk.f32.vlgmr.msra.gmra.mxu2 %vm4479_vm7, %v4566_v2  ;;  %v5933_v2 = vld [vmem:[%s9112_s7 + $0x58] sm:$0xff] }
 0x508   : > { %5928 = vmatmul.msk.f32.vlgmr.msra.gmra.mxu3 %vm4479_vm7, %v4872_v31  ;;  %4984 = vmatpush.msra.mxu1 %v5933_v2  ;;  %v5992_v31 = vld [vmem:[%s9112_s7 + $0x1f8] sm:$0xff]  ;;  %v5967_v2 = vld [vmem:[%s9112_s7 + $0x140] sm:$0xff] }
 0x509   : > { %5210 = vmatpush.msra.mxu0 %v5992_v31  ;;  %5045 = vmatpush.msrb.mxu3 %v5941_v33  ;;  %v5994_v33 = vld [vmem:[%s9112_s7 + $0x200] sm:$0xff] }
 0x50a   : > { %4985 = vmatpush.msra.mxu1 %v5932_v11 }
 0x50b   : > { %5046 = vmatpush.msrb.mxu3 %v5940_v45 }
 0x50c   : > { %4986 = vmatpush.msra.mxu1 %v5931_v53 }
 0x50d   : > { %5925 = vmatmul.msk.f32.gmra.mxu1 %vm4479_vm7, %v4795_v40  ;;  %v5991_v40 = vld [vmem:[%s9112_s7 + $0x1f0] sm:$0xff] }
 0x50e   : > { %4987 = vmatpush.msra.mxu1 %v5930_v41  ;;  %5211 = vmatpush.msra.mxu0 %v5991_v40  ;;  %v6000_v41 = vld [vmem:[%s9112_s7 + $0x230] sm:$0xff] }
 0x50f   : > { %5927 = vmatmul.msk.f32.gmra.mxu2 %vm4479_vm7, %v4833_v26 }
 0x510   : > { %5929 = vmatmul.msk.f32.gmra.mxu3 %vm4479_vm7, %v4873_v27  ;;  %v5964_v27 = vld [vmem:[%s9112_s7 + $0x130] sm:$0xff]  ;;  %5107 = vmatpush.msrb.mxu1 %v5965_v49 }
 0x512   : > { %5108 = vmatpush.msrb.mxu1 %v5964_v27  ;;  %v5995_v27 = vld [vmem:[%s9112_s7 + $0x208] sm:$0xff] }
 0x54a   : > { %v4595_v58 = vpop.f32.mrf.mxu1 }
 0x552   : > { %v4624_v13 = vpop.f32.mrf.mxu2 }
 0x553   : > { %v4666_v16 = vpop.f32.mrf.mxu3  ;;  %v4625_v18 = vadd.f32 %v4624_v13, %v4595_v58  ;;  %v4951_v13 = vld [vmem:[%s9112_s7] sm:$0xff] }
 0x554   : > { %5010 = vmatpush.msrb.mxu2 %v4951_v13 }
 0x555   : > { %v4672_v28 = vadd.f32 %v4666_v16, %v4625_v18  ;;  %v5990_v16 = vld [vmem:[%s9112_s7 + $0x1e8] sm:$0xff]  ;;  %v5982_v18 = vld [vmem:[%s9112_s7 + $0x1b0] sm:$0xff] }
 0x556   : > { %5212 = vmatpush.msra.mxu0 %v5990_v16 }
 0x558   : > { %5213 = vmatpush.msra.mxu0 %v5989_v32 }
 0x55a   : > { %5214 = vmatpush.msra.mxu0 %v5988_v38 }
 0x55c   : > { %5215 = vmatpush.msra.mxu0 %v5987_v5 }
 0x56a   : > { %v4598_v19 = vpop.f32.mrf.mxu1 }
 0x572   : > { %v4627_v59 = vpop.f32.mrf.mxu2  ;;  %v4706_v0 = vpop.f32.mrf.mxu1 }
 0x573   : > { %v4669_v44 = vpop.f32.mrf.mxu3  ;;  %v4712_v50 = vadd.f32 %v4706_v0, %v4672_v28  ;;  %v4628_v61 = vadd.f32 %v4627_v59, %v4598_v19  ;;  %v5963_v19 = vld [vmem:[%s9112_s7 + $0x128] sm:$0xff]  ;;  %v5983_v0 = vld [vmem:[%s9112_s7 + $0x1b8] sm:$0xff] }
 0x574   : > { %5109 = vmatpush.msrb.mxu1 %v5963_v19  ;;  %5176 = vmatpush.msra.mxu3 %v5983_v0  ;;  %v5972_v28 = vld [vmem:[%s9112_s7 + $0x168] sm:$0xff] }
 0x575   : > { %v4673_v37 = vadd.f32 %v4669_v44, %v4628_v61  ;;  %v5974_v44 = vld [vmem:[%s9112_s7 + $0x178] sm:$0xff] }
 0x576   : > { %5142 = vmatpush.msra.mxu2 %v5974_v44  ;;  %5177 = vmatpush.msra.mxu3 %v5982_v18 }
 0x57a   : > { %v4744_v52 = vpop.f32.mrf.mxu2  ;;  %v4709_v51 = vpop.f32.mrf.mxu1 }
 0x57b   : > { %v4784_v46 = vpop.f32.mrf.mxu3  ;;  %v4750_v23 = vadd.f32 %v4744_v52, %v4712_v50  ;;  %v4713_v34 = vadd.f32 %v4709_v51, %v4673_v37  ;;  %v5962_v52 = vld [vmem:[%s9112_s7 + $0x120] sm:$0xff]  ;;  %v5961_v51 = vld [vmem:[%s9112_s7 + $0x118] sm:$0xff]  ;;  %v5981_v50 = vld [vmem:[%s9112_s7 + $0x1a8] sm:$0xff] }
 0x57c   : > { %5110 = vmatpush.msrb.mxu1 %v5962_v52  ;;  %5178 = vmatpush.msra.mxu3 %v5981_v50  ;;  %v5971_v37 = vld [vmem:[%s9112_s7 + $0x160] sm:$0xff] }
 0x57d   : > { %v4790_v60 = vadd.f32 %v4784_v46, %v4750_v23  ;;  %v5973_v46 = vld [vmem:[%s9112_s7 + $0x170] sm:$0xff] }
 0x57e   : > { %5143 = vmatpush.msra.mxu2 %v5973_v46  ;;  %5111 = vmatpush.msrb.mxu1 %v5961_v51 }
 0x580   : > { %5144 = vmatpush.msra.mxu2 %v5972_v28 }
 0x582   : > { %v4747_v15 = vpop.f32.mrf.mxu2  ;;  %v4824_v55 = vpop.f32.mrf.mxu1  ;;  %5145 = vmatpush.msra.mxu2 %v5971_v37 }
 0x583   : > { %v4787_v6 = vpop.f32.mrf.mxu3  ;;  %v4830_v17 = vadd.f32 %v4824_v55, %v4790_v60  ;;  %v4751_v3 = vadd.f32 %v4747_v15, %v4713_v34  ;;  %v5960_v15 = vld [vmem:[%s9112_s7 + $0x110] sm:$0xff]  ;;  %v5980_v60 = vld [vmem:[%s9112_s7 + $0x1a0] sm:$0xff] }
 0x584   : > { %5112 = vmatpush.msrb.mxu1 %v5960_v15  ;;  %5179 = vmatpush.msra.mxu3 %v5980_v60 }
 0x585   : > { %v4791_v63 = vadd.f32 %v4787_v6, %v4751_v3  ;;  %v5959_v6 = vld [vmem:[%s9112_s7 + $0x108] sm:$0xff] }
 0x586   : > { %5113 = vmatpush.msrb.mxu1 %v5959_v6  ;;  %5180 = vmatpush.msra.mxu3 %v5979_v4  ;;  %v5968_v3 = vld [vmem:[%s9112_s7 + $0x148] sm:$0xff] }
 0x588   : > { %5114 = vmatpush.msrb.mxu1 %v5958_v56  ;;  %5181 = vmatpush.msra.mxu3 %v5978_v22 }
 0x58a   : > { %v4862_v24 = vpop.f32.mrf.mxu2  ;;  %v4827_v12 = vpop.f32.mrf.mxu1 }
 0x58b   : > { %v4902_v9 = vpop.f32.mrf.mxu3  ;;  %v4868_v7 = vadd.f32 %v4862_v24, %v4830_v17  ;;  %v4831_v21 = vadd.f32 %v4827_v12, %v4791_v63  ;;  %v5970_v17 = vld [vmem:[%s9112_s7 + $0x158] sm:$0xff] }
 0x58c   : > { %5146 = vmatpush.msra.mxu2 %v5970_v17  ;;  %v6001_v63 = vld [vmem:[%s9112_s7 + $0x238] sm:$0xff] }
 0x58d   : > { %v4908_v20 = vadd.f32 %v4902_v9, %v4868_v7  ;;  %v5969_v9 = vld [vmem:[%s9112_s7 + $0x150] sm:$0xff]  ;;  %v5977_v7 = vld [vmem:[%s9112_s7 + $0x188] sm:$0xff] }
 0x58e   : > { %5147 = vmatpush.msra.mxu2 %v5969_v9  ;;  %5182 = vmatpush.msra.mxu3 %v5977_v7 }
 0x58f   : > { %v4914_v47 = vadd.f32 %v6100_v1, %v4908_v20 }
 0x590   : > { %5148 = vmatpush.msra.mxu2 %v5968_v3  ;;  %5183 = vmatpush.msra.mxu3 %v5976_v25 }
 0x591   : > { %4917 = vst.msk [vmem:[#allocation7] sm:$0xff] %vm4916_vm0, %v4914_v47 }
 0x592   : > { %v4865_v8 = vpop.f32.mrf.mxu2  ;;  %5149 = vmatpush.msra.mxu2 %v5967_v2 }
 0x593   : > { %v4869_v54 = vadd.f32 %v4865_v8, %v4831_v21  ;;  %v4905_v26 = vpop.f32.mrf.mxu3  ;;  %v5998_v8 = vld [vmem:[%s9112_s7 + $0x220] sm:$0xff] }
 0x595   : > { %v4909_v58 = vadd.f32 %v4905_v26, %v4869_v54  ;;  %v5997_v54 = vld [vmem:[%s9112_s7 + $0x218] sm:$0xff]  ;;  %v5996_v26 = vld [vmem:[%s9112_s7 + $0x210] sm:$0xff] }
 0x597   : > { %v4915_v59 = vadd.f32 %v6100_v1, %v4909_v58  ;;  %v5986_v1 = vld [vmem:[%s9112_s7 + $0x1c8] sm:$0xff] }
 0x598   : > { %5216 = vmatpush.msra.mxu0 %v5986_v1 }
 0x599   : > { %4918 = vst.msk [vmem:[#allocation7 + $0x8] sm:$0xff] %vm4916_vm0, %v4915_v59 }
 0x59a   : > { %5217 = vmatpush.msra.mxu0 %v5985_v42 }
 0x5a0   : > { %v4919_v61 = vld [vmem:[#allocation7] ss:$2 sm:$0xff]  ;;  %v4921_v23 = vld [vmem:[#allocation7 + $0x1] ss:$2 sm:$0xff] }
 0x5a1   : > { %v4922_v55 = vmax.f32 %v4919_v61, %v4921_v23 }
 0x5a3   : > { %v4924_v14 = vrot.slane %v4922_v55, 2  ;;  %v4925_v39 = vrot.slane %v4922_v55, 4  ;;  %v4926_v34 = vrot.slane %v4922_v55, 6 }
 0x5a5   : > { %v4930_v43 = vmax.f32 %v4922_v55, %v4924_v14  ;;  %v4931_v24 = vmax.f32 %v4925_v39, %v4926_v34 }
 0x5a7   : > { %4934 = vst [vmem:[#allocation1] ss:$4 sm:$0xff] %v4930_v43 }
 0x5a8   : > { %4936 = vst [vmem:[#allocation1 + $0x1] ss:$4 sm:$0xff] %v4931_v24 }
 0x5af   : > { %v4937_v20 = vld.sshfl [vmem:[#allocation1] sm:$0xff pattern:$0x73625140] }
 0x5b0   : > { %4941 = vst [vmem:[#allocation1] ss:$4 sm:$0xff] %v4930_v43 }
 0x5b1   : > { %4943 = vst [vmem:[#allocation1 + $0x1] ss:$4 sm:$0xff] %v4931_v24 }
 0x5b2   : > { %4940 = vst.msk [vmem:[%s8590_s16] sm:$0xf] %vm4939_vm5, %v4937_v20 }
 0x5b8   : > { %v4944_v11 = vld.sshfl [vmem:[#allocation1] sm:$0xff pattern:$0x73625140] }
 0x5b9   : > { %4946 = vst.msk [vmem:[#allocation8 + $0x8] sm:$0xf] %vm4939_vm5, %v4944_v11 }
 0x5c0   : > { %v4959_v47 = vld [vmem:[#allocation8 + $0x6] sm:$0xf]  ;;  %v5189_v40 = vld [vmem:[#allocation8 + $0xa] sm:$0xf] }
 0x5c1   : > { %v4947_v53 = vld [vmem:[#allocation8 + $0x5] sm:$0xf]  ;;  %5938 = vmatmul.msk.f32.vlgmr.msra.gmra.mxu1 %vm4916_vm0, %v4959_v47  ;;  %v5120_v49 = vld [vmem:[#allocation8 + $0x9] sm:$0xf] }
 0x5c2   : > { %v5015_v57 = vld [vmem:[#allocation8 + $0x7] sm:$0xf]  ;;  %v4950_v10 = vsel %vm8594_vm8, %v4947_v53, 0.0  ;;  %5245 = vmatpush.msra.mxu1 %v6001_v63  ;;  %v5121_v31 = vsel %vm8598_vm2, %v5120_v49, 0.0  ;;  %v5155_v35 = vsel %vm8594_vm8, %v5120_v49, 0.0 }
 0x5c3   : > { %v5018_v36 = vsel %vm8598_vm2, %v5015_v57, 0.0  ;;  %v5052_v21 = vsel %vm8594_vm8, %v5015_v57, 0.0  ;;  %5939 = vmatmul.msk.f32.vlgmr.msrb.gmra.mxu2 %vm4916_vm0, %v4950_v10  ;;  %v5086_v62 = vld [vmem:[#allocation8 + $0x8] sm:$0xf] }
 0x5c4   : > { %5948 = vmatmul.msk.f32.vlgmr.msrb.gmra.mxu3 %vm4916_vm0, %v5018_v36  ;;  %5957 = vmatmul.msk.f32.vlgmr.msrb.gmra.mxu0 %vm4916_vm0, %v5052_v21  ;;  %v5223_v58 = vld [vmem:[#allocation8 + $0xb] sm:$0xf] }
 0x5c5   : > { %5246 = vmatpush.msra.mxu1 %v6000_v41  ;;  %v5224_v13 = vsel %vm8598_vm2, %v5223_v58, 0.0 }
 0x5c7   : > { %5247 = vmatpush.msra.mxu1 %v5999_v30 }
 0x5c9   : > { %5248 = vmatpush.msra.mxu1 %v5998_v8 }
 0x5ca   : > { %5966 = vmatmul.msk.f32.vlgmr.msrb.gmra.mxu1 %vm4916_vm0, %v5086_v62 }
 0x5cb   : > { %5975 = vmatmul.msk.f32.vlgmr.msra.gmra.mxu2 %vm4916_vm0, %v5121_v31  ;;  %5249 = vmatpush.msra.mxu1 %v5997_v54 }
 0x5cc   : > { %5984 = vmatmul.msk.f32.vlgmr.msra.gmra.mxu3 %vm4916_vm0, %v5155_v35  ;;  %5993 = vmatmul.msk.f32.vlgmr.msra.gmra.mxu0 %vm4916_vm0, %v5189_v40 }
 0x5cd   : > { %5250 = vmatpush.msra.mxu1 %v5996_v26 }
 0x5cf   : > { %5251 = vmatpush.msra.mxu1 %v5995_v27 }
 0x5d1   : > { %5252 = vmatpush.msra.mxu1 %v5994_v33 }
 0x5d2   : > { %6002 = vmatmul.msk.f32.vlgmr.msra.gmra.mxu1 %vm4916_vm0, %v5224_v13 }
 0x5d3   : > { %6189 = shalt.err (!%p6186_p8)
}
 0x5d4   : > { %s6331_s15 = smov 128   ;;  %s6332_s28 = smov 8  }
 0x5d5   : > { %6027 = dma.vmem_to_hbm [thread:$0]  (%p6438_p5), %s5318_s17, 256, %s5320_s18, %s8654_s20, %s6331_s15, %s6331_s15, %s6332_s28  }
 0x5d6   : > { %s5299_s23 = scalar_lea.hbm %s8745_s9, %s6014_s19  ;;  %s5300_s27 = sshll.u32 %s7608_s30, 4  ;;  %s5301_s27 = int_to_ptr.vmem [resolvable:$true] %s5300_s27 }
 0x5d7   : > { %s5302_s1 = sshll.u32 %s5299_s23, 4  ;;  %s6010_s2 = sshll.u32 %s6419_s25, 2  ;;  %s5303_s1 = int_to_ptr.hbm [resolvable:$true] %s5302_s1 }
 0x5d8   : > { %s5274_s5 = scalar_lea.sflag [#allocation12], %s7591_s26  ;;  %s6204_s0 = sshra.s32 %s5303_s1, 4  ;;  %s6205_s0 = int_to_ptr.hbm [resolvable:$true] %s6204_s0 }
 0x5d9   : > { %s6206_s29 = scalar_lea.hbm %s6205_s0, 64  ;;  %s6210_s17 = scalar_lea.hbm %s8745_s9, 128 }
 0x5da   : > { %p6207_p9 = scmp.ne.s32.totalorder %s6205_s0, %s6206_s29  ;;  %p6211_p12 = scmp.lt.s32.totalorder %s6205_s0, %s8745_s9 }
 0x5db   : > { %p6212_p13 = scmp.lt.s32.totalorder %s6210_s17, %s6206_s29 }
 0x5dc   : > { %p6208_p10 = pnand %p6207_p9, %p6438_p5 }
 0x5dd   : > { %p6213_p0 = por %p6212_p13, %p6211_p12 }
 0x5de   : > { %p6209_p11 = pneg %p6208_p10 }
 0x5e0   : > { %p6214_p1 = pnand %p6213_p0, %p6209_p11 }
 0x5e2   : > { %6217 = shalt.err (!%p6214_p1)
}
 0x5e3   : > { %6026 = dma.vmem_to_hbm [thread:$0]  (%p6438_p5), %s5301_s27, 1024, %s5303_s1, %s5274_s5, %s6331_s15, %s6331_s15, %s6332_s28  }
 0x5e4   : > { %s5332_s4 = scalar_lea.hbm %s8747_s11, %s6010_s2  ;;  %s5334_s23 = sshll.u32 %s8590_s16, 4  ;;  %s5335_s23 = int_to_ptr.vmem [resolvable:$true] %s5334_s23 }
 0x5e5   : > { %s5336_s6 = sshll.u32 %s5332_s4, 4  ;;  %s6238_s18 = scalar_lea.hbm %s8747_s11, 8  ;;  %s5337_s6 = int_to_ptr.hbm [resolvable:$true] %s5336_s6 }
 0x5e6   : > { %s6232_s7 = sshra.s32 %s5337_s6, 4  ;;  %s6233_s7 = int_to_ptr.hbm [resolvable:$true] %s6232_s7 }
 0x5e7   : > { %s6234_s0 = scalar_lea.hbm %s6233_s7, 4  ;;  %p6239_p7 = scmp.lt.s32.totalorder %s6233_s7, %s8747_s11 }
 0x5e8   : > { %p6235_p2 = scmp.ne.s32.totalorder %s6233_s7, %s6234_s0  ;;  %p6240_p8 = scmp.lt.s32.totalorder %s6238_s18, %s6234_s0 }
 0x5ea   : > { %p6236_p3 = pnand %p6235_p2, %p6438_p5  ;;  %p6241_p9 = por %p6240_p8, %p6239_p7 }
 0x5ec   : > { %p6237_p4 = pneg %p6236_p3 }
 0x5ee   : > { %p6242_p10 = pnand %p6241_p9, %p6237_p4 }
 0x5f0   : > { %6245 = shalt.err (!%p6242_p10)
}
 0x5f1   : > { %6028 = dma.vmem_to_hbm [thread:$0]  (%p6438_p5), %s5335_s23, 64, %s5337_s6, %s8654_s20   ;;  %v6101_v23 = vld [vmem:[%s8744_s8] ss:$0 sm:$0xff] }
 0x5f2   : > { %s5345_s2 = scalar_lea.hbm %s8748_s12, %s6419_s25  ;;  %s467_s5 = scalar_lea.vmem [#allocation19], %s7591_s26 }
 0x5f3   : > { %s5347_s3 = sshll.u32 %s467_s5, 4  ;;  %s5349_s30 = sshll.u32 %s5345_s2, 4  ;;  %s5348_s3 = int_to_ptr.vmem [resolvable:$true] %s5347_s3  ;;  %s5350_s30 = int_to_ptr.hbm [resolvable:$true] %s5349_s30 }
 0x5f4   : > { %s5289_s19 = scalar_lea.sflag [#allocation20], %s7591_s26  ;;  %s6260_s4 = sshra.s32 %s5350_s30, 4  ;;  %s6261_s4 = int_to_ptr.hbm [resolvable:$true] %s6260_s4 }
 0x5f5   : > { %s6262_s23 = scalar_lea.hbm %s6261_s4, 1  ;;  %s6266_s7 = scalar_lea.hbm %s8748_s12, 2 }
 0x5f6   : > { %p6263_p11 = scmp.ne.s32.totalorder %s6261_s4, %s6262_s23  ;;  %p6267_p0 = scmp.lt.s32.totalorder %s6261_s4, %s8748_s12 }
 0x5f7   : > { %p6268_p1 = scmp.lt.s32.totalorder %s6266_s7, %s6262_s23 }
 0x5f8   : > { %p6264_p12 = pnand %p6263_p11, %p6438_p5 }
 0x5f9   : > { %p6269_p2 = por %p6268_p1, %p6267_p0 }
 0x5fa   : > { %p6265_p13 = pneg %p6264_p12 }
 0x5fc   : > { %p6270_p3 = pnand %p6269_p2, %p6265_p13 }
 0x63e   : > { %v4989_v16 = vpop.f32.mrf.mxu1 }
 0x641   : > { %v5082_v44 = vpop.f32.mrf.mxu0 }
 0x646   : > { %v5012_v19 = vpop.f32.mrf.mxu2 }
 0x647   : > { %v5048_v45 = vpop.f32.mrf.mxu3  ;;  %v5013_v59 = vadd.f32 %v5012_v19, %v4989_v16  ;;  %v5116_v52 = vpop.f32.mrf.mxu1 }
 0x649   : > { %v5051_v0 = vadd.f32 %v5048_v45, %v5013_v59  ;;  %v5219_v6 = vpop.f32.mrf.mxu0 }
 0x64b   : > { %v5085_v46 = vadd.f32 %v5082_v44, %v5051_v0 }
 0x64d   : > { %v5119_v18 = vadd.f32 %v5116_v52, %v5085_v46 }
 0x64e   : > { %v5151_v51 = vpop.f32.mrf.mxu2 }
 0x64f   : > { %v5154_v28 = vadd.f32 %v5151_v51, %v5119_v18  ;;  %v5185_v50 = vpop.f32.mrf.mxu3  ;;  %v5254_v55 = vpop.f32.mrf.mxu1 }
 0x651   : > { %v5188_v15 = vadd.f32 %v5185_v50, %v5154_v28 }
 0x653   : > { %v5222_v61 = vadd.f32 %v5219_v6, %v5188_v15 }
 0x655   : > { %v5257_v56 = vadd.f32 %v5254_v55, %v5222_v61 }
 0x657   : > { %v5262_v37 = vadd.f32 %v6101_v23, %v5257_v56 }
 0x659   : > { %5263 = vst [vmem:[#allocation9] sm:$0xf] %v5262_v37 }
 0x660   : > { %v5264_v60 = vld [vmem:[#allocation9] ss:$2 sm:$0x3]  ;;  %v5266_v32 = vld [vmem:[#allocation9 + $0x1] ss:$2 sm:$0x3] }
 0x661   : > { %v5267_v14 = vmax.f32 %v5264_v60, %v5266_v32 }
 0x663   : > { %v5269_v39 = vrot.slane %v5267_v14, 1 }
 0x665   : > { %v5271_v34 = vmax.f32 %v5267_v14, %v5269_v39 }
 0x667   : > { %5272 = vst [vmem:[%s467_s5] sm:$0x1] %v5271_v34 }
 0x668   : > { %6273 = shalt.err (!%p6270_p3)
}
 0x669   : > { %6029 = dma.vmem_to_hbm [thread:$0]  (%p6438_p5), %s5348_s3, 16, %s5350_s30, %s5289_s19  }
 0x66a PF: > { %p6058_p4 = scmp.ge.s32.totalorder %s6324_s24, 2  ;;  %s5361_s26 = sand.u32 1, %s6312_s21  }
 0x66b   : > { %s5362_s17 = scalar_lea.sflag [#allocation12], %s5361_s26 }
 0x66c   : > { %p6042_p7 = pnand %p6058_p4, %p6442_p6 }
 0x66e   : > { %p6043_p8 = pneg %p6042_p7 }
 0x670   : > { %6299 = dma.done.wait (%p6043_p8), %s5362_s17, 1024  }
 0x671   : > { %6301 = vsyncadd (%p6043_p8), %s5362_s17, 4294966272  ;;  %s9127_s18 = sadd.s32 4294967294, %s6324_s24  }
 0x672   : > { %s5371_s15 = sand.u32 1, %s9127_s18  }
 0x673   : > { %s5372_s28 = scalar_lea.sflag [#allocation17], %s5371_s15 }
 0x674   : > { %6303 = dma.done.wait (%p6043_p8), %s5372_s28, 320  }
 0x675   : > { %6305 = vsyncadd (%p6043_p8), %s5372_s28, 4294966976  ;;  %s5392_s13 = scalar_lea.sflag [#allocation20], %s5361_s26 }
 0x676   : > { %6307 = dma.done.wait (%p6043_p8), %s5392_s13, 16  }
 0x677   : > { %6309 = vsyncadd (%p6043_p8), %s5392_s13, 4294967280  ;;  %s9128_s24 = sld [smem:[#allocation27_spill]]  ;;  %s9131_s21 = smov %s6316_s22 }
 0x678   : > { %s9129_s16 = sld [smem:[#allocation26_spill]] }
 0x679   : > { %s9130_s23 = sld [smem:[#allocation28_spill]] }
 0x67d   : > { %p31_p5 = scmp.ge.s32.totalorder %s9128_s24, 4  }
 0x67e   : > { %s9132_s22 = smov %s9129_s16 }
 0x67f   :  { %33 = sbr.rel (!%p31_p5) target bundleno = 18 (0x12), region = 229 }
 0x684   :  { %5397 = vsyncpa [#allocation11], 1 }
 0x685   :  { %5399 = vsyncpa [#allocation11 + $0x1], 1 }
 0x686   :  { %5400 = vsyncpa [#allocation14], 1 }
 0x687   :  { %5401 = vsyncpa [#allocation12], 1 }
 0x688   :  { %5403 = vsyncpa [#allocation12 + $0x1], 1 }
 0x689   :  { %5404 = vsyncpa [#allocation17], 1 }
 0x68a   :  { %5406 = vsyncpa [#allocation17 + $0x1], 1 }
 0x68b   :  { %5407 = vsyncpa [#allocation20], 1 }
 0x68c   :  { %5409 = vsyncpa [#allocation20 + $0x1], 1 }

</bundles_post_ra>
